<compile_context>
chip_gen: v7x
topology: tpu7x:2x2x1
jax: 0.10.0
libtpu: 0.0.40
codegen_flags: <defaults>
</compile_context>

<pallas_src>
import jax
import jax.numpy as jnp
from jax.experimental import pallas as pl
from jax.experimental.pallas import tpu as pltpu

# (kernel_size, stride) of the six Conv1d layers in BaselineNet.convs
CONV_SPECS = [(10, 5), (8, 4), (6, 3), (5, 2), (4, 2), (3, 1)]
BN_EPS = 1e-5


def conv_output_lengths(window_size):
    lens = [window_size]
    for k, s in CONV_SPECS:
        lens.append((lens[-1] - k) // s + 1)
    return lens


def layer_dims_for(window_size):
    lens = conv_output_lengths(window_size)
    return [(k, s, lens[i], lens[i + 1]) for i, (k, s) in enumerate(CONV_SPECS)]


# ---------------------------------------------------------------------------
# Fused Pallas kernel (whole network, one launch)
# ---------------------------------------------------------------------------
def make_fused_kernel(batch, chans, layer_dims):
    R = batch * chans                                   # activation rows = (b, c)
    n_sel = sum(1 for (_k, s, _li, _lo) in layer_dims if s > 1)
    for (k, s, li, lo) in layer_dims:
        if s == 1:
            assert lo == li - k + 1

    def kernel(*refs):
        # inputs: x(R,L0), wbig(6,R,R*Kmax), gamma(6,R,1), beta(6,R,1), cbias(6,R,1),
        #         bmix(R,R), wfc(B*ncls,R), bfc(B*ncls,1), sel_l (L_full_l, L_out_l)...
        # output: (B*ncls, 1); scratch: taps (R*Kmax, L_full_max)
        (x_ref, wbig_ref, gam_ref, bet_ref, cb_ref, bmix_ref,
         wfc_ref, bfc_ref) = refs[:8]
        sel_refs = refs[8:8 + n_sel]
        o_ref = refs[8 + n_sel]
        taps_ref = refs[8 + n_sel + 1]

        src = x_ref[...]                                # (R, L0), time on lanes
        si = 0
        for l, (K, S, L_in, L_out) in enumerate(layer_dims):
            L_full = L_in - K + 1

            # (1) taps: K contiguous lane-shifted copies (all batches & channels at once)
            for k in range(K):
                taps_ref[k * R:(k + 1) * R, 0:L_full] = src[:, k:k + L_full]

            # (2) channel mix + tap sum: ONE dot per layer, contraction = B*C*K (<= 80)
            full = jnp.dot(wbig_ref[l][:, :R * K],
                           taps_ref[0:R * K, 0:L_full],
                           preferred_element_type=jnp.float32)          # (R, L_full)

            # (3) conv stride as a one-hot matmul (lane-dense; no strided sublane reads)
            if S > 1:
                pre = jnp.dot(full, sel_refs[si][...],
                              preferred_element_type=jnp.float32)       # (R, L_out)
                si += 1
            else:
                pre = full                                              # L_out == L_full
            pre = pre + cb_ref[l]                                       # Conv1d bias

            # (4) BatchNorm1d (training-mode batch stats, two-pass centered) + ReLU
            inv_n = 1.0 / float(batch * L_out)
            row_sum = jnp.sum(pre, axis=1, keepdims=True)               # (R, 1)
            mean = jnp.dot(bmix_ref[...], row_sum,
                           preferred_element_type=jnp.float32) * inv_n  # per-chan, all rows
            cen = pre - mean
            row_ssq = jnp.sum(cen * cen, axis=1, keepdims=True)
            var = jnp.dot(bmix_ref[...], row_ssq,
                          preferred_element_type=jnp.float32) * inv_n
            scale = gam_ref[l] * jax.lax.rsqrt(var + BN_EPS)
            src = jnp.maximum(cen * scale + bet_ref[l], 0.0)            # (R, L_out)

        # Head: AdaptiveAvgPool1d(1) (lane mean) + Linear + Sigmoid (EUP).
        L_last = layer_dims[-1][3]
        pooled = jnp.sum(src, axis=1, keepdims=True) * (1.0 / float(L_last))  # (R, 1)
        logits = jnp.dot(wfc_ref[...], pooled,
                         preferred_element_type=jnp.float32) + bfc_ref[...]   # (B*ncls, 1)
        o_ref[...] = jax.nn.sigmoid(logits)

    return kernel


# ---------------------------------------------------------------------------
# One-time parameter repacking (per perf feedback: do NOT repack per call)
# ---------------------------------------------------------------------------
def pack_params(params, batch, window_size):
    w0 = params["convs"][0][0]
    chans = w0.shape[0]
    R = batch * chans
    dims = layer_dims_for(window_size)
    k_max = max(k for k, _ in CONV_SPECS)
    eye_b = jnp.eye(batch, dtype=jnp.float32)

    wbig, gam, bet, cb = [], [], [], []
    for (w, b, gamma, beta), (K, S, L_in, L_out) in zip(params["convs"], dims):
        # (C_out, C_in, K) -> batch-block-diagonal (R, K*R):
        #   Wbig[b*C+co, k*R + d*C + ci] = w[co, ci, k] * (b == d)
        wk = jnp.transpose(w, (2, 0, 1)).astype(jnp.float32)             # (K, Co, Ci)
        w5 = jnp.einsum("bd,koi->bokdi", eye_b, wk)                       # (B,Co,K,B,Ci)
        wb = w5.reshape(R, K * R)
        wbig.append(jnp.pad(wb, ((0, 0), (0, (k_max - K) * R))))
        gam.append(jnp.tile(gamma.astype(jnp.float32), batch).reshape(R, 1))
        bet.append(jnp.tile(beta.astype(jnp.float32), batch).reshape(R, 1))
        cb.append(jnp.tile(b.astype(jnp.float32), batch).reshape(R, 1))

    # Stride one-hot matrices: sel[u, t] = 1 iff u == S*t  (built once, reused each call)
    sels = []
    for (K, S, L_in, L_out) in dims:
        if S > 1:
            L_full = L_in - K + 1
            sels.append((jnp.arange(L_full)[:, None] ==
                         S * jnp.arange(L_out)[None, :]).astype(jnp.float32))

    w_fc, b_fc = params["fc"]
    n_cls = w_fc.shape[0]
    return {
        "wbig": jnp.stack(wbig),                                          # (6, R, R*Kmax)
        "gamma": jnp.stack(gam),                                          # (6, R, 1)
        "beta": jnp.stack(bet),                                           # (6, R, 1)
        "cbias": jnp.stack(cb),                                           # (6, R, 1)
        # bmix @ per-row-sums = per-channel sum over batch rows, replicated to all rows
        "bmix": jnp.kron(jnp.ones((batch, batch), jnp.float32),
                         jnp.eye(chans, dtype=jnp.float32)),              # (R, R)
        "wfc": jnp.einsum("bd,ji->bjdi", eye_b,
                          w_fc.astype(jnp.float32)).reshape(batch * n_cls, R),
        "bfc": jnp.tile(b_fc.astype(jnp.float32), batch).reshape(batch * n_cls, 1),
        "sels": tuple(sels),
    }


# ---------------------------------------------------------------------------
# Wrapper
# ---------------------------------------------------------------------------
def baseline_net_forward(packed, x):
    """x: (batch, window_size, channels) -> sigmoid logits (batch, out_classes)."""
    batch, window, chans = x.shape
    R = batch * chans
    dims = layer_dims_for(window)
    k_max = max(k for k, _ in CONV_SPECS)
    l_full_max = max(li - k + 1 for (k, _s, li, _lo) in dims)
    n_cls = packed["bfc"].shape[0] // batch
    sels = packed["sels"]

    # Time-on-lanes packing: (B, L, C) -> (B*C, L)  (row = b*C + c)
    x2 = jnp.transpose(x, (0, 2, 1)).reshape(R, window).astype(jnp.float32)

    kernel = make_fused_kernel(batch, chans, dims)
    vmem = pl.BlockSpec(memory_space=pltpu.MemorySpace.VMEM)
    out = pl.pallas_call(
        kernel,
        out_shape=jax.ShapeDtypeStruct((batch * n_cls, 1), jnp.float32),
        in_specs=[vmem] * (8 + len(sels)),
        out_specs=vmem,
        scratch_shapes=[pltpu.VMEM((R * k_max, l_full_max), jnp.float32)],
    )(x2, packed["wbig"], packed["gamma"], packed["beta"], packed["cbias"],
      packed["bmix"], packed["wfc"], packed["bfc"], *sels)
    return out.reshape(batch, n_cls)


def init_params(key, in_channels, out_classes):
    """Deterministic synthetic parameters with the shapes from __init__."""
    params = {"convs": [], "fc": None}
    for (k, _) in CONV_SPECS:
        key, kw, kb = jax.random.split(key, 3)
        bound = 1.0 / jnp.sqrt(in_channels * k)
        w = jax.random.uniform(kw, (in_channels, in_channels, k),
                               jnp.float32, -bound, bound)
        b = jax.random.uniform(kb, (in_channels,), jnp.float32, -bound, bound)
        gamma = jnp.ones((in_channels,), jnp.float32)   # BatchNorm1d weight init
        beta = jnp.zeros((in_channels,), jnp.float32)   # BatchNorm1d bias init
        params["convs"].append((w, b, gamma, beta))
    key, kw, kb = jax.random.split(key, 3)
    bound = 1.0 / jnp.sqrt(in_channels)
    w_fc = jax.random.uniform(kw, (out_classes, in_channels),
                              jnp.float32, -bound, bound)
    b_fc = jax.random.uniform(kb, (out_classes,), jnp.float32, -bound, bound)
    params["fc"] = (w_fc, b_fc)
    return params


# ---------------------------------------------------------------------------
# Pure-JAX reference (correctness check of the Pallas path)
# ---------------------------------------------------------------------------
def reference_forward(params, x):
    h = jnp.transpose(x, (0, 2, 1))                                 # (B, C, L), like torch
    for (w, b, gamma, beta), (k, s) in zip(params["convs"], CONV_SPECS):
        h = jax.lax.conv_general_dilated(
            h, w, window_strides=(s,), padding="VALID",
            dimension_numbers=("NCH", "OIH", "NCH"))
        h = h + b[None, :, None]
        mean = jnp.mean(h, axis=(0, 2), keepdims=True)
        var = jnp.mean(jnp.square(h - mean), axis=(0, 2), keepdims=True)
        h = (h - mean) / jnp.sqrt(var + BN_EPS)
        h = jnp.maximum(gamma[None, :, None] * h + beta[None, :, None], 0.0)
    pooled = jnp.mean(h, axis=2)                                    # AdaptiveAvgPool1d(1)
    w_fc, b_fc = params["fc"]
    return jax.nn.sigmoid(pooled @ w_fc.T + b_fc)


if __name__ == "__main__":
    in_channels = 4
    out_classes = 5
    batch = 2
    # The six strided valid convs need window_size >= 1225 to produce a non-empty
    # output; 1280 keeps shapes small while satisfying the stack.
    window_size = 1280

    key = jax.random.PRNGKey(0)
    kx, kp = jax.random.split(key)
    x = jax.random.normal(kx, (batch, window_size, in_channels), jnp.float32)
    params = init_params(kp, in_channels, out_classes)
    packed = pack_params(params, batch, window_size)     # one-time repack (not per call)

    out = jax.jit(baseline_net_forward)(packed, x)
    out = jax.block_until_ready(out)

    ref = reference_forward(params, x)
    assert out.shape == (batch, out_classes)
    assert bool(jnp.allclose(out, ref, atol=1e-2, rtol=1e-2))

    print("KERNEL_OK")
</pallas_src>

<mosaic_0001>
module attributes {stable_mosaic.version = 11 : i64} {
  func.func @kernel(%arg0: memref<8x1280xf32, #tpu.memory_space<vmem>>, %arg1: memref<6x8x80xf32, #tpu.memory_space<vmem>>, %arg2: memref<6x8x1xf32, #tpu.memory_space<vmem>>, %arg3: memref<6x8x1xf32, #tpu.memory_space<vmem>>, %arg4: memref<6x8x1xf32, #tpu.memory_space<vmem>>, %arg5: memref<8x8xf32, #tpu.memory_space<vmem>>, %arg6: memref<10x8xf32, #tpu.memory_space<vmem>>, %arg7: memref<10x1xf32, #tpu.memory_space<vmem>>, %arg8: memref<1271x255xf32, #tpu.memory_space<vmem>>, %arg9: memref<248x62xf32, #tpu.memory_space<vmem>>, %arg10: memref<57x19xf32, #tpu.memory_space<vmem>>, %arg11: memref<15x8xf32, #tpu.memory_space<vmem>>, %arg12: memref<5x3xf32, #tpu.memory_space<vmem>>, %arg13: memref<10x1xf32, #tpu.memory_space<vmem>>, %arg14: memref<80x1271xf32, #tpu.memory_space<vmem>>) attributes {dimension_semantics = [], scalar_prefetch = 0 : i64, scratch_operands = 1 : i64, tpu.core_type = #tpu.core_type<tc>} {
    %c0 = arith.constant 0 : index
    %c0_0 = arith.constant 0 : index
    %0 = vector.load %arg0[%c0, %c0_0] : memref<8x1280xf32, #tpu.memory_space<vmem>>, vector<8x1280xf32>
    %1 = vector.extract_strided_slice %0 {offsets = [0, 0], sizes = [8, 1271], strides = [1, 1]} : vector<8x1280xf32> to vector<8x1271xf32>
    %c0_1 = arith.constant 0 : index
    %c0_2 = arith.constant 0 : index
    %2 = vector.load %arg14[%c0_1, %c0_2] : memref<80x1271xf32, #tpu.memory_space<vmem>>, vector<8x1271xf32>
    tpu.vector_store %arg14[%c0_1, %c0_2], %1 {strides = array<i32>} : memref<80x1271xf32, #tpu.memory_space<vmem>>, vector<8x1271xf32>,
    %3 = vector.extract_strided_slice %0 {offsets = [0, 1], sizes = [8, 1271], strides = [1, 1]} : vector<8x1280xf32> to vector<8x1271xf32>
    %c8 = arith.constant 8 : index
    %c0_3 = arith.constant 0 : index
    %4 = vector.load %arg14[%c8, %c0_3] : memref<80x1271xf32, #tpu.memory_space<vmem>>, vector<8x1271xf32>
    tpu.vector_store %arg14[%c8, %c0_3], %3 {strides = array<i32>} : memref<80x1271xf32, #tpu.memory_space<vmem>>, vector<8x1271xf32>,
    %5 = vector.extract_strided_slice %0 {offsets = [0, 2], sizes = [8, 1271], strides = [1, 1]} : vector<8x1280xf32> to vector<8x1271xf32>
    %c16 = arith.constant 16 : index
    %c0_4 = arith.constant 0 : index
    %6 = vector.load %arg14[%c16, %c0_4] : memref<80x1271xf32, #tpu.memory_space<vmem>>, vector<8x1271xf32>
    tpu.vector_store %arg14[%c16, %c0_4], %5 {strides = array<i32>} : memref<80x1271xf32, #tpu.memory_space<vmem>>, vector<8x1271xf32>,
    %7 = vector.extract_strided_slice %0 {offsets = [0, 3], sizes = [8, 1271], strides = [1, 1]} : vector<8x1280xf32> to vector<8x1271xf32>
    %c24 = arith.constant 24 : index
    %c0_5 = arith.constant 0 : index
    %8 = vector.load %arg14[%c24, %c0_5] : memref<80x1271xf32, #tpu.memory_space<vmem>>, vector<8x1271xf32>
    tpu.vector_store %arg14[%c24, %c0_5], %7 {strides = array<i32>} : memref<80x1271xf32, #tpu.memory_space<vmem>>, vector<8x1271xf32>,
    %9 = vector.extract_strided_slice %0 {offsets = [0, 4], sizes = [8, 1271], strides = [1, 1]} : vector<8x1280xf32> to vector<8x1271xf32>
    %c32 = arith.constant 32 : index
    %c0_6 = arith.constant 0 : index
    %10 = vector.load %arg14[%c32, %c0_6] : memref<80x1271xf32, #tpu.memory_space<vmem>>, vector<8x1271xf32>
    tpu.vector_store %arg14[%c32, %c0_6], %9 {strides = array<i32>} : memref<80x1271xf32, #tpu.memory_space<vmem>>, vector<8x1271xf32>,
    %11 = vector.extract_strided_slice %0 {offsets = [0, 5], sizes = [8, 1271], strides = [1, 1]} : vector<8x1280xf32> to vector<8x1271xf32>
    %c40 = arith.constant 40 : index
    %c0_7 = arith.constant 0 : index
    %12 = vector.load %arg14[%c40, %c0_7] : memref<80x1271xf32, #tpu.memory_space<vmem>>, vector<8x1271xf32>
    tpu.vector_store %arg14[%c40, %c0_7], %11 {strides = array<i32>} : memref<80x1271xf32, #tpu.memory_space<vmem>>, vector<8x1271xf32>,
    %13 = vector.extract_strided_slice %0 {offsets = [0, 6], sizes = [8, 1271], strides = [1, 1]} : vector<8x1280xf32> to vector<8x1271xf32>
    %c48 = arith.constant 48 : index
    %c0_8 = arith.constant 0 : index
    %14 = vector.load %arg14[%c48, %c0_8] : memref<80x1271xf32, #tpu.memory_space<vmem>>, vector<8x1271xf32>
    tpu.vector_store %arg14[%c48, %c0_8], %13 {strides = array<i32>} : memref<80x1271xf32, #tpu.memory_space<vmem>>, vector<8x1271xf32>,
    %15 = vector.extract_strided_slice %0 {offsets = [0, 7], sizes = [8, 1271], strides = [1, 1]} : vector<8x1280xf32> to vector<8x1271xf32>
    %c56 = arith.constant 56 : index
    %c0_9 = arith.constant 0 : index
    %16 = vector.load %arg14[%c56, %c0_9] : memref<80x1271xf32, #tpu.memory_space<vmem>>, vector<8x1271xf32>
    tpu.vector_store %arg14[%c56, %c0_9], %15 {strides = array<i32>} : memref<80x1271xf32, #tpu.memory_space<vmem>>, vector<8x1271xf32>,
    %17 = vector.extract_strided_slice %0 {offsets = [0, 8], sizes = [8, 1271], strides = [1, 1]} : vector<8x1280xf32> to vector<8x1271xf32>
    %c64 = arith.constant 64 : index
    %c0_10 = arith.constant 0 : index
    %18 = vector.load %arg14[%c64, %c0_10] : memref<80x1271xf32, #tpu.memory_space<vmem>>, vector<8x1271xf32>
    tpu.vector_store %arg14[%c64, %c0_10], %17 {strides = array<i32>} : memref<80x1271xf32, #tpu.memory_space<vmem>>, vector<8x1271xf32>,
    %19 = vector.extract_strided_slice %0 {offsets = [0, 9], sizes = [8, 1271], strides = [1, 1]} : vector<8x1280xf32> to vector<8x1271xf32>
    %c72 = arith.constant 72 : index
    %c0_11 = arith.constant 0 : index
    %20 = vector.load %arg14[%c72, %c0_11] : memref<80x1271xf32, #tpu.memory_space<vmem>>, vector<8x1271xf32>
    tpu.vector_store %arg14[%c72, %c0_11], %19 {strides = array<i32>} : memref<80x1271xf32, #tpu.memory_space<vmem>>, vector<8x1271xf32>,
    %c0_12 = arith.constant 0 : index
    %c0_13 = arith.constant 0 : index
    %c0_14 = arith.constant 0 : index
    %21 = vector.load %arg1[%c0_12, %c0_13, %c0_14] : memref<6x8x80xf32, #tpu.memory_space<vmem>>, vector<1x8x80xf32>
    %22 = vector.shape_cast %21 : vector<1x8x80xf32> to vector<8x80xf32>
    %c0_15 = arith.constant 0 : index
    %c0_16 = arith.constant 0 : index
    %23 = vector.load %arg14[%c0_15, %c0_16] : memref<80x1271xf32, #tpu.memory_space<vmem>>, vector<80x1271xf32>
    %cst = arith.constant dense<0.000000e+00> : vector<8x1271xf32>
    %24 = tpu.matmul %22, %23, %cst {dimension_numbers = #tpu.dot_dimension_numbers<[1], [0], [0], [1], [0, 0, 1, 1], [], []>} : vector<8x80xf32>, vector<80x1271xf32>, vector<8x1271xf32> -> vector<8x1271xf32>
    %c0_17 = arith.constant 0 : index
    %c0_18 = arith.constant 0 : index
    %25 = vector.load %arg8[%c0_17, %c0_18] : memref<1271x255xf32, #tpu.memory_space<vmem>>, vector<1271x255xf32>
    %cst_19 = arith.constant dense<0.000000e+00> : vector<8x255xf32>
    %26 = tpu.matmul %24, %25, %cst_19 {dimension_numbers = #tpu.dot_dimension_numbers<[1], [0], [0], [1], [0, 0, 1, 1], [], []>} : vector<8x1271xf32>, vector<1271x255xf32>, vector<8x255xf32> -> vector<8x255xf32>
    %c0_20 = arith.constant 0 : index
    %c0_21 = arith.constant 0 : index
    %c0_22 = arith.constant 0 : index
    %27 = vector.load %arg4[%c0_20, %c0_21, %c0_22] : memref<6x8x1xf32, #tpu.memory_space<vmem>>, vector<1x8x1xf32>
    %28 = vector.shape_cast %27 : vector<1x8x1xf32> to vector<8x1xf32>
    %29 = vector.broadcast %28 : vector<8x1xf32> to vector<8x255xf32>
    %30 = arith.addf %26, %29 : vector<8x255xf32>
    %cst_23 = arith.constant dense<0.000000e+00> : vector<8xf32>
    %31 = vector.multi_reduction <add>, %30, %cst_23 [1] : vector<8x255xf32> to vector<8xf32>
    %32 = vector.shape_cast %31 : vector<8xf32> to vector<8x1xf32>
    %c0_24 = arith.constant 0 : index
    %c0_25 = arith.constant 0 : index
    %33 = vector.load %arg5[%c0_24, %c0_25] : memref<8x8xf32, #tpu.memory_space<vmem>>, vector<8x8xf32>
    %cst_26 = arith.constant dense<0.000000e+00> : vector<8x1xf32>
    %34 = tpu.matmul %33, %32, %cst_26 {dimension_numbers = #tpu.dot_dimension_numbers<[1], [0], [0], [1], [0, 0, 1, 1], [], []>} : vector<8x8xf32>, vector<8x1xf32>, vector<8x1xf32> -> vector<8x1xf32>
    %cst_27 = arith.constant 0.00196078443 : f32
    %35 = vector.broadcast %cst_27 : f32 to vector<8x1xf32>
    %36 = arith.mulf %34, %35 : vector<8x1xf32>
    %37 = vector.broadcast %36 : vector<8x1xf32> to vector<8x255xf32>
    %38 = arith.subf %30, %37 : vector<8x255xf32>
    %39 = arith.mulf %38, %38 : vector<8x255xf32>
    %cst_28 = arith.constant dense<0.000000e+00> : vector<8xf32>
    %40 = vector.multi_reduction <add>, %39, %cst_28 [1] : vector<8x255xf32> to vector<8xf32>
    %41 = vector.shape_cast %40 : vector<8xf32> to vector<8x1xf32>
    %c0_29 = arith.constant 0 : index
    %c0_30 = arith.constant 0 : index
    %42 = vector.load %arg5[%c0_29, %c0_30] : memref<8x8xf32, #tpu.memory_space<vmem>>, vector<8x8xf32>
    %cst_31 = arith.constant dense<0.000000e+00> : vector<8x1xf32>
    %43 = tpu.matmul %42, %41, %cst_31 {dimension_numbers = #tpu.dot_dimension_numbers<[1], [0], [0], [1], [0, 0, 1, 1], [], []>} : vector<8x8xf32>, vector<8x1xf32>, vector<8x1xf32> -> vector<8x1xf32>
    %cst_32 = arith.constant 0.00196078443 : f32
    %44 = vector.broadcast %cst_32 : f32 to vector<8x1xf32>
    %45 = arith.mulf %43, %44 : vector<8x1xf32>
    %c0_33 = arith.constant 0 : index
    %c0_34 = arith.constant 0 : index
    %c0_35 = arith.constant 0 : index
    %46 = vector.load %arg2[%c0_33, %c0_34, %c0_35] : memref<6x8x1xf32, #tpu.memory_space<vmem>>, vector<1x8x1xf32>
    %47 = vector.shape_cast %46 : vector<1x8x1xf32> to vector<8x1xf32>
    %cst_36 = arith.constant 9.99999974E-6 : f32
    %48 = vector.broadcast %cst_36 : f32 to vector<8x1xf32>
    %49 = arith.addf %45, %48 : vector<8x1xf32>
    %50 = math.rsqrt %49 : vector<8x1xf32>
    %51 = arith.mulf %47, %50 : vector<8x1xf32>
    %52 = vector.broadcast %51 : vector<8x1xf32> to vector<8x255xf32>
    %53 = arith.mulf %38, %52 : vector<8x255xf32>
    %c0_37 = arith.constant 0 : index
    %c0_38 = arith.constant 0 : index
    %c0_39 = arith.constant 0 : index
    %54 = vector.load %arg3[%c0_37, %c0_38, %c0_39] : memref<6x8x1xf32, #tpu.memory_space<vmem>>, vector<1x8x1xf32>
    %55 = vector.shape_cast %54 : vector<1x8x1xf32> to vector<8x1xf32>
    %56 = vector.broadcast %55 : vector<8x1xf32> to vector<8x255xf32>
    %57 = arith.addf %53, %56 : vector<8x255xf32>
    %cst_40 = arith.constant 0.000000e+00 : f32
    %58 = vector.broadcast %cst_40 : f32 to vector<8x255xf32>
    %59 = arith.maximumf %57, %58 : vector<8x255xf32>
    %60 = vector.extract_strided_slice %59 {offsets = [0, 0], sizes = [8, 248], strides = [1, 1]} : vector<8x255xf32> to vector<8x248xf32>
    %c0_41 = arith.constant 0 : index
    %c0_42 = arith.constant 0 : index
    %61 = vector.load %arg14[%c0_41, %c0_42] : memref<80x1271xf32, #tpu.memory_space<vmem>>, vector<8x248xf32>
    tpu.vector_store %arg14[%c0_41, %c0_42], %60 {strides = array<i32>} : memref<80x1271xf32, #tpu.memory_space<vmem>>, vector<8x248xf32>,
    %62 = vector.extract_strided_slice %59 {offsets = [0, 1], sizes = [8, 248], strides = [1, 1]} : vector<8x255xf32> to vector<8x248xf32>
    %c8_43 = arith.constant 8 : index
    %c0_44 = arith.constant 0 : index
    %63 = vector.load %arg14[%c8_43, %c0_44] : memref<80x1271xf32, #tpu.memory_space<vmem>>, vector<8x248xf32>
    tpu.vector_store %arg14[%c8_43, %c0_44], %62 {strides = array<i32>} : memref<80x1271xf32, #tpu.memory_space<vmem>>, vector<8x248xf32>,
    %64 = vector.extract_strided_slice %59 {offsets = [0, 2], sizes = [8, 248], strides = [1, 1]} : vector<8x255xf32> to vector<8x248xf32>
    %c16_45 = arith.constant 16 : index
    %c0_46 = arith.constant 0 : index
    %65 = vector.load %arg14[%c16_45, %c0_46] : memref<80x1271xf32, #tpu.memory_space<vmem>>, vector<8x248xf32>
    tpu.vector_store %arg14[%c16_45, %c0_46], %64 {strides = array<i32>} : memref<80x1271xf32, #tpu.memory_space<vmem>>, vector<8x248xf32>,
    %66 = vector.extract_strided_slice %59 {offsets = [0, 3], sizes = [8, 248], strides = [1, 1]} : vector<8x255xf32> to vector<8x248xf32>
    %c24_47 = arith.constant 24 : index
    %c0_48 = arith.constant 0 : index
    %67 = vector.load %arg14[%c24_47, %c0_48] : memref<80x1271xf32, #tpu.memory_space<vmem>>, vector<8x248xf32>
    tpu.vector_store %arg14[%c24_47, %c0_48], %66 {strides = array<i32>} : memref<80x1271xf32, #tpu.memory_space<vmem>>, vector<8x248xf32>,
    %68 = vector.extract_strided_slice %59 {offsets = [0, 4], sizes = [8, 248], strides = [1, 1]} : vector<8x255xf32> to vector<8x248xf32>
    %c32_49 = arith.constant 32 : index
    %c0_50 = arith.constant 0 : index
    %69 = vector.load %arg14[%c32_49, %c0_50] : memref<80x1271xf32, #tpu.memory_space<vmem>>, vector<8x248xf32>
    tpu.vector_store %arg14[%c32_49, %c0_50], %68 {strides = array<i32>} : memref<80x1271xf32, #tpu.memory_space<vmem>>, vector<8x248xf32>,
    %70 = vector.extract_strided_slice %59 {offsets = [0, 5], sizes = [8, 248], strides = [1, 1]} : vector<8x255xf32> to vector<8x248xf32>
    %c40_51 = arith.constant 40 : index
    %c0_52 = arith.constant 0 : index
    %71 = vector.load %arg14[%c40_51, %c0_52] : memref<80x1271xf32, #tpu.memory_space<vmem>>, vector<8x248xf32>
    tpu.vector_store %arg14[%c40_51, %c0_52], %70 {strides = array<i32>} : memref<80x1271xf32, #tpu.memory_space<vmem>>, vector<8x248xf32>,
    %72 = vector.extract_strided_slice %59 {offsets = [0, 6], sizes = [8, 248], strides = [1, 1]} : vector<8x255xf32> to vector<8x248xf32>
    %c48_53 = arith.constant 48 : index
    %c0_54 = arith.constant 0 : index
    %73 = vector.load %arg14[%c48_53, %c0_54] : memref<80x1271xf32, #tpu.memory_space<vmem>>, vector<8x248xf32>
    tpu.vector_store %arg14[%c48_53, %c0_54], %72 {strides = array<i32>} : memref<80x1271xf32, #tpu.memory_space<vmem>>, vector<8x248xf32>,
    %74 = vector.extract_strided_slice %59 {offsets = [0, 7], sizes = [8, 248], strides = [1, 1]} : vector<8x255xf32> to vector<8x248xf32>
    %c56_55 = arith.constant 56 : index
    %c0_56 = arith.constant 0 : index
    %75 = vector.load %arg14[%c56_55, %c0_56] : memref<80x1271xf32, #tpu.memory_space<vmem>>, vector<8x248xf32>
    tpu.vector_store %arg14[%c56_55, %c0_56], %74 {strides = array<i32>} : memref<80x1271xf32, #tpu.memory_space<vmem>>, vector<8x248xf32>,
    %c1 = arith.constant 1 : index
    %c0_57 = arith.constant 0 : index
    %c0_58 = arith.constant 0 : index
    %76 = vector.load %arg1[%c1, %c0_57, %c0_58] : memref<6x8x80xf32, #tpu.memory_space<vmem>>, vector<1x8x80xf32>
    %77 = vector.shape_cast %76 : vector<1x8x80xf32> to vector<8x80xf32>
    %78 = vector.extract_strided_slice %77 {offsets = [0, 0], sizes = [8, 64], strides = [1, 1]} : vector<8x80xf32> to vector<8x64xf32>
    %c0_59 = arith.constant 0 : index
    %c0_60 = arith.constant 0 : index
    %79 = vector.load %arg14[%c0_59, %c0_60] : memref<80x1271xf32, #tpu.memory_space<vmem>>, vector<64x248xf32>
    %cst_61 = arith.constant dense<0.000000e+00> : vector<8x248xf32>
    %80 = tpu.matmul %78, %79, %cst_61 {dimension_numbers = #tpu.dot_dimension_numbers<[1], [0], [0], [1], [0, 0, 1, 1], [], []>} : vector<8x64xf32>, vector<64x248xf32>, vector<8x248xf32> -> vector<8x248xf32>
    %c0_62 = arith.constant 0 : index
    %c0_63 = arith.constant 0 : index
    %81 = vector.load %arg9[%c0_62, %c0_63] : memref<248x62xf32, #tpu.memory_space<vmem>>, vector<248x62xf32>
    %cst_64 = arith.constant dense<0.000000e+00> : vector<8x62xf32>
    %82 = tpu.matmul %80, %81, %cst_64 {dimension_numbers = #tpu.dot_dimension_numbers<[1], [0], [0], [1], [0, 0, 1, 1], [], []>} : vector<8x248xf32>, vector<248x62xf32>, vector<8x62xf32> -> vector<8x62xf32>
    %c1_65 = arith.constant 1 : index
    %c0_66 = arith.constant 0 : index
    %c0_67 = arith.constant 0 : index
    %83 = vector.load %arg4[%c1_65, %c0_66, %c0_67] : memref<6x8x1xf32, #tpu.memory_space<vmem>>, vector<1x8x1xf32>
    %84 = vector.shape_cast %83 : vector<1x8x1xf32> to vector<8x1xf32>
    %85 = vector.broadcast %84 : vector<8x1xf32> to vector<8x62xf32>
    %86 = arith.addf %82, %85 : vector<8x62xf32>
    %cst_68 = arith.constant dense<0.000000e+00> : vector<8xf32>
    %87 = vector.multi_reduction <add>, %86, %cst_68 [1] : vector<8x62xf32> to vector<8xf32>
    %88 = vector.shape_cast %87 : vector<8xf32> to vector<8x1xf32>
    %c0_69 = arith.constant 0 : index
    %c0_70 = arith.constant 0 : index
    %89 = vector.load %arg5[%c0_69, %c0_70] : memref<8x8xf32, #tpu.memory_space<vmem>>, vector<8x8xf32>
    %cst_71 = arith.constant dense<0.000000e+00> : vector<8x1xf32>
    %90 = tpu.matmul %89, %88, %cst_71 {dimension_numbers = #tpu.dot_dimension_numbers<[1], [0], [0], [1], [0, 0, 1, 1], [], []>} : vector<8x8xf32>, vector<8x1xf32>, vector<8x1xf32> -> vector<8x1xf32>
    %cst_72 = arith.constant 0.00806451589 : f32
    %91 = vector.broadcast %cst_72 : f32 to vector<8x1xf32>
    %92 = arith.mulf %90, %91 : vector<8x1xf32>
    %93 = vector.broadcast %92 : vector<8x1xf32> to vector<8x62xf32>
    %94 = arith.subf %86, %93 : vector<8x62xf32>
    %95 = arith.mulf %94, %94 : vector<8x62xf32>
    %cst_73 = arith.constant dense<0.000000e+00> : vector<8xf32>
    %96 = vector.multi_reduction <add>, %95, %cst_73 [1] : vector<8x62xf32> to vector<8xf32>
    %97 = vector.shape_cast %96 : vector<8xf32> to vector<8x1xf32>
    %c0_74 = arith.constant 0 : index
    %c0_75 = arith.constant 0 : index
    %98 = vector.load %arg5[%c0_74, %c0_75] : memref<8x8xf32, #tpu.memory_space<vmem>>, vector<8x8xf32>
    %cst_76 = arith.constant dense<0.000000e+00> : vector<8x1xf32>
    %99 = tpu.matmul %98, %97, %cst_76 {dimension_numbers = #tpu.dot_dimension_numbers<[1], [0], [0], [1], [0, 0, 1, 1], [], []>} : vector<8x8xf32>, vector<8x1xf32>, vector<8x1xf32> -> vector<8x1xf32>
    %cst_77 = arith.constant 0.00806451589 : f32
    %100 = vector.broadcast %cst_77 : f32 to vector<8x1xf32>
    %101 = arith.mulf %99, %100 : vector<8x1xf32>
    %c1_78 = arith.constant 1 : index
    %c0_79 = arith.constant 0 : index
    %c0_80 = arith.constant 0 : index
    %102 = vector.load %arg2[%c1_78, %c0_79, %c0_80] : memref<6x8x1xf32, #tpu.memory_space<vmem>>, vector<1x8x1xf32>
    %103 = vector.shape_cast %102 : vector<1x8x1xf32> to vector<8x1xf32>
    %cst_81 = arith.constant 9.99999974E-6 : f32
    %104 = vector.broadcast %cst_81 : f32 to vector<8x1xf32>
    %105 = arith.addf %101, %104 : vector<8x1xf32>
    %106 = math.rsqrt %105 : vector<8x1xf32>
    %107 = arith.mulf %103, %106 : vector<8x1xf32>
    %108 = vector.broadcast %107 : vector<8x1xf32> to vector<8x62xf32>
    %109 = arith.mulf %94, %108 : vector<8x62xf32>
    %c1_82 = arith.constant 1 : index
    %c0_83 = arith.constant 0 : index
    %c0_84 = arith.constant 0 : index
    %110 = vector.load %arg3[%c1_82, %c0_83, %c0_84] : memref<6x8x1xf32, #tpu.memory_space<vmem>>, vector<1x8x1xf32>
    %111 = vector.shape_cast %110 : vector<1x8x1xf32> to vector<8x1xf32>
    %112 = vector.broadcast %111 : vector<8x1xf32> to vector<8x62xf32>
    %113 = arith.addf %109, %112 : vector<8x62xf32>
    %cst_85 = arith.constant 0.000000e+00 : f32
    %114 = vector.broadcast %cst_85 : f32 to vector<8x62xf32>
    %115 = arith.maximumf %113, %114 : vector<8x62xf32>
    %116 = vector.extract_strided_slice %115 {offsets = [0, 0], sizes = [8, 57], strides = [1, 1]} : vector<8x62xf32> to vector<8x57xf32>
    %c0_86 = arith.constant 0 : index
    %c0_87 = arith.constant 0 : index
    %117 = vector.load %arg14[%c0_86, %c0_87] : memref<80x1271xf32, #tpu.memory_space<vmem>>, vector<8x57xf32>
    tpu.vector_store %arg14[%c0_86, %c0_87], %116 {strides = array<i32>} : memref<80x1271xf32, #tpu.memory_space<vmem>>, vector<8x57xf32>,
    %118 = vector.extract_strided_slice %115 {offsets = [0, 1], sizes = [8, 57], strides = [1, 1]} : vector<8x62xf32> to vector<8x57xf32>
    %c8_88 = arith.constant 8 : index
    %c0_89 = arith.constant 0 : index
    %119 = vector.load %arg14[%c8_88, %c0_89] : memref<80x1271xf32, #tpu.memory_space<vmem>>, vector<8x57xf32>
    tpu.vector_store %arg14[%c8_88, %c0_89], %118 {strides = array<i32>} : memref<80x1271xf32, #tpu.memory_space<vmem>>, vector<8x57xf32>,
    %120 = vector.extract_strided_slice %115 {offsets = [0, 2], sizes = [8, 57], strides = [1, 1]} : vector<8x62xf32> to vector<8x57xf32>
    %c16_90 = arith.constant 16 : index
    %c0_91 = arith.constant 0 : index
    %121 = vector.load %arg14[%c16_90, %c0_91] : memref<80x1271xf32, #tpu.memory_space<vmem>>, vector<8x57xf32>
    tpu.vector_store %arg14[%c16_90, %c0_91], %120 {strides = array<i32>} : memref<80x1271xf32, #tpu.memory_space<vmem>>, vector<8x57xf32>,
    %122 = vector.extract_strided_slice %115 {offsets = [0, 3], sizes = [8, 57], strides = [1, 1]} : vector<8x62xf32> to vector<8x57xf32>
    %c24_92 = arith.constant 24 : index
    %c0_93 = arith.constant 0 : index
    %123 = vector.load %arg14[%c24_92, %c0_93] : memref<80x1271xf32, #tpu.memory_space<vmem>>, vector<8x57xf32>
    tpu.vector_store %arg14[%c24_92, %c0_93], %122 {strides = array<i32>} : memref<80x1271xf32, #tpu.memory_space<vmem>>, vector<8x57xf32>,
    %124 = vector.extract_strided_slice %115 {offsets = [0, 4], sizes = [8, 57], strides = [1, 1]} : vector<8x62xf32> to vector<8x57xf32>
    %c32_94 = arith.constant 32 : index
    %c0_95 = arith.constant 0 : index
    %125 = vector.load %arg14[%c32_94, %c0_95] : memref<80x1271xf32, #tpu.memory_space<vmem>>, vector<8x57xf32>
    tpu.vector_store %arg14[%c32_94, %c0_95], %124 {strides = array<i32>} : memref<80x1271xf32, #tpu.memory_space<vmem>>, vector<8x57xf32>,
    %126 = vector.extract_strided_slice %115 {offsets = [0, 5], sizes = [8, 57], strides = [1, 1]} : vector<8x62xf32> to vector<8x57xf32>
    %c40_96 = arith.constant 40 : index
    %c0_97 = arith.constant 0 : index
    %127 = vector.load %arg14[%c40_96, %c0_97] : memref<80x1271xf32, #tpu.memory_space<vmem>>, vector<8x57xf32>
    tpu.vector_store %arg14[%c40_96, %c0_97], %126 {strides = array<i32>} : memref<80x1271xf32, #tpu.memory_space<vmem>>, vector<8x57xf32>,
    %c2 = arith.constant 2 : index
    %c0_98 = arith.constant 0 : index
    %c0_99 = arith.constant 0 : index
    %128 = vector.load %arg1[%c2, %c0_98, %c0_99] : memref<6x8x80xf32, #tpu.memory_space<vmem>>, vector<1x8x80xf32>
    %129 = vector.shape_cast %128 : vector<1x8x80xf32> to vector<8x80xf32>
    %130 = vector.extract_strided_slice %129 {offsets = [0, 0], sizes = [8, 48], strides = [1, 1]} : vector<8x80xf32> to vector<8x48xf32>
    %c0_100 = arith.constant 0 : index
    %c0_101 = arith.constant 0 : index
    %131 = vector.load %arg14[%c0_100, %c0_101] : memref<80x1271xf32, #tpu.memory_space<vmem>>, vector<48x57xf32>
    %cst_102 = arith.constant dense<0.000000e+00> : vector<8x57xf32>
    %132 = tpu.matmul %130, %131, %cst_102 {dimension_numbers = #tpu.dot_dimension_numbers<[1], [0], [0], [1], [0, 0, 1, 1], [], []>} : vector<8x48xf32>, vector<48x57xf32>, vector<8x57xf32> -> vector<8x57xf32>
    %c0_103 = arith.constant 0 : index
    %c0_104 = arith.constant 0 : index
    %133 = vector.load %arg10[%c0_103, %c0_104] : memref<57x19xf32, #tpu.memory_space<vmem>>, vector<57x19xf32>
    %cst_105 = arith.constant dense<0.000000e+00> : vector<8x19xf32>
    %134 = tpu.matmul %132, %133, %cst_105 {dimension_numbers = #tpu.dot_dimension_numbers<[1], [0], [0], [1], [0, 0, 1, 1], [], []>} : vector<8x57xf32>, vector<57x19xf32>, vector<8x19xf32> -> vector<8x19xf32>
    %c2_106 = arith.constant 2 : index
    %c0_107 = arith.constant 0 : index
    %c0_108 = arith.constant 0 : index
    %135 = vector.load %arg4[%c2_106, %c0_107, %c0_108] : memref<6x8x1xf32, #tpu.memory_space<vmem>>, vector<1x8x1xf32>
    %136 = vector.shape_cast %135 : vector<1x8x1xf32> to vector<8x1xf32>
    %137 = vector.broadcast %136 : vector<8x1xf32> to vector<8x19xf32>
    %138 = arith.addf %134, %137 : vector<8x19xf32>
    %cst_109 = arith.constant dense<0.000000e+00> : vector<8xf32>
    %139 = vector.multi_reduction <add>, %138, %cst_109 [1] : vector<8x19xf32> to vector<8xf32>
    %140 = vector.shape_cast %139 : vector<8xf32> to vector<8x1xf32>
    %c0_110 = arith.constant 0 : index
    %c0_111 = arith.constant 0 : index
    %141 = vector.load %arg5[%c0_110, %c0_111] : memref<8x8xf32, #tpu.memory_space<vmem>>, vector<8x8xf32>
    %cst_112 = arith.constant dense<0.000000e+00> : vector<8x1xf32>
    %142 = tpu.matmul %141, %140, %cst_112 {dimension_numbers = #tpu.dot_dimension_numbers<[1], [0], [0], [1], [0, 0, 1, 1], [], []>} : vector<8x8xf32>, vector<8x1xf32>, vector<8x1xf32> -> vector<8x1xf32>
    %cst_113 = arith.constant 0.0263157897 : f32
    %143 = vector.broadcast %cst_113 : f32 to vector<8x1xf32>
    %144 = arith.mulf %142, %143 : vector<8x1xf32>
    %145 = vector.broadcast %144 : vector<8x1xf32> to vector<8x19xf32>
    %146 = arith.subf %138, %145 : vector<8x19xf32>
    %147 = arith.mulf %146, %146 : vector<8x19xf32>
    %cst_114 = arith.constant dense<0.000000e+00> : vector<8xf32>
    %148 = vector.multi_reduction <add>, %147, %cst_114 [1] : vector<8x19xf32> to vector<8xf32>
    %149 = vector.shape_cast %148 : vector<8xf32> to vector<8x1xf32>
    %c0_115 = arith.constant 0 : index
    %c0_116 = arith.constant 0 : index
    %150 = vector.load %arg5[%c0_115, %c0_116] : memref<8x8xf32, #tpu.memory_space<vmem>>, vector<8x8xf32>
    %cst_117 = arith.constant dense<0.000000e+00> : vector<8x1xf32>
    %151 = tpu.matmul %150, %149, %cst_117 {dimension_numbers = #tpu.dot_dimension_numbers<[1], [0], [0], [1], [0, 0, 1, 1], [], []>} : vector<8x8xf32>, vector<8x1xf32>, vector<8x1xf32> -> vector<8x1xf32>
    %cst_118 = arith.constant 0.0263157897 : f32
    %152 = vector.broadcast %cst_118 : f32 to vector<8x1xf32>
    %153 = arith.mulf %151, %152 : vector<8x1xf32>
    %c2_119 = arith.constant 2 : index
    %c0_120 = arith.constant 0 : index
    %c0_121 = arith.constant 0 : index
    %154 = vector.load %arg2[%c2_119, %c0_120, %c0_121] : memref<6x8x1xf32, #tpu.memory_space<vmem>>, vector<1x8x1xf32>
    %155 = vector.shape_cast %154 : vector<1x8x1xf32> to vector<8x1xf32>
    %cst_122 = arith.constant 9.99999974E-6 : f32
    %156 = vector.broadcast %cst_122 : f32 to vector<8x1xf32>
    %157 = arith.addf %153, %156 : vector<8x1xf32>
    %158 = math.rsqrt %157 : vector<8x1xf32>
    %159 = arith.mulf %155, %158 : vector<8x1xf32>
    %160 = vector.broadcast %159 : vector<8x1xf32> to vector<8x19xf32>
    %161 = arith.mulf %146, %160 : vector<8x19xf32>
    %c2_123 = arith.constant 2 : index
    %c0_124 = arith.constant 0 : index
    %c0_125 = arith.constant 0 : index
    %162 = vector.load %arg3[%c2_123, %c0_124, %c0_125] : memref<6x8x1xf32, #tpu.memory_space<vmem>>, vector<1x8x1xf32>
    %163 = vector.shape_cast %162 : vector<1x8x1xf32> to vector<8x1xf32>
    %164 = vector.broadcast %163 : vector<8x1xf32> to vector<8x19xf32>
    %165 = arith.addf %161, %164 : vector<8x19xf32>
    %cst_126 = arith.constant 0.000000e+00 : f32
    %166 = vector.broadcast %cst_126 : f32 to vector<8x19xf32>
    %167 = arith.maximumf %165, %166 : vector<8x19xf32>
    %168 = vector.extract_strided_slice %167 {offsets = [0, 0], sizes = [8, 15], strides = [1, 1]} : vector<8x19xf32> to vector<8x15xf32>
    %c0_127 = arith.constant 0 : index
    %c0_128 = arith.constant 0 : index
    %169 = vector.load %arg14[%c0_127, %c0_128] : memref<80x1271xf32, #tpu.memory_space<vmem>>, vector<8x15xf32>
    tpu.vector_store %arg14[%c0_127, %c0_128], %168 {strides = array<i32>} : memref<80x1271xf32, #tpu.memory_space<vmem>>, vector<8x15xf32>,
    %170 = vector.extract_strided_slice %167 {offsets = [0, 1], sizes = [8, 15], strides = [1, 1]} : vector<8x19xf32> to vector<8x15xf32>
    %c8_129 = arith.constant 8 : index
    %c0_130 = arith.constant 0 : index
    %171 = vector.load %arg14[%c8_129, %c0_130] : memref<80x1271xf32, #tpu.memory_space<vmem>>, vector<8x15xf32>
    tpu.vector_store %arg14[%c8_129, %c0_130], %170 {strides = array<i32>} : memref<80x1271xf32, #tpu.memory_space<vmem>>, vector<8x15xf32>,
    %172 = vector.extract_strided_slice %167 {offsets = [0, 2], sizes = [8, 15], strides = [1, 1]} : vector<8x19xf32> to vector<8x15xf32>
    %c16_131 = arith.constant 16 : index
    %c0_132 = arith.constant 0 : index
    %173 = vector.load %arg14[%c16_131, %c0_132] : memref<80x1271xf32, #tpu.memory_space<vmem>>, vector<8x15xf32>
    tpu.vector_store %arg14[%c16_131, %c0_132], %172 {strides = array<i32>} : memref<80x1271xf32, #tpu.memory_space<vmem>>, vector<8x15xf32>,
    %174 = vector.extract_strided_slice %167 {offsets = [0, 3], sizes = [8, 15], strides = [1, 1]} : vector<8x19xf32> to vector<8x15xf32>
    %c24_133 = arith.constant 24 : index
    %c0_134 = arith.constant 0 : index
    %175 = vector.load %arg14[%c24_133, %c0_134] : memref<80x1271xf32, #tpu.memory_space<vmem>>, vector<8x15xf32>
    tpu.vector_store %arg14[%c24_133, %c0_134], %174 {strides = array<i32>} : memref<80x1271xf32, #tpu.memory_space<vmem>>, vector<8x15xf32>,
    %176 = vector.extract_strided_slice %167 {offsets = [0, 4], sizes = [8, 15], strides = [1, 1]} : vector<8x19xf32> to vector<8x15xf32>
    %c32_135 = arith.constant 32 : index
    %c0_136 = arith.constant 0 : index
    %177 = vector.load %arg14[%c32_135, %c0_136] : memref<80x1271xf32, #tpu.memory_space<vmem>>, vector<8x15xf32>
    tpu.vector_store %arg14[%c32_135, %c0_136], %176 {strides = array<i32>} : memref<80x1271xf32, #tpu.memory_space<vmem>>, vector<8x15xf32>,
    %c3 = arith.constant 3 : index
    %c0_137 = arith.constant 0 : index
    %c0_138 = arith.constant 0 : index
    %178 = vector.load %arg1[%c3, %c0_137, %c0_138] : memref<6x8x80xf32, #tpu.memory_space<vmem>>, vector<1x8x80xf32>
    %179 = vector.shape_cast %178 : vector<1x8x80xf32> to vector<8x80xf32>
    %180 = vector.extract_strided_slice %179 {offsets = [0, 0], sizes = [8, 40], strides = [1, 1]} : vector<8x80xf32> to vector<8x40xf32>
    %c0_139 = arith.constant 0 : index
    %c0_140 = arith.constant 0 : index
    %181 = vector.load %arg14[%c0_139, %c0_140] : memref<80x1271xf32, #tpu.memory_space<vmem>>, vector<40x15xf32>
    %cst_141 = arith.constant dense<0.000000e+00> : vector<8x15xf32>
    %182 = tpu.matmul %180, %181, %cst_141 {dimension_numbers = #tpu.dot_dimension_numbers<[1], [0], [0], [1], [0, 0, 1, 1], [], []>} : vector<8x40xf32>, vector<40x15xf32>, vector<8x15xf32> -> vector<8x15xf32>
    %c0_142 = arith.constant 0 : index
    %c0_143 = arith.constant 0 : index
    %183 = vector.load %arg11[%c0_142, %c0_143] : memref<15x8xf32, #tpu.memory_space<vmem>>, vector<15x8xf32>
    %cst_144 = arith.constant dense<0.000000e+00> : vector<8x8xf32>
    %184 = tpu.matmul %182, %183, %cst_144 {dimension_numbers = #tpu.dot_dimension_numbers<[1], [0], [0], [1], [0, 0, 1, 1], [], []>} : vector<8x15xf32>, vector<15x8xf32>, vector<8x8xf32> -> vector<8x8xf32>
    %c3_145 = arith.constant 3 : index
    %c0_146 = arith.constant 0 : index
    %c0_147 = arith.constant 0 : index
    %185 = vector.load %arg4[%c3_145, %c0_146, %c0_147] : memref<6x8x1xf32, #tpu.memory_space<vmem>>, vector<1x8x1xf32>
    %186 = vector.shape_cast %185 : vector<1x8x1xf32> to vector<8x1xf32>
    %187 = vector.broadcast %186 : vector<8x1xf32> to vector<8x8xf32>
    %188 = arith.addf %184, %187 : vector<8x8xf32>
    %cst_148 = arith.constant dense<0.000000e+00> : vector<8xf32>
    %189 = vector.multi_reduction <add>, %188, %cst_148 [1] : vector<8x8xf32> to vector<8xf32>
    %190 = vector.shape_cast %189 : vector<8xf32> to vector<8x1xf32>
    %c0_149 = arith.constant 0 : index
    %c0_150 = arith.constant 0 : index
    %191 = vector.load %arg5[%c0_149, %c0_150] : memref<8x8xf32, #tpu.memory_space<vmem>>, vector<8x8xf32>
    %cst_151 = arith.constant dense<0.000000e+00> : vector<8x1xf32>
    %192 = tpu.matmul %191, %190, %cst_151 {dimension_numbers = #tpu.dot_dimension_numbers<[1], [0], [0], [1], [0, 0, 1, 1], [], []>} : vector<8x8xf32>, vector<8x1xf32>, vector<8x1xf32> -> vector<8x1xf32>
    %cst_152 = arith.constant 6.250000e-02 : f32
    %193 = vector.broadcast %cst_152 : f32 to vector<8x1xf32>
    %194 = arith.mulf %192, %193 : vector<8x1xf32>
    %195 = vector.broadcast %194 : vector<8x1xf32> to vector<8x8xf32>
    %196 = arith.subf %188, %195 : vector<8x8xf32>
    %197 = arith.mulf %196, %196 : vector<8x8xf32>
    %cst_153 = arith.constant dense<0.000000e+00> : vector<8xf32>
    %198 = vector.multi_reduction <add>, %197, %cst_153 [1] : vector<8x8xf32> to vector<8xf32>
    %199 = vector.shape_cast %198 : vector<8xf32> to vector<8x1xf32>
    %c0_154 = arith.constant 0 : index
    %c0_155 = arith.constant 0 : index
    %200 = vector.load %arg5[%c0_154, %c0_155] : memref<8x8xf32, #tpu.memory_space<vmem>>, vector<8x8xf32>
    %cst_156 = arith.constant dense<0.000000e+00> : vector<8x1xf32>
    %201 = tpu.matmul %200, %199, %cst_156 {dimension_numbers = #tpu.dot_dimension_numbers<[1], [0], [0], [1], [0, 0, 1, 1], [], []>} : vector<8x8xf32>, vector<8x1xf32>, vector<8x1xf32> -> vector<8x1xf32>
    %cst_157 = arith.constant 6.250000e-02 : f32
    %202 = vector.broadcast %cst_157 : f32 to vector<8x1xf32>
    %203 = arith.mulf %201, %202 : vector<8x1xf32>
    %c3_158 = arith.constant 3 : index
    %c0_159 = arith.constant 0 : index
    %c0_160 = arith.constant 0 : index
    %204 = vector.load %arg2[%c3_158, %c0_159, %c0_160] : memref<6x8x1xf32, #tpu.memory_space<vmem>>, vector<1x8x1xf32>
    %205 = vector.shape_cast %204 : vector<1x8x1xf32> to vector<8x1xf32>
    %cst_161 = arith.constant 9.99999974E-6 : f32
    %206 = vector.broadcast %cst_161 : f32 to vector<8x1xf32>
    %207 = arith.addf %203, %206 : vector<8x1xf32>
    %208 = math.rsqrt %207 : vector<8x1xf32>
    %209 = arith.mulf %205, %208 : vector<8x1xf32>
    %210 = vector.broadcast %209 : vector<8x1xf32> to vector<8x8xf32>
    %211 = arith.mulf %196, %210 : vector<8x8xf32>
    %c3_162 = arith.constant 3 : index
    %c0_163 = arith.constant 0 : index
    %c0_164 = arith.constant 0 : index
    %212 = vector.load %arg3[%c3_162, %c0_163, %c0_164] : memref<6x8x1xf32, #tpu.memory_space<vmem>>, vector<1x8x1xf32>
    %213 = vector.shape_cast %212 : vector<1x8x1xf32> to vector<8x1xf32>
    %214 = vector.broadcast %213 : vector<8x1xf32> to vector<8x8xf32>
    %215 = arith.addf %211, %214 : vector<8x8xf32>
    %cst_165 = arith.constant 0.000000e+00 : f32
    %216 = vector.broadcast %cst_165 : f32 to vector<8x8xf32>
    %217 = arith.maximumf %215, %216 : vector<8x8xf32>
    %218 = vector.extract_strided_slice %217 {offsets = [0, 0], sizes = [8, 5], strides = [1, 1]} : vector<8x8xf32> to vector<8x5xf32>
    %c0_166 = arith.constant 0 : index
    %c0_167 = arith.constant 0 : index
    %219 = vector.load %arg14[%c0_166, %c0_167] : memref<80x1271xf32, #tpu.memory_space<vmem>>, vector<8x5xf32>
    tpu.vector_store %arg14[%c0_166, %c0_167], %218 {strides = array<i32>} : memref<80x1271xf32, #tpu.memory_space<vmem>>, vector<8x5xf32>,
    %220 = vector.extract_strided_slice %217 {offsets = [0, 1], sizes = [8, 5], strides = [1, 1]} : vector<8x8xf32> to vector<8x5xf32>
    %c8_168 = arith.constant 8 : index
    %c0_169 = arith.constant 0 : index
    %221 = vector.load %arg14[%c8_168, %c0_169] : memref<80x1271xf32, #tpu.memory_space<vmem>>, vector<8x5xf32>
    tpu.vector_store %arg14[%c8_168, %c0_169], %220 {strides = array<i32>} : memref<80x1271xf32, #tpu.memory_space<vmem>>, vector<8x5xf32>,
    %222 = vector.extract_strided_slice %217 {offsets = [0, 2], sizes = [8, 5], strides = [1, 1]} : vector<8x8xf32> to vector<8x5xf32>
    %c16_170 = arith.constant 16 : index
    %c0_171 = arith.constant 0 : index
    %223 = vector.load %arg14[%c16_170, %c0_171] : memref<80x1271xf32, #tpu.memory_space<vmem>>, vector<8x5xf32>
    tpu.vector_store %arg14[%c16_170, %c0_171], %222 {strides = array<i32>} : memref<80x1271xf32, #tpu.memory_space<vmem>>, vector<8x5xf32>,
    %224 = vector.extract_strided_slice %217 {offsets = [0, 3], sizes = [8, 5], strides = [1, 1]} : vector<8x8xf32> to vector<8x5xf32>
    %c24_172 = arith.constant 24 : index
    %c0_173 = arith.constant 0 : index
    %225 = vector.load %arg14[%c24_172, %c0_173] : memref<80x1271xf32, #tpu.memory_space<vmem>>, vector<8x5xf32>
    tpu.vector_store %arg14[%c24_172, %c0_173], %224 {strides = array<i32>} : memref<80x1271xf32, #tpu.memory_space<vmem>>, vector<8x5xf32>,
    %c4 = arith.constant 4 : index
    %c0_174 = arith.constant 0 : index
    %c0_175 = arith.constant 0 : index
    %226 = vector.load %arg1[%c4, %c0_174, %c0_175] : memref<6x8x80xf32, #tpu.memory_space<vmem>>, vector<1x8x80xf32>
    %227 = vector.shape_cast %226 : vector<1x8x80xf32> to vector<8x80xf32>
    %228 = vector.extract_strided_slice %227 {offsets = [0, 0], sizes = [8, 32], strides = [1, 1]} : vector<8x80xf32> to vector<8x32xf32>
    %c0_176 = arith.constant 0 : index
    %c0_177 = arith.constant 0 : index
    %229 = vector.load %arg14[%c0_176, %c0_177] : memref<80x1271xf32, #tpu.memory_space<vmem>>, vector<32x5xf32>
    %cst_178 = arith.constant dense<0.000000e+00> : vector<8x5xf32>
    %230 = tpu.matmul %228, %229, %cst_178 {dimension_numbers = #tpu.dot_dimension_numbers<[1], [0], [0], [1], [0, 0, 1, 1], [], []>} : vector<8x32xf32>, vector<32x5xf32>, vector<8x5xf32> -> vector<8x5xf32>
    %c0_179 = arith.constant 0 : index
    %c0_180 = arith.constant 0 : index
    %231 = vector.load %arg12[%c0_179, %c0_180] : memref<5x3xf32, #tpu.memory_space<vmem>>, vector<5x3xf32>
    %cst_181 = arith.constant dense<0.000000e+00> : vector<8x3xf32>
    %232 = tpu.matmul %230, %231, %cst_181 {dimension_numbers = #tpu.dot_dimension_numbers<[1], [0], [0], [1], [0, 0, 1, 1], [], []>} : vector<8x5xf32>, vector<5x3xf32>, vector<8x3xf32> -> vector<8x3xf32>
    %c4_182 = arith.constant 4 : index
    %c0_183 = arith.constant 0 : index
    %c0_184 = arith.constant 0 : index
    %233 = vector.load %arg4[%c4_182, %c0_183, %c0_184] : memref<6x8x1xf32, #tpu.memory_space<vmem>>, vector<1x8x1xf32>
    %234 = vector.shape_cast %233 : vector<1x8x1xf32> to vector<8x1xf32>
    %235 = vector.broadcast %234 : vector<8x1xf32> to vector<8x3xf32>
    %236 = arith.addf %232, %235 : vector<8x3xf32>
    %cst_185 = arith.constant dense<0.000000e+00> : vector<8xf32>
    %237 = vector.multi_reduction <add>, %236, %cst_185 [1] : vector<8x3xf32> to vector<8xf32>
    %238 = vector.shape_cast %237 : vector<8xf32> to vector<8x1xf32>
    %c0_186 = arith.constant 0 : index
    %c0_187 = arith.constant 0 : index
    %239 = vector.load %arg5[%c0_186, %c0_187] : memref<8x8xf32, #tpu.memory_space<vmem>>, vector<8x8xf32>
    %cst_188 = arith.constant dense<0.000000e+00> : vector<8x1xf32>
    %240 = tpu.matmul %239, %238, %cst_188 {dimension_numbers = #tpu.dot_dimension_numbers<[1], [0], [0], [1], [0, 0, 1, 1], [], []>} : vector<8x8xf32>, vector<8x1xf32>, vector<8x1xf32> -> vector<8x1xf32>
    %cst_189 = arith.constant 0.166666672 : f32
    %241 = vector.broadcast %cst_189 : f32 to vector<8x1xf32>
    %242 = arith.mulf %240, %241 : vector<8x1xf32>
    %243 = vector.broadcast %242 : vector<8x1xf32> to vector<8x3xf32>
    %244 = arith.subf %236, %243 : vector<8x3xf32>
    %245 = arith.mulf %244, %244 : vector<8x3xf32>
    %cst_190 = arith.constant dense<0.000000e+00> : vector<8xf32>
    %246 = vector.multi_reduction <add>, %245, %cst_190 [1] : vector<8x3xf32> to vector<8xf32>
    %247 = vector.shape_cast %246 : vector<8xf32> to vector<8x1xf32>
    %c0_191 = arith.constant 0 : index
    %c0_192 = arith.constant 0 : index
    %248 = vector.load %arg5[%c0_191, %c0_192] : memref<8x8xf32, #tpu.memory_space<vmem>>, vector<8x8xf32>
    %cst_193 = arith.constant dense<0.000000e+00> : vector<8x1xf32>
    %249 = tpu.matmul %248, %247, %cst_193 {dimension_numbers = #tpu.dot_dimension_numbers<[1], [0], [0], [1], [0, 0, 1, 1], [], []>} : vector<8x8xf32>, vector<8x1xf32>, vector<8x1xf32> -> vector<8x1xf32>
    %cst_194 = arith.constant 0.166666672 : f32
    %250 = vector.broadcast %cst_194 : f32 to vector<8x1xf32>
    %251 = arith.mulf %249, %250 : vector<8x1xf32>
    %c4_195 = arith.constant 4 : index
    %c0_196 = arith.constant 0 : index
    %c0_197 = arith.constant 0 : index
    %252 = vector.load %arg2[%c4_195, %c0_196, %c0_197] : memref<6x8x1xf32, #tpu.memory_space<vmem>>, vector<1x8x1xf32>
    %253 = vector.shape_cast %252 : vector<1x8x1xf32> to vector<8x1xf32>
    %cst_198 = arith.constant 9.99999974E-6 : f32
    %254 = vector.broadcast %cst_198 : f32 to vector<8x1xf32>
    %255 = arith.addf %251, %254 : vector<8x1xf32>
    %256 = math.rsqrt %255 : vector<8x1xf32>
    %257 = arith.mulf %253, %256 : vector<8x1xf32>
    %258 = vector.broadcast %257 : vector<8x1xf32> to vector<8x3xf32>
    %259 = arith.mulf %244, %258 : vector<8x3xf32>
    %c4_199 = arith.constant 4 : index
    %c0_200 = arith.constant 0 : index
    %c0_201 = arith.constant 0 : index
    %260 = vector.load %arg3[%c4_199, %c0_200, %c0_201] : memref<6x8x1xf32, #tpu.memory_space<vmem>>, vector<1x8x1xf32>
    %261 = vector.shape_cast %260 : vector<1x8x1xf32> to vector<8x1xf32>
    %262 = vector.broadcast %261 : vector<8x1xf32> to vector<8x3xf32>
    %263 = arith.addf %259, %262 : vector<8x3xf32>
    %cst_202 = arith.constant 0.000000e+00 : f32
    %264 = vector.broadcast %cst_202 : f32 to vector<8x3xf32>
    %265 = arith.maximumf %263, %264 : vector<8x3xf32>
    %266 = vector.extract_strided_slice %265 {offsets = [0, 0], sizes = [8, 1], strides = [1, 1]} : vector<8x3xf32> to vector<8x1xf32>
    %c0_203 = arith.constant 0 : index
    %c0_204 = arith.constant 0 : index
    %267 = vector.load %arg14[%c0_203, %c0_204] : memref<80x1271xf32, #tpu.memory_space<vmem>>, vector<8x1xf32>
    tpu.vector_store %arg14[%c0_203, %c0_204], %266 {strides = array<i32>} : memref<80x1271xf32, #tpu.memory_space<vmem>>, vector<8x1xf32>,
    %268 = vector.extract_strided_slice %265 {offsets = [0, 1], sizes = [8, 1], strides = [1, 1]} : vector<8x3xf32> to vector<8x1xf32>
    %c8_205 = arith.constant 8 : index
    %c0_206 = arith.constant 0 : index
    %269 = vector.load %arg14[%c8_205, %c0_206] : memref<80x1271xf32, #tpu.memory_space<vmem>>, vector<8x1xf32>
    tpu.vector_store %arg14[%c8_205, %c0_206], %268 {strides = array<i32>} : memref<80x1271xf32, #tpu.memory_space<vmem>>, vector<8x1xf32>,
    %270 = vector.extract_strided_slice %265 {offsets = [0, 2], sizes = [8, 1], strides = [1, 1]} : vector<8x3xf32> to vector<8x1xf32>
    %c16_207 = arith.constant 16 : index
    %c0_208 = arith.constant 0 : index
    %271 = vector.load %arg14[%c16_207, %c0_208] : memref<80x1271xf32, #tpu.memory_space<vmem>>, vector<8x1xf32>
    tpu.vector_store %arg14[%c16_207, %c0_208], %270 {strides = array<i32>} : memref<80x1271xf32, #tpu.memory_space<vmem>>, vector<8x1xf32>,
    %c5 = arith.constant 5 : index
    %c0_209 = arith.constant 0 : index
    %c0_210 = arith.constant 0 : index
    %272 = vector.load %arg1[%c5, %c0_209, %c0_210] : memref<6x8x80xf32, #tpu.memory_space<vmem>>, vector<1x8x80xf32>
    %273 = vector.shape_cast %272 : vector<1x8x80xf32> to vector<8x80xf32>
    %274 = vector.extract_strided_slice %273 {offsets = [0, 0], sizes = [8, 24], strides = [1, 1]} : vector<8x80xf32> to vector<8x24xf32>
    %c0_211 = arith.constant 0 : index
    %c0_212 = arith.constant 0 : index
    %275 = vector.load %arg14[%c0_211, %c0_212] : memref<80x1271xf32, #tpu.memory_space<vmem>>, vector<24x1xf32>
    %cst_213 = arith.constant dense<0.000000e+00> : vector<8x1xf32>
    %276 = tpu.matmul %274, %275, %cst_213 {dimension_numbers = #tpu.dot_dimension_numbers<[1], [0], [0], [1], [0, 0, 1, 1], [], []>} : vector<8x24xf32>, vector<24x1xf32>, vector<8x1xf32> -> vector<8x1xf32>
    %c5_214 = arith.constant 5 : index
    %c0_215 = arith.constant 0 : index
    %c0_216 = arith.constant 0 : index
    %277 = vector.load %arg4[%c5_214, %c0_215, %c0_216] : memref<6x8x1xf32, #tpu.memory_space<vmem>>, vector<1x8x1xf32>
    %278 = vector.shape_cast %277 : vector<1x8x1xf32> to vector<8x1xf32>
    %279 = arith.addf %276, %278 : vector<8x1xf32>
    %cst_217 = arith.constant dense<0.000000e+00> : vector<8xf32>
    %280 = vector.multi_reduction <add>, %279, %cst_217 [1] : vector<8x1xf32> to vector<8xf32>
    %281 = vector.shape_cast %280 : vector<8xf32> to vector<8x1xf32>
    %c0_218 = arith.constant 0 : index
    %c0_219 = arith.constant 0 : index
    %282 = vector.load %arg5[%c0_218, %c0_219] : memref<8x8xf32, #tpu.memory_space<vmem>>, vector<8x8xf32>
    %cst_220 = arith.constant dense<0.000000e+00> : vector<8x1xf32>
    %283 = tpu.matmul %282, %281, %cst_220 {dimension_numbers = #tpu.dot_dimension_numbers<[1], [0], [0], [1], [0, 0, 1, 1], [], []>} : vector<8x8xf32>, vector<8x1xf32>, vector<8x1xf32> -> vector<8x1xf32>
    %cst_221 = arith.constant 5.000000e-01 : f32
    %284 = vector.broadcast %cst_221 : f32 to vector<8x1xf32>
    %285 = arith.mulf %283, %284 : vector<8x1xf32>
    %286 = arith.subf %279, %285 : vector<8x1xf32>
    %287 = arith.mulf %286, %286 : vector<8x1xf32>
    %cst_222 = arith.constant dense<0.000000e+00> : vector<8xf32>
    %288 = vector.multi_reduction <add>, %287, %cst_222 [1] : vector<8x1xf32> to vector<8xf32>
    %289 = vector.shape_cast %288 : vector<8xf32> to vector<8x1xf32>
    %c0_223 = arith.constant 0 : index
    %c0_224 = arith.constant 0 : index
    %290 = vector.load %arg5[%c0_223, %c0_224] : memref<8x8xf32, #tpu.memory_space<vmem>>, vector<8x8xf32>
    %cst_225 = arith.constant dense<0.000000e+00> : vector<8x1xf32>
    %291 = tpu.matmul %290, %289, %cst_225 {dimension_numbers = #tpu.dot_dimension_numbers<[1], [0], [0], [1], [0, 0, 1, 1], [], []>} : vector<8x8xf32>, vector<8x1xf32>, vector<8x1xf32> -> vector<8x1xf32>
    %cst_226 = arith.constant 5.000000e-01 : f32
    %292 = vector.broadcast %cst_226 : f32 to vector<8x1xf32>
    %293 = arith.mulf %291, %292 : vector<8x1xf32>
    %c5_227 = arith.constant 5 : index
    %c0_228 = arith.constant 0 : index
    %c0_229 = arith.constant 0 : index
    %294 = vector.load %arg2[%c5_227, %c0_228, %c0_229] : memref<6x8x1xf32, #tpu.memory_space<vmem>>, vector<1x8x1xf32>
    %295 = vector.shape_cast %294 : vector<1x8x1xf32> to vector<8x1xf32>
    %cst_230 = arith.constant 9.99999974E-6 : f32
    %296 = vector.broadcast %cst_230 : f32 to vector<8x1xf32>
    %297 = arith.addf %293, %296 : vector<8x1xf32>
    %298 = math.rsqrt %297 : vector<8x1xf32>
    %299 = arith.mulf %295, %298 : vector<8x1xf32>
    %300 = arith.mulf %286, %299 : vector<8x1xf32>
    %c5_231 = arith.constant 5 : index
    %c0_232 = arith.constant 0 : index
    %c0_233 = arith.constant 0 : index
    %301 = vector.load %arg3[%c5_231, %c0_232, %c0_233] : memref<6x8x1xf32, #tpu.memory_space<vmem>>, vector<1x8x1xf32>
    %302 = vector.shape_cast %301 : vector<1x8x1xf32> to vector<8x1xf32>
    %303 = arith.addf %300, %302 : vector<8x1xf32>
    %cst_234 = arith.constant 0.000000e+00 : f32
    %304 = vector.broadcast %cst_234 : f32 to vector<8x1xf32>
    %305 = arith.maximumf %303, %304 : vector<8x1xf32>
    %cst_235 = arith.constant dense<0.000000e+00> : vector<8xf32>
    %306 = vector.multi_reduction <add>, %305, %cst_235 [1] : vector<8x1xf32> to vector<8xf32>
    %307 = vector.shape_cast %306 : vector<8xf32> to vector<8x1xf32>
    %cst_236 = arith.constant 1.000000e+00 : f32
    %308 = vector.broadcast %cst_236 : f32 to vector<8x1xf32>
    %309 = arith.mulf %307, %308 : vector<8x1xf32>
    %c0_237 = arith.constant 0 : index
    %c0_238 = arith.constant 0 : index
    %310 = vector.load %arg6[%c0_237, %c0_238] : memref<10x8xf32, #tpu.memory_space<vmem>>, vector<10x8xf32>
    %cst_239 = arith.constant dense<0.000000e+00> : vector<10x1xf32>
    %311 = tpu.matmul %310, %309, %cst_239 {dimension_numbers = #tpu.dot_dimension_numbers<[1], [0], [0], [1], [0, 0, 1, 1], [], []>} : vector<10x8xf32>, vector<8x1xf32>, vector<10x1xf32> -> vector<10x1xf32>
    %c0_240 = arith.constant 0 : index
    %c0_241 = arith.constant 0 : index
    %312 = vector.load %arg7[%c0_240, %c0_241] : memref<10x1xf32, #tpu.memory_space<vmem>>, vector<10x1xf32>
    %313 = arith.addf %311, %312 : vector<10x1xf32>
    %314 = arith.negf %313 : vector<10x1xf32>
    %315 = math.exp %314 : vector<10x1xf32>
    %cst_242 = arith.constant 1.000000e+00 : f32
    %316 = vector.broadcast %cst_242 : f32 to vector<10x1xf32>
    %317 = arith.addf %316, %315 : vector<10x1xf32>
    %318 = arith.divf %316, %317 : vector<10x1xf32>
    %c0_243 = arith.constant 0 : index
    %c0_244 = arith.constant 0 : index
    %319 = vector.load %arg13[%c0_243, %c0_244] : memref<10x1xf32, #tpu.memory_space<vmem>>, vector<10x1xf32>
    tpu.vector_store %arg13[%c0_243, %c0_244], %318 {strides = array<i32>} : memref<10x1xf32, #tpu.memory_space<vmem>>, vector<10x1xf32>,
    return
  }
}

</mosaic_0001>

<bundles_post_ra>
// kernel: baseline_net_forward.1
= control target key start
LH: loop header
LB: loop body
LE: loop exit
PB: predicated region body
PF: predicated region fallthrough
CT: control target
= control target key end

     0   :  { %18 = vsyncpa [#allocation4], 0  ;;  %s5648_s0 = inlined_call_operand.vmem [shape: f32[8,1280], index: 0, kind: input, shape index: {}]   ;;  %s5649_s1 = inlined_call_operand.hbm [shape: f32[6,8,80], index: 1, kind: input, shape index: {}]   ;;  %s5650_s2 = inlined_call_operand.vmem [shape: f32[6,8,1], index: 2, kind: input, shape index: {}]   ;;  %s5651_s3 = inlined_call_operand.vmem [shape: f32[6,8,1], index: 3, kind: input, shape index: {}]   ;;  %s5652_s4 = inlined_call_operand.vmem [shape: f32[6,8,1], index: 4, kind: input, shape index: {}]   ;;  %s5653_s5 = inlined_call_operand.hbm [shape: f32[8,8], index: 5, kind: input, shape index: {}]   ;;  %s5654_s6 = inlined_call_operand.vmem [shape: f32[10,8], index: 6, kind: input, shape index: {}]   ;;  %s5655_s7 = inlined_call_operand.vmem [shape: f32[10,1], index: 7, kind: input, shape index: {}]   ;;  %s5656_s8 = inlined_call_operand.hbm [shape: f32[1271,255], index: 8, kind: input, shape index: {}]   ;;  %s5657_s9 = inlined_call_operand.vmem [shape: f32[248,62], index: 9, kind: input, shape index: {}]   ;;  %s5658_s10 = inlined_call_operand.vmem [shape: f32[57,19], index: 10, kind: input, shape index: {}]   ;;  %s5659_s11 = inlined_call_operand.vmem [shape: f32[15,8], index: 11, kind: input, shape index: {}]   ;;  %s5660_s12 = inlined_call_operand.vmem [shape: f32[5,3], index: 12, kind: input, shape index: {}]   ;;  %s5661_s13 = inlined_call_operand.vmem [shape: f32[10,1], index: 13, kind: output, shape index: {}]  }
   0x1   :  { %19 = vsyncpa [#allocation6], 0  ;;  %s4707_s25 = smov [#allocation5]   ;;  %s4708_s27 = smov [#allocation3]  }
   0x2   :  { %s46_s26 = sshll.u32 %s4707_s25, 4  ;;  %s27_s28 = sshll.u32 %s4708_s27, 4  ;;  %s47_s26 = int_to_ptr.vmem [resolvable:$true] %s46_s26  ;;  %s4798_s28 = int_to_ptr.vmem [resolvable:$true] %s27_s28 }
   0x3   :  { %s4637_s14 = scalar_lea.hbm %s5653_s5, 128 }
   0x4   :  { %p4638_p0 = scmp.ne.s32.totalorder %s5653_s5, %s4637_s14  ;;  %p4641_p1 = scmp.lt.u32.totalorder %s4637_s14, %s5653_s5 }
   0x6   :  { %p4643_p2 = pnand %p4641_p1, %p4638_p0 }
   0x8   :  { %4646 = shalt.err (!%p4643_p2)
}
   0x9   :  { %s4647_s19 = scalar_lea.vmem %s47_s26, 128  ;;  %p4652_p4 = scmp.lt.s32.totalorder %s47_s26, %s47_s26 }
   0xa   :  { %p4648_p3 = scmp.ne.s32.totalorder %s47_s26, %s4647_s19  ;;  %p4653_p5 = scmp.lt.s32.totalorder %s4647_s19, %s4647_s19 }
   0xc   :  { %p4654_p6 = por %p4653_p5, %p4652_p4 }
   0xe   :  { %p4655_p7 = pnand %p4654_p6, %p4648_p3 }
  0x10   :  { %4658 = shalt.err (!%p4655_p7)
}
  0x11   :  { %49 = dma.hbm_to_vmem [thread:$0]  %s5653_s5, 128, %s47_s26, [#allocation6]  }
  0x12   :  { %s4659_s24 = scalar_lea.hbm %s5649_s1, 768 }
  0x13   :  { %p4660_p8 = scmp.ne.s32.totalorder %s5649_s1, %s4659_s24  ;;  %p4663_p9 = scmp.lt.u32.totalorder %s4659_s24, %s5649_s1 }
  0x15   :  { %p4665_p10 = pnand %p4663_p9, %p4660_p8 }
  0x17   :  { %4668 = shalt.err (!%p4665_p10)
}
  0x18   :  { %s4669_s14 = scalar_lea.vmem %s4798_s28, 768  ;;  %p4674_p12 = scmp.lt.s32.totalorder %s4798_s28, %s4798_s28 }
  0x19   :  { %p4670_p11 = scmp.ne.s32.totalorder %s4798_s28, %s4669_s14  ;;  %p4675_p13 = scmp.lt.s32.totalorder %s4669_s14, %s4669_s14 }
  0x1b   :  { %p4676_p0 = por %p4675_p13, %p4674_p12 }
  0x1d   :  { %p4677_p1 = pnand %p4676_p0, %p4670_p11 }
  0x1f   :  { %4680 = shalt.err (!%p4677_p1)
}
  0x20   :  { %s4709_s5 = smov 128   ;;  %s4710_s26 = smov 8  }
  0x21   :  { %33 = dma.hbm_to_vmem [thread:$0]  %s5649_s1, 768, %s4798_s28, [#allocation4], %s4709_s5, %s4709_s5, %s4710_s26  }
  0x22   :  { %s4711_s17 = smov [#allocation7]   ;;  %s4681_s21 = scalar_lea.hbm %s5656_s8, 40704 }
  0x23   :  { %s59_s18 = sshll.u32 %s4711_s17, 4  ;;  %p4682_p2 = scmp.ne.s32.totalorder %s5656_s8, %s4681_s21  ;;  %s60_s18 = int_to_ptr.vmem [resolvable:$true] %s59_s18 }
  0x24   :  { %p4685_p3 = scmp.lt.u32.totalorder %s4681_s21, %s5656_s8 }
  0x26   :  { %p4687_p4 = pnand %p4685_p3, %p4682_p2 }
  0x28   :  { %4690 = shalt.err (!%p4687_p4)
}
  0x29   :  { %s4691_s27 = scalar_lea.vmem %s60_s18, 40704  ;;  %p4696_p6 = scmp.lt.s32.totalorder %s60_s18, %s60_s18 }
  0x2a   :  { %p4692_p5 = scmp.ne.s32.totalorder %s60_s18, %s4691_s27  ;;  %p4697_p7 = scmp.lt.s32.totalorder %s4691_s27, %s4691_s27 }
  0x2c   :  { %p4698_p8 = por %p4697_p7, %p4696_p6 }
  0x2e   :  { %p4699_p9 = pnand %p4698_p8, %p4692_p5 }
  0x30   :  { %4702 = shalt.err (!%p4699_p9)
}
  0x31   :  { %s4712_s1 = smov 256   ;;  %s4713_s28 = smov 16  }
  0x32   :  { %65 = dma.hbm_to_vmem [thread:$0]  %s5656_s8, 40704, %s60_s18, [#allocation6], %s4712_s1, %s4712_s1, %s4713_s28  }
  0x33   :  { %4703 = dma.done.wait [#allocation4], 768  }
  0x34   :  { %4704 = vsyncadd [#allocation4], 4294966528 }
  0x35   :  { %4705 = dma.done.wait [#allocation6], 40832  }
  0x36   :  { %4706 = vsyncadd [#allocation6], 4294926464  ;;  %v4844_v0 = vld [vmem:[%s5648_s0 + $0x8] sm:$0xff]  ;;  %v4849_v1 = vld [vmem:[%s5648_s0] sm:$0xff]  ;;  %s4714_s8 = smov 127   ;;  %s4715_s30 = smov 126  }
  0x37   :  { %v4854_v2 = vld [vmem:[%s5648_s0 + $0x10] sm:$0xff]  ;;  %116 = vrot.lane.b32.xlu0 %v4844_v0, %s4714_s8  ;;  %94 = vst [vmem:[#allocation2 + $0x8] sm:$0xff] %v4844_v0  ;;  %114 = vrot.lane.b32.xlu1 %v4849_v1, %s4714_s8  ;;  %v4864_v3 = vld [vmem:[%s5648_s0 + $0x18] sm:$0xff]  ;;  %s4716_s14 = smov 125   ;;  %s4717_s5 = smov 124   ;;  %vm102_vm0 = vcmask 973824  }
  0x38   :  { %v4869_v4 = vld [vmem:[%s5648_s0 + $0x20] sm:$0xff]  ;;  %v4874_v5 = vld [vmem:[%s5648_s0 + $0x28] sm:$0xff]  ;;  %v4879_v6 = vld [vmem:[%s5648_s0 + $0x30] sm:$0xff]  ;;  %s4718_s26 = smov 123   ;;  %s4719_s15 = smov 122   ;;  %v4723_v10 = vmov 0.0  }
  0x39   :  { %v4884_v7 = vld [vmem:[%s5648_s0 + $0x40] sm:$0xff]  ;;  %v4889_v8 = vld [vmem:[%s5648_s0 + $0x38] sm:$0xff]  ;;  %s4720_s16 = smov 121   ;;  %v4926_v9 = vld [vmem:[%s5648_s0 + $0x48] sm:$0xff]  ;;  %s4721_s19 = smov 120   ;;  %732 = vmatprep.mubr.f32.mxu0 %v4723_v10  ;;  %803 = vmatprep.mubr.f32.mxu1 %v4723_v10  ;;  %vm134_vm1 = vcmask 1039360  }
  0x3a   :  { %103 = vst.msk [vmem:[#allocation2 + $0x48] sm:$0xff] %vm102_vm0, %v4926_v9  ;;  %s4722_s0 = smov 119   ;;  %vm184_vm2 = vcmask 1031168   ;;  %vm234_vm3 = vcmask 1022976   ;;  %vm284_vm4 = vcmask 1014784   ;;  %vm334_vm5 = vcmask 1006592  }
  0x3b   :  { %118 = vrot.lane.b32.xlu0 %v4854_v2, %s4714_s8  ;;  %166 = vrot.lane.b32.xlu1 %v4844_v0, %s4715_s30  ;;  %vm384_vm6 = vcmask 998400   ;;  %vm434_vm7 = vcmask 990208   ;;  %vm484_vm8 = vcmask 982016   ;;  %vm664_vm9 = vcmask 654336  }
  0x3c   :  { %vm1350_vm10 = vcmask 1046528   ;;  %vm4725_vm11 = vmmov 0   ;;  %vm1717_vm12 = vcmask 64512   ;;  %vm1982_vm13 = vcmask 523264  }
  0x3d   :  { %vm2168_vm14 = vcmask 506880   ;;  %vm2348_vm15 = vcmask 465920  }
  0x3f   :  { %168 = vrot.lane.b32.xlu0 %v4854_v2, %s4715_s30  ;;  %216 = vrot.lane.b32.xlu1 %v4844_v0, %s4716_s14 }
  0x43   :  { %218 = vrot.lane.b32.xlu0 %v4854_v2, %s4716_s14  ;;  %164 = vrot.lane.b32.xlu1 %v4849_v1, %s4715_s30 }
  0x47   :  { %214 = vrot.lane.b32.xlu0 %v4849_v1, %s4716_s14  ;;  %266 = vrot.lane.b32.xlu1 %v4844_v0, %s4717_s5 }
  0x4b   :  { %268 = vrot.lane.b32.xlu0 %v4854_v2, %s4717_s5  ;;  %316 = vrot.lane.b32.xlu1 %v4844_v0, %s4718_s26 }
  0x4f   :  { %318 = vrot.lane.b32.xlu0 %v4854_v2, %s4718_s26  ;;  %264 = vrot.lane.b32.xlu1 %v4849_v1, %s4717_s5 }
  0x53   :  { %314 = vrot.lane.b32.xlu0 %v4849_v1, %s4718_s26  ;;  %366 = vrot.lane.b32.xlu1 %v4844_v0, %s4719_s15 }
  0x57   :  { %368 = vrot.lane.b32.xlu0 %v4854_v2, %s4719_s15  ;;  %416 = vrot.lane.b32.xlu1 %v4844_v0, %s4720_s16 }
  0x5b   :  { %418 = vrot.lane.b32.xlu0 %v4854_v2, %s4720_s16  ;;  %364 = vrot.lane.b32.xlu1 %v4849_v1, %s4719_s15 }
  0x5f   :  { %414 = vrot.lane.b32.xlu0 %v4849_v1, %s4720_s16  ;;  %466 = vrot.lane.b32.xlu1 %v4844_v0, %s4721_s19 }
  0x63   :  { %468 = vrot.lane.b32.xlu0 %v4854_v2, %s4721_s19  ;;  %516 = vrot.lane.b32.xlu1 %v4844_v0, %s4722_s0 }
  0x67   :  { %518 = vrot.lane.b32.xlu0 %v4854_v2, %s4722_s0  ;;  %464 = vrot.lane.b32.xlu1 %v4849_v1, %s4721_s19 }
  0x6b   :  { %514 = vrot.lane.b32.xlu0 %v4849_v1, %s4722_s0  ;;  %120 = vrot.lane.b32.xlu1 %v4864_v3, %s4714_s8 }
  0x6f   :  { %122 = vrot.lane.b32.xlu0 %v4869_v4, %s4714_s8  ;;  %170 = vrot.lane.b32.xlu1 %v4864_v3, %s4715_s30 }
  0x73   :  { %172 = vrot.lane.b32.xlu0 %v4869_v4, %s4715_s30  ;;  %220 = vrot.lane.b32.xlu1 %v4864_v3, %s4716_s14 }
  0x77   :  { %222 = vrot.lane.b32.xlu0 %v4869_v4, %s4716_s14  ;;  %270 = vrot.lane.b32.xlu1 %v4864_v3, %s4717_s5 }
  0x7b   :  { %272 = vrot.lane.b32.xlu0 %v4869_v4, %s4717_s5  ;;  %320 = vrot.lane.b32.xlu1 %v4864_v3, %s4718_s26 }
  0x7f   :  { %322 = vrot.lane.b32.xlu0 %v4869_v4, %s4718_s26  ;;  %370 = vrot.lane.b32.xlu1 %v4864_v3, %s4719_s15 }
  0x83   :  { %372 = vrot.lane.b32.xlu0 %v4869_v4, %s4719_s15  ;;  %420 = vrot.lane.b32.xlu1 %v4864_v3, %s4720_s16 }
  0x87   :  { %422 = vrot.lane.b32.xlu0 %v4869_v4, %s4720_s16  ;;  %470 = vrot.lane.b32.xlu1 %v4864_v3, %s4721_s19 }
  0x8b   :  { %472 = vrot.lane.b32.xlu0 %v4869_v4, %s4721_s19  ;;  %520 = vrot.lane.b32.xlu1 %v4864_v3, %s4722_s0 }
  0x8f   :  { %522 = vrot.lane.b32.xlu0 %v4869_v4, %s4722_s0  ;;  %124 = vrot.lane.b32.xlu1 %v4874_v5, %s4714_s8 }
  0x93   :  { %126 = vrot.lane.b32.xlu0 %v4879_v6, %s4714_s8  ;;  %174 = vrot.lane.b32.xlu1 %v4874_v5, %s4715_s30 }
  0x97   :  { %176 = vrot.lane.b32.xlu0 %v4879_v6, %s4715_s30  ;;  %224 = vrot.lane.b32.xlu1 %v4874_v5, %s4716_s14 }
  0x9b   :  { %226 = vrot.lane.b32.xlu0 %v4879_v6, %s4716_s14  ;;  %274 = vrot.lane.b32.xlu1 %v4874_v5, %s4717_s5 }
  0x9f   :  { %276 = vrot.lane.b32.xlu0 %v4879_v6, %s4717_s5  ;;  %324 = vrot.lane.b32.xlu1 %v4874_v5, %s4718_s26 }
  0xa3   :  { %326 = vrot.lane.b32.xlu0 %v4879_v6, %s4718_s26  ;;  %374 = vrot.lane.b32.xlu1 %v4874_v5, %s4719_s15 }
  0xa7   :  { %376 = vrot.lane.b32.xlu0 %v4879_v6, %s4719_s15  ;;  %424 = vrot.lane.b32.xlu1 %v4874_v5, %s4720_s16 }
  0xa9   :  { %v117_v11 = vpop.permute.xlu0 %116  ;;  %v115_v12 = vpop.permute.xlu1 %114 }
  0xaa   :  { %v135_v13 = vsel %vm134_vm1, %v115_v12, %v117_v11 }
  0xab   :  { %426 = vrot.lane.b32.xlu0 %v4879_v6, %s4720_s16  ;;  %474 = vrot.lane.b32.xlu1 %v4874_v5, %s4721_s19  ;;  %v4068_v18 = vpack.c.bf16 %v135_v13, %v4849_v1 }
  0xad   :  { %v5017_v14 = vpop.permute.xlu0 %118  ;;  %v167_v15 = vpop.permute.xlu1 %166 }
  0xae   :  { %v136_v16 = vsel %vm134_vm1, %v117_v11, %v5017_v14 }
  0xaf   :  { %155 = vst [vmem:[#allocation2 + $0x58] sm:$0xff] %v136_v16  ;;  %476 = vrot.lane.b32.xlu0 %v4879_v6, %s4721_s19  ;;  %524 = vrot.lane.b32.xlu1 %v4874_v5, %s4722_s0  ;;  %v4066_v17 = vpack.c.bf16 %v136_v16, %v4844_v0  ;;  %v5117_v16 = vld [vmem:[#allocation3] sm:$0xff] }
  0xb1   :  { %v5027_v19 = vpop.permute.xlu0 %168  ;;  %v217_v20 = vpop.permute.xlu1 %216  ;;  %4067 = vmatprep.subr.bf16.mxu0 %v4066_v17 }
  0xb2   :  { %v186_v21 = vsel %vm184_vm2, %v167_v15, %v5027_v19  ;;  %4069 = vmatpush1.bf16.msra.mxu0 %v4068_v18 }
  0xb3   :  { %205 = vst [vmem:[#allocation2 + $0xa8] sm:$0xff] %v186_v21  ;;  %526 = vrot.lane.b32.xlu0 %v4879_v6, %s4722_s0  ;;  %128 = vrot.lane.b32.xlu1 %v4889_v8, %s4714_s8 }
  0xb5   :  { %v5035_v22 = vpop.permute.xlu0 %218  ;;  %v165_v23 = vpop.permute.xlu1 %164 }
  0xb6   :  { %v236_v24 = vsel %vm234_vm3, %v217_v20, %v5035_v22  ;;  %v185_v28 = vsel %vm184_vm2, %v165_v23, %v167_v15 }
  0xb7   :  { %255 = vst [vmem:[#allocation2 + $0xf8] sm:$0xff] %v236_v24  ;;  %130 = vrot.lane.b32.xlu0 %v4884_v7, %s4714_s8  ;;  %178 = vrot.lane.b32.xlu1 %v4889_v8, %s4715_s30  ;;  %v4070_v25 = vpack.c.bf16 %v236_v24, %v186_v21 }
  0xb9   :  { %v215_v26 = vpop.permute.xlu0 %214  ;;  %v267_v27 = vpop.permute.xlu1 %266  ;;  %4071 = vmatprep.subr.bf16.mxu0 %v4070_v25 }
  0xba   :  { %v235_v29 = vsel %vm234_vm3, %v215_v26, %v217_v20 }
  0xbb   :  { %180 = vrot.lane.b32.xlu0 %v4884_v7, %s4715_s30  ;;  %228 = vrot.lane.b32.xlu1 %v4889_v8, %s4716_s14  ;;  %v4072_v30 = vpack.c.bf16 %v235_v29, %v185_v28 }
  0xbd   :  { %v5049_v31 = vpop.permute.xlu0 %268  ;;  %v317_v32 = vpop.permute.xlu1 %316  ;;  %4073 = vmatpush1.bf16.msra.mxu0 %v4072_v30 }
  0xbe   :  { %v286_v33 = vsel %vm284_vm4, %v267_v27, %v5049_v31 }
  0xbf   :  { %305 = vst [vmem:[#allocation2 + $0x148] sm:$0xff] %v286_v33  ;;  %230 = vrot.lane.b32.xlu0 %v4884_v7, %s4716_s14  ;;  %278 = vrot.lane.b32.xlu1 %v4889_v8, %s4717_s5 }
  0xc1   :  { %v5057_v34 = vpop.permute.xlu0 %318  ;;  %v265_v35 = vpop.permute.xlu1 %264 }
  0xc2   :  { %v336_v36 = vsel %vm334_vm5, %v317_v32, %v5057_v34  ;;  %v285_v40 = vsel %vm284_vm4, %v265_v35, %v267_v27 }
  0xc3   :  { %355 = vst [vmem:[#allocation2 + $0x198] sm:$0xff] %v336_v36  ;;  %280 = vrot.lane.b32.xlu0 %v4884_v7, %s4717_s5  ;;  %328 = vrot.lane.b32.xlu1 %v4889_v8, %s4718_s26  ;;  %v4074_v37 = vpack.c.bf16 %v336_v36, %v286_v33 }
  0xc5   :  { %v315_v38 = vpop.permute.xlu0 %314  ;;  %v367_v39 = vpop.permute.xlu1 %366  ;;  %4075 = vmatprep.subr.bf16.mxu0 %v4074_v37 }
  0xc6   :  { %v335_v41 = vsel %vm334_vm5, %v315_v38, %v317_v32 }
  0xc7   :  { %330 = vrot.lane.b32.xlu0 %v4884_v7, %s4718_s26  ;;  %378 = vrot.lane.b32.xlu1 %v4889_v8, %s4719_s15  ;;  %v4076_v42 = vpack.c.bf16 %v335_v41, %v285_v40 }
  0xc9   :  { %v5071_v43 = vpop.permute.xlu0 %368  ;;  %v417_v44 = vpop.permute.xlu1 %416  ;;  %4077 = vmatpush1.bf16.msra.mxu0 %v4076_v42 }
  0xca   :  { %v386_v45 = vsel %vm384_vm6, %v367_v39, %v5071_v43 }
  0xcb   :  { %405 = vst [vmem:[#allocation2 + $0x1e8] sm:$0xff] %v386_v45  ;;  %380 = vrot.lane.b32.xlu0 %v4884_v7, %s4719_s15  ;;  %428 = vrot.lane.b32.xlu1 %v4889_v8, %s4720_s16 }
  0xcd   :  { %v5079_v46 = vpop.permute.xlu0 %418  ;;  %v365_v47 = vpop.permute.xlu1 %364 }
  0xce   :  { %v436_v48 = vsel %vm434_vm7, %v417_v44, %v5079_v46  ;;  %v385_v52 = vsel %vm384_vm6, %v365_v47, %v367_v39 }
  0xcf   :  { %455 = vst [vmem:[#allocation2 + $0x238] sm:$0xff] %v436_v48  ;;  %430 = vrot.lane.b32.xlu0 %v4884_v7, %s4720_s16  ;;  %478 = vrot.lane.b32.xlu1 %v4889_v8, %s4721_s19  ;;  %v4078_v49 = vpack.c.bf16 %v436_v48, %v386_v45 }
  0xd1   :  { %v415_v50 = vpop.permute.xlu0 %414  ;;  %v467_v51 = vpop.permute.xlu1 %466  ;;  %4079 = vmatprep.subr.bf16.mxu0 %v4078_v49 }
  0xd2   :  { %v435_v53 = vsel %vm434_vm7, %v415_v50, %v417_v44 }
  0xd3   :  { %480 = vrot.lane.b32.xlu0 %v4884_v7, %s4721_s19  ;;  %528 = vrot.lane.b32.xlu1 %v4889_v8, %s4722_s0  ;;  %v4080_v54 = vpack.c.bf16 %v435_v53, %v385_v52 }
  0xd5   :  { %v5093_v55 = vpop.permute.xlu0 %468  ;;  %v517_v56 = vpop.permute.xlu1 %516  ;;  %4081 = vmatpush1.bf16.msra.mxu0 %v4080_v54 }
  0xd6   :  { %v486_v57 = vsel %vm484_vm8, %v467_v51, %v5093_v55 }
  0xd7   :  { %530 = vrot.lane.b32.xlu0 %v4884_v7, %s4722_s0  ;;  %132 = vrot.lane.b32.xlu1 %v4926_v9, %s4714_s8 }
  0xd9   :  { %v5101_v58 = vpop.permute.xlu0 %518  ;;  %v465_v59 = vpop.permute.xlu1 %464 }
  0xda   :  { %v535_v60 = vsel %vm102_vm0, %v517_v56, %v5101_v58  ;;  %v485_v61 = vsel %vm484_vm8, %v465_v59, %v467_v51 }
  0xdb   :  { %182 = vrot.lane.b32.xlu0 %v4926_v9, %s4715_s30  ;;  %232 = vrot.lane.b32.xlu1 %v4926_v9, %s4716_s14  ;;  %v4082_v62 = vpack.c.bf16 %v535_v60, %v486_v57 }
  0xdd   :  { %v515_v63 = vpop.permute.xlu0 %514  ;;  %v121_v0 = vpop.permute.xlu1 %120  ;;  %4083 = vmatprep.subr.bf16.mxu0 %v4082_v62 }
  0xde   :  { %v534_v1 = vsel %vm102_vm0, %v515_v63, %v517_v56  ;;  %v137_v11 = vsel %vm134_vm1, %v5017_v14, %v121_v0 }
  0xdf   :  { %v4084_v12 = vpack.c.bf16 %v534_v1, %v485_v61  ;;  %282 = vrot.lane.b32.xlu0 %v4926_v9, %s4717_s5  ;;  %332 = vrot.lane.b32.xlu1 %v4926_v9, %s4718_s26  ;;  %v4088_v20 = vpack.c.bf16 %v137_v11, %v4854_v2 }
  0xe1   :  { %v123_v13 = vpop.permute.xlu0 %122  ;;  %v171_v15 = vpop.permute.xlu1 %170  ;;  %4085 = vmatpush1.bf16.msra.mxu0 %v4084_v12 }
  0xe2   :  { %v138_v17 = vsel %vm134_vm1, %v121_v0, %v123_v13  ;;  %v187_v18 = vsel %vm184_vm2, %v5027_v19, %v171_v15 }
  0xe3   :  { %v4086_v14 = vpack.c.bf16 %v138_v17, %v4864_v3  ;;  %382 = vrot.lane.b32.xlu0 %v4926_v9, %s4719_s15  ;;  %432 = vrot.lane.b32.xlu1 %v4926_v9, %s4720_s16 }
  0xe4   :  { %3808 = vmatmul.mubr.msk.f32.vlgmr.msra.gmra.mrb[0].mxu0 %vm664_vm9, %v5117_v16 }
  0xe5   :  { %v173_v21 = vpop.permute.xlu0 %172  ;;  %v221_v23 = vpop.permute.xlu1 %220  ;;  %4087 = vmatprep.subr.bf16.mxu1 %v4086_v14  ;;  %874 = vmatprep.mubr.f32.mxu0 %v4723_v10 }
  0xe6   :  { %v188_v19 = vsel %vm184_vm2, %v171_v15, %v173_v21  ;;  %v237_v3 = vsel %vm234_vm3, %v5035_v22, %v221_v23  ;;  %4089 = vmatpush1.bf16.msra.mxu1 %v4088_v20 }
  0xe7   :  { %482 = vrot.lane.b32.xlu0 %v4926_v9, %s4721_s19  ;;  %532 = vrot.lane.b32.xlu1 %v4926_v9, %s4722_s0  ;;  %v4092_v28 = vpack.c.bf16 %v237_v3, %v187_v18 }
  0xe9   :  { %v223_v24 = vpop.permute.xlu0 %222  ;;  %v271_v25 = vpop.permute.xlu1 %270 }
  0xea   :  { %v238_v2 = vsel %vm234_vm3, %v221_v23, %v223_v24  ;;  %v287_v26 = vsel %vm284_vm4, %v5049_v31, %v271_v25 }
  0xeb   :  { %v4090_v27 = vpack.c.bf16 %v238_v2, %v188_v19 }
  0xed   :  { %v273_v29 = vpop.permute.xlu0 %272  ;;  %v321_v30 = vpop.permute.xlu1 %320  ;;  %4091 = vmatprep.subr.bf16.mxu1 %v4090_v27 }
  0xee   :  { %v288_v22 = vsel %vm284_vm4, %v271_v25, %v273_v29  ;;  %v337_v32 = vsel %vm334_vm5, %v5057_v34, %v321_v30  ;;  %4093 = vmatpush1.bf16.msra.mxu1 %v4092_v28 }
  0xef   :  { %v4096_v31 = vpack.c.bf16 %v337_v32, %v287_v26 }
  0xf1   :  { %v323_v33 = vpop.permute.xlu0 %322  ;;  %v371_v9 = vpop.permute.xlu1 %370 }
  0xf2   :  { %v338_v35 = vsel %vm334_vm5, %v321_v30, %v323_v33  ;;  %v387_v36 = vsel %vm384_vm6, %v5071_v43, %v371_v9 }
  0xf3   :  { %v4094_v37 = vpack.c.bf16 %v338_v35, %v288_v22 }
  0xf5   :  { %v373_v38 = vpop.permute.xlu0 %372  ;;  %v421_v39 = vpop.permute.xlu1 %420  ;;  %4095 = vmatprep.subr.bf16.mxu1 %v4094_v37 }
  0xf6   :  { %v388_v40 = vsel %vm384_vm6, %v371_v9, %v373_v38  ;;  %v437_v41 = vsel %vm434_vm7, %v5079_v46, %v421_v39  ;;  %4097 = vmatpush1.bf16.msra.mxu1 %v4096_v31 }
  0xf7   :  { %v4100_v43 = vpack.c.bf16 %v437_v41, %v387_v36 }
  0xf9   :  { %v423_v34 = vpop.permute.xlu0 %422  ;;  %v471_v42 = vpop.permute.xlu1 %470 }
  0xfa   :  { %v438_v44 = vsel %vm434_vm7, %v421_v39, %v423_v34  ;;  %v487_v45 = vsel %vm484_vm8, %v5093_v55, %v471_v42 }
  0xfb   :  { %v4098_v47 = vpack.c.bf16 %v438_v44, %v388_v40 }
  0xfd   :  { %v473_v48 = vpop.permute.xlu0 %472  ;;  %v521_v49 = vpop.permute.xlu1 %520  ;;  %4099 = vmatprep.subr.bf16.mxu1 %v4098_v47 }
  0xfe   :  { %v488_v50 = vsel %vm484_vm8, %v471_v42, %v473_v48  ;;  %v536_v51 = vsel %vm102_vm0, %v5101_v58, %v521_v49  ;;  %4101 = vmatpush1.bf16.msra.mxu1 %v4100_v43 }
  0xff   :  { %v4104_v57 = vpack.c.bf16 %v536_v51, %v487_v45 }
 0x101   :  { %v523_v46 = vpop.permute.xlu0 %522  ;;  %v125_v52 = vpop.permute.xlu1 %124 }
 0x102   :  { %v537_v53 = vsel %vm102_vm0, %v521_v49, %v523_v46  ;;  %v139_v54 = vsel %vm134_vm1, %v123_v13, %v125_v52 }
 0x103   :  { %v4102_v56 = vpack.c.bf16 %v537_v53, %v488_v50  ;;  %v4108_v58 = vpack.c.bf16 %v139_v54, %v4869_v4 }
 0x105   :  { %v127_v55 = vpop.permute.xlu0 %126  ;;  %v175_v59 = vpop.permute.xlu1 %174  ;;  %4103 = vmatprep.subr.bf16.mxu1 %v4102_v56 }
 0x106   :  { %v140_v60 = vsel %vm134_vm1, %v125_v52, %v127_v55  ;;  %v189_v61 = vsel %vm184_vm2, %v173_v21, %v175_v59  ;;  %4105 = vmatpush1.bf16.msra.mxu1 %v4104_v57 }
 0x107   :  { %v4106_v62 = vpack.c.bf16 %v140_v60, %v4874_v5 }
 0x109   :  { %v177_v63 = vpop.permute.xlu0 %176  ;;  %v225_v0 = vpop.permute.xlu1 %224  ;;  %4107 = vmatprep.subr.bf16.mxu0 %v4106_v62  ;;  %3809 = vmatmul.mubr.msk.f32.vlgmr.msra.gmra.mrb[0].mxu1 %vm664_vm9, %v5117_v16 }
 0x10a   :  { %v190_v1 = vsel %vm184_vm2, %v175_v59, %v177_v63  ;;  %v239_v11 = vsel %vm234_vm3, %v223_v24, %v225_v0  ;;  %4109 = vmatpush1.bf16.msra.mxu0 %v4108_v58  ;;  %945 = vmatprep.mubr.f32.mxu1 %v4723_v10 }
 0x10b   :  { %v4112_v17 = vpack.c.bf16 %v239_v11, %v189_v61 }
 0x10d   :  { %v227_v12 = vpop.permute.xlu0 %226  ;;  %v275_v13 = vpop.permute.xlu1 %274 }
 0x10e   :  { %v240_v15 = vsel %vm234_vm3, %v225_v0, %v227_v12  ;;  %v289_v5 = vsel %vm284_vm4, %v273_v29, %v275_v13 }
 0x10f   :  { %v4110_v4 = vpack.c.bf16 %v240_v15, %v190_v1 }
 0x111   :  { %v277_v18 = vpop.permute.xlu0 %276  ;;  %v325_v14 = vpop.permute.xlu1 %324  ;;  %4111 = vmatprep.subr.bf16.mxu0 %v4110_v4 }
 0x112   :  { %v290_v20 = vsel %vm284_vm4, %v275_v13, %v277_v18  ;;  %v339_v21 = vsel %vm334_vm5, %v323_v33, %v325_v14  ;;  %4113 = vmatpush1.bf16.msra.mxu0 %v4112_v17 }
 0x113   :  { %v4116_v2 = vpack.c.bf16 %v339_v21, %v289_v5 }
 0x115   :  { %v327_v23 = vpop.permute.xlu0 %326  ;;  %v375_v19 = vpop.permute.xlu1 %374 }
 0x116   :  { %v340_v3 = vsel %vm334_vm5, %v325_v14, %v327_v23  ;;  %v389_v24 = vsel %vm384_vm6, %v373_v38, %v375_v19 }
 0x117   :  { %v4114_v25 = vpack.c.bf16 %v340_v3, %v290_v20 }
 0x119   :  { %v377_v26 = vpop.permute.xlu0 %376  ;;  %v425_v27 = vpop.permute.xlu1 %424  ;;  %4115 = vmatprep.subr.bf16.mxu0 %v4114_v25 }
 0x11a   :  { %v390_v28 = vsel %vm384_vm6, %v375_v19, %v377_v26  ;;  %v439_v29 = vsel %vm434_vm7, %v423_v34, %v425_v27  ;;  %4117 = vmatpush1.bf16.msra.mxu0 %v4116_v2  ;;  %v1024_v2 = vld [vmem:[#allocation7 + $0x8] sm:$0xff] }
 0x11b   :  { %v4120_v35 = vpack.c.bf16 %v439_v29, %v389_v24 }
 0x11d   :  { %v427_v30 = vpop.permute.xlu0 %426  ;;  %v475_v22 = vpop.permute.xlu1 %474 }
 0x11e   :  { %v440_v32 = vsel %vm434_vm7, %v425_v27, %v427_v30  ;;  %v489_v33 = vsel %vm484_vm8, %v473_v48, %v475_v22 }
 0x11f   :  { %v4118_v9 = vpack.c.bf16 %v440_v32, %v390_v28 }
 0x121   :  { %v477_v36 = vpop.permute.xlu0 %476  ;;  %v525_v37 = vpop.permute.xlu1 %524  ;;  %4119 = vmatprep.subr.bf16.mxu0 %v4118_v9  ;;  %v1023_v9 = vld [vmem:[#allocation7] sm:$0xff] }
 0x122   :  { %v490_v31 = vsel %vm484_vm8, %v475_v22, %v477_v36  ;;  %v538_v38 = vsel %vm102_vm0, %v523_v46, %v525_v37  ;;  %4121 = vmatpush1.bf16.msra.mxu0 %v4120_v35  ;;  %v1025_v35 = vld [vmem:[#allocation7 + $0x10] sm:$0xff] }
 0x123   :  { %v4124_v44 = vpack.c.bf16 %v538_v38, %v489_v33 }
 0x125   :  { %v527_v39 = vpop.permute.xlu0 %526  ;;  %v129_v40 = vpop.permute.xlu1 %128 }
 0x126   :  { %v539_v41 = vsel %vm102_vm0, %v525_v37, %v527_v39  ;;  %v141_v34 = vsel %vm134_vm1, %v127_v55, %v129_v40  ;;  %v1030_v37 = vld [vmem:[#allocation7 + $0x38] sm:$0xff] }
 0x127   :  { %v4122_v42 = vpack.c.bf16 %v539_v41, %v490_v31  ;;  %v4128_v49 = vpack.c.bf16 %v141_v34, %v4879_v6  ;;  %v4168_v41 = vpack.c.bf16 %v1025_v35, %v1023_v9  ;;  %v573_v34 = vld [vmem:[#allocation2 + $0x48] sm:$0xff]  ;;  %v1043_v9 = vld [vmem:[#allocation7 + $0xa0] sm:$0xff] }
 0x128   :  { %v1045_v35 = vld [vmem:[#allocation7 + $0xb0] sm:$0xff] }
 0x129   :  { %v131_v45 = vpop.permute.xlu0 %130  ;;  %v179_v47 = vpop.permute.xlu1 %178  ;;  %4123 = vmatprep.subr.bf16.mxu0 %v4122_v42 }
 0x12a   :  { %v142_v43 = vsel %vm134_vm1, %v129_v40, %v131_v45  ;;  %v191_v48 = vsel %vm184_vm2, %v177_v63, %v179_v47  ;;  %4125 = vmatpush1.bf16.msra.mxu0 %v4124_v44  ;;  %v1027_v44 = vld [vmem:[#allocation7 + $0x20] sm:$0xff] }
 0x12b   :  { %v4126_v50 = vpack.c.bf16 %v142_v43, %v4889_v8  ;;  %v1034_v43 = vld [vmem:[#allocation7 + $0x58] sm:$0xff] }
 0x12d   :  { %v181_v51 = vpop.permute.xlu0 %180  ;;  %v229_v46 = vpop.permute.xlu1 %228  ;;  %4127 = vmatprep.subr.bf16.mxu1 %v4126_v50  ;;  %3810 = vmatmul.mubr.msk.f32.vlgmr.msra.gmra.mrb[2].mxu0 %vm664_vm9, %v5117_v16 }
 0x12e   :  { %v192_v52 = vsel %vm184_vm2, %v179_v47, %v181_v51  ;;  %v241_v53 = vsel %vm234_vm3, %v227_v12, %v229_v46  ;;  %4129 = vmatpush1.bf16.msra.mxu1 %v4128_v49  ;;  %1016 = vmatprep.mubr.f32.mxu0 %v4723_v10  ;;  %v1032_v47 = vld [vmem:[#allocation7 + $0x48] sm:$0xff] }
 0x12f   :  { %v4132_v8 = vpack.c.bf16 %v241_v53, %v191_v48 }
 0x131   :  { %v231_v54 = vpop.permute.xlu0 %230  ;;  %v279_v56 = vpop.permute.xlu1 %278 }
 0x132   :  { %v242_v57 = vsel %vm234_vm3, %v229_v46, %v231_v54  ;;  %v291_v6 = vsel %vm284_vm4, %v277_v18, %v279_v56 }
 0x133   :  { %v4130_v55 = vpack.c.bf16 %v242_v57, %v192_v52  ;;  %v1031_v57 = vld [vmem:[#allocation7 + $0x40] sm:$0xff] }
 0x135   :  { %v5192_v59 = vpop.permute.xlu0 %280  ;;  %v329_v60 = vpop.permute.xlu1 %328  ;;  %4131 = vmatprep.subr.bf16.mxu1 %v4130_v55 }
 0x136   :  { %v292_v61 = vsel %vm284_vm4, %v279_v56, %v5192_v59  ;;  %v341_v62 = vsel %vm334_vm5, %v327_v23, %v329_v60  ;;  %4133 = vmatpush1.bf16.msra.mxu1 %v4132_v8  ;;  %v4174_v56 = vpack.c.bf16 %v1034_v43, %v1032_v47  ;;  %v1038_v8 = vld [vmem:[#allocation7 + $0x78] sm:$0xff] }
 0x137   :  { %v4136_v11 = vpack.c.bf16 %v341_v62, %v291_v6  ;;  %v1036_v6 = vld [vmem:[#allocation7 + $0x68] sm:$0xff]  ;;  %v1054_v47 = vld [vmem:[#allocation7 + $0xf8] sm:$0xff] }
 0x139   :  { %v5197_v58 = vpop.permute.xlu0 %330  ;;  %v379_v63 = vpop.permute.xlu1 %378 }
 0x13a   :  { %v342_v0 = vsel %vm334_vm5, %v329_v60, %v5197_v58  ;;  %v391_v1 = vsel %vm384_vm6, %v377_v26, %v379_v63  ;;  %v1026_v26 = vld [vmem:[#allocation7 + $0x18] sm:$0xff] }
 0x13b   :  { %v4134_v12 = vpack.c.bf16 %v342_v0, %v292_v61  ;;  %v4166_v33 = vpack.c.bf16 %v1026_v26, %v1024_v2  ;;  %v1039_v2 = vld [vmem:[#allocation7 + $0x80] sm:$0xff]  ;;  %v1041_v26 = vld [vmem:[#allocation7 + $0x90] sm:$0xff] }
 0x13d   :  { %v5202_v13 = vpop.permute.xlu0 %380  ;;  %v429_v15 = vpop.permute.xlu1 %428  ;;  %4135 = vmatprep.subr.bf16.mxu1 %v4134_v12  ;;  %v1035_v12 = vld [vmem:[#allocation7 + $0x60] sm:$0xff] }
 0x13e   :  { %v392_v5 = vsel %vm384_vm6, %v379_v63, %v5202_v13  ;;  %v441_v4 = vsel %vm434_vm7, %v427_v30, %v429_v15  ;;  %4137 = vmatpush1.bf16.msra.mxu1 %v4136_v11  ;;  %v4178_v11 = vpack.c.bf16 %v1038_v8, %v1036_v6 }
 0x13f   :  { %v4140_v21 = vpack.c.bf16 %v441_v4, %v391_v1  ;;  %v1042_v4 = vld [vmem:[#allocation7 + $0x98] sm:$0xff] }
 0x141   :  { %v5207_v17 = vpop.permute.xlu0 %430  ;;  %v479_v18 = vpop.permute.xlu1 %478 }
 0x142   :  { %v442_v14 = vsel %vm434_vm7, %v429_v15, %v5207_v17  ;;  %v491_v20 = vsel %vm484_vm8, %v477_v36, %v479_v18  ;;  %v1028_v36 = vld [vmem:[#allocation7 + $0x28] sm:$0xff]  ;;  %v1037_v15 = vld [vmem:[#allocation7 + $0x70] sm:$0xff] }
 0x143   :  { %v4138_v23 = vpack.c.bf16 %v442_v14, %v392_v5  ;;  %v4170_v42 = vpack.c.bf16 %v1030_v37, %v1028_v36  ;;  %v1040_v5 = vld [vmem:[#allocation7 + $0x88] sm:$0xff]  ;;  %v1050_v37 = vld [vmem:[#allocation7 + $0xd8] sm:$0xff] }
 0x144   :  { %v1048_v36 = vld [vmem:[#allocation7 + $0xc8] sm:$0xff] }
 0x145   :  { %v5212_v19 = vpop.permute.xlu0 %480  ;;  %v529_v3 = vpop.permute.xlu1 %528  ;;  %4139 = vmatprep.subr.bf16.mxu1 %v4138_v23 }
 0x146   :  { %v492_v24 = vsel %vm484_vm8, %v479_v18, %v5212_v19  ;;  %v540_v25 = vsel %vm102_vm0, %v527_v39, %v529_v3  ;;  %4141 = vmatpush1.bf16.msra.mxu1 %v4140_v21 }
 0x147   :  { %v4144_v22 = vpack.c.bf16 %v540_v25, %v491_v20  ;;  %v4182_v25 = vpack.c.bf16 %v1042_v4, %v1040_v5  ;;  %v1069_v5 = vld [vmem:[#allocation7 + $0x170] sm:$0xff]  ;;  %v1072_v4 = vld [vmem:[#allocation7 + $0x188] sm:$0xff] }
 0x149   :  { %v5217_v27 = vpop.permute.xlu0 %530  ;;  %v133_v28 = vpop.permute.xlu1 %132 }
 0x14a   :  { %v541_v29 = vsel %vm102_vm0, %v529_v3, %v5217_v27  ;;  %v143_v30 = vsel %vm134_vm1, %v131_v45, %v133_v28  ;;  %163 = vst.msk [vmem:[#allocation2 + $0x98] sm:$0xff] %vm102_vm0, %v133_v28  ;;  %v1029_v45 = vld [vmem:[#allocation7 + $0x30] sm:$0xff]  ;;  %v1044_v28 = vld [vmem:[#allocation7 + $0xa8] sm:$0xff] }
 0x14b   :  { %v4142_v32 = vpack.c.bf16 %v541_v29, %v492_v24  ;;  %v4180_v24 = vpack.c.bf16 %v1037_v15, %v1035_v12  ;;  %v1046_v29 = vld [vmem:[#allocation7 + $0xb8] sm:$0xff]  ;;  %v1067_v15 = vld [vmem:[#allocation7 + $0x160] sm:$0xff] }
 0x14d   :  { %v183_v31 = vpop.permute.xlu0 %182  ;;  %4143 = vmatprep.subr.bf16.mxu1 %v4142_v32  ;;  %v233_v38 = vpop.permute.xlu1 %232 }
 0x14e   :  { %v193_v39 = vsel %vm184_vm2, %v181_v51, %v183_v31  ;;  %213 = vst.msk [vmem:[#allocation2 + $0xe8] sm:$0xff] %vm102_vm0, %v183_v31  ;;  %v243_v40 = vsel %vm234_vm3, %v231_v54, %v233_v38  ;;  %263 = vst.msk [vmem:[#allocation2 + $0x138] sm:$0xff] %vm102_vm0, %v233_v38  ;;  %4145 = vmatpush1.bf16.msra.mxu1 %v4144_v22  ;;  %v4148_v51 = vpack.c.bf16 %v143_v30, %v4884_v7  ;;  %v1033_v7 = vld [vmem:[#allocation7 + $0x50] sm:$0xff] }
 0x14f   :  { %4167 = vmatprep.subr.bf16.mxu1 %v4166_v33  ;;  %v4172_v54 = vpack.c.bf16 %v1029_v45, %v1027_v44  ;;  %v4176_v1 = vpack.c.bf16 %v1033_v7, %v1031_v57  ;;  %v4184_v33 = vpack.c.bf16 %v1041_v26, %v1039_v2  ;;  %v1049_v44 = vld [vmem:[#allocation7 + $0xd0] sm:$0xff]  ;;  %v1052_v45 = vld [vmem:[#allocation7 + $0xe8] sm:$0xff]  ;;  %v1062_v7 = vld [vmem:[#allocation7 + $0x138] sm:$0xff] }
 0x150   :  { %v1060_v57 = vld [vmem:[#allocation7 + $0x128] sm:$0xff]  ;;  %v1077_v2 = vld [vmem:[#allocation7 + $0x1b0] sm:$0xff] }
 0x151   :  { %v583_v48 = vld [vmem:[#allocation2 + $0x98] sm:$0xff]  ;;  %v283_v49 = vpop.permute.xlu0 %282  ;;  %v333_v50 = vpop.permute.xlu1 %332  ;;  %3811 = vmatmul.mubr.msk.f32.vlgmr.msra.gmra.mrb[2].mxu1 %vm664_vm9, %v5117_v16  ;;  %v4202_v8 = vpack.c.bf16 %v1062_v7, %v1060_v57  ;;  %v1080_v26 = vld [vmem:[#allocation7 + $0x1c8] sm:$0xff] }
 0x152   :  { %v4146_v46 = vpack.c.bf16 %v583_v48, %v573_v34  ;;  %v293_v52 = vsel %vm284_vm4, %v5192_v59, %v283_v49  ;;  %313 = vst.msk [vmem:[#allocation2 + $0x188] sm:$0xff] %vm102_vm0, %v283_v49  ;;  %v343_v53 = vsel %vm334_vm5, %v5197_v58, %v333_v50  ;;  %363 = vst.msk [vmem:[#allocation2 + $0x1d8] sm:$0xff] %vm102_vm0, %v333_v50  ;;  %4169 = vmatpush1.bf16.msra.mxu1 %v4168_v41  ;;  %v1051_v49 = vld [vmem:[#allocation7 + $0xe0] sm:$0xff]  ;;  %v1053_v50 = vld [vmem:[#allocation7 + $0xf0] sm:$0xff] }
 0x153   :  { %4171 = vmatprep.subr.bf16.mxu1 %v4170_v42  ;;  %v4152_v59 = vpack.c.bf16 %v243_v40, %v193_v39  ;;  %v4188_v41 = vpack.c.bf16 %v1045_v35, %v1043_v9  ;;  %v4190_v34 = vpack.c.bf16 %v1050_v37, %v1048_v36  ;;  %v1047_v42 = vld [vmem:[#allocation7 + $0xc0] sm:$0xff]  ;;  %v4194_v48 = vpack.c.bf16 %v1054_v47, %v1052_v45  ;;  %v1085_v36 = vld [vmem:[#allocation7 + $0x1f0] sm:$0xff]  ;;  %v1088_v37 = vld [vmem:[#allocation7 + $0x208] sm:$0xff] }
 0x154   :  { %4147 = vmatprep.subr.bf16.mxu0 %v4146_v46  ;;  %v4192_v43 = vpack.c.bf16 %v1049_v44, %v1047_v42  ;;  %v1058_v46 = vld [vmem:[#allocation7 + $0x118] sm:$0xff]  ;;  %v1083_v35 = vld [vmem:[#allocation7 + $0x1e0] sm:$0xff] }
 0x155   :  { %4149 = vmatpush1.bf16.msra.mxu0 %v4148_v51  ;;  %v593_v55 = vld [vmem:[#allocation2 + $0xe8] sm:$0xff]  ;;  %v603_v60 = vld [vmem:[#allocation2 + $0x138] sm:$0xff]  ;;  %v383_v61 = vpop.permute.xlu0 %382  ;;  %v433_v62 = vpop.permute.xlu1 %432  ;;  %v1056_v51 = vld [vmem:[#allocation7 + $0x108] sm:$0xff] }
 0x156   :  { %v4150_v63 = vpack.c.bf16 %v603_v60, %v593_v55  ;;  %v393_v58 = vsel %vm384_vm6, %v5202_v13, %v383_v61  ;;  %413 = vst.msk [vmem:[#allocation2 + $0x228] sm:$0xff] %vm102_vm0, %v383_v61  ;;  %v443_v0 = vsel %vm434_vm7, %v5207_v17, %v433_v62  ;;  %463 = vst.msk [vmem:[#allocation2 + $0x278] sm:$0xff] %vm102_vm0, %v433_v62  ;;  %4173 = vmatpush1.bf16.msra.mxu1 %v4172_v54  ;;  %v1055_v54 = vld [vmem:[#allocation7 + $0x100] sm:$0xff]  ;;  %v1061_v60 = vld [vmem:[#allocation7 + $0x130] sm:$0xff] }
 0x157   :  { %4175 = vmatprep.subr.bf16.mxu1 %v4174_v56  ;;  %v4156_v13 = vpack.c.bf16 %v343_v53, %v293_v52  ;;  %v4196_v52 = vpack.c.bf16 %v1053_v50, %v1051_v49  ;;  %v4198_v53 = vpack.c.bf16 %v1058_v46, %v1056_v51  ;;  %v1057_v56 = vld [vmem:[#allocation7 + $0x110] sm:$0xff]  ;;  %v1059_v55 = vld [vmem:[#allocation7 + $0x120] sm:$0xff]  ;;  %v1066_v61 = vld [vmem:[#allocation7 + $0x158] sm:$0xff] }
 0x158   :  { %4151 = vmatprep.subr.bf16.mxu0 %v4150_v63  ;;  %v4200_v6 = vpack.c.bf16 %v1057_v56, %v1055_v54  ;;  %v4204_v62 = vpack.c.bf16 %v1061_v60, %v1059_v55  ;;  %v1063_v63 = vld [vmem:[#allocation7 + $0x140] sm:$0xff]  ;;  %v1094_v42 = vld [vmem:[#allocation7 + $0x238] sm:$0xff]  ;;  %v1096_v50 = vld [vmem:[#allocation7 + $0x248] sm:$0xff] }
 0x159   :  { %4153 = vmatpush1.bf16.msra.mxu0 %v4152_v59  ;;  %v613_v18 = vld [vmem:[#allocation2 + $0x188] sm:$0xff]  ;;  %v623_v14 = vld [vmem:[#allocation2 + $0x1d8] sm:$0xff]  ;;  %v483_v20 = vpop.permute.xlu0 %482  ;;  %v533_v21 = vpop.permute.xlu1 %532  ;;  %v1064_v59 = vld [vmem:[#allocation7 + $0x148] sm:$0xff] }
 0x15a   :  { %v4154_v23 = vpack.c.bf16 %v623_v14, %v613_v18  ;;  %v493_v17 = vsel %vm484_vm8, %v5212_v19, %v483_v20  ;;  %513 = vst.msk [vmem:[#allocation2 + $0x2c8] sm:$0xff] %vm102_vm0, %v483_v20  ;;  %v542_v3 = vsel %vm102_vm0, %v5217_v27, %v533_v21  ;;  %562 = vst.msk [vmem:[#allocation2 + $0x318] sm:$0xff] %vm102_vm0, %v533_v21  ;;  %4177 = vmatpush1.bf16.msra.mxu1 %v4176_v1  ;;  %v1070_v1 = vld [vmem:[#allocation7 + $0x178] sm:$0xff]  ;;  %v1071_v20 = vld [vmem:[#allocation7 + $0x180] sm:$0xff] }
 0x15b   :  { %4179 = vmatprep.subr.bf16.mxu1 %v4178_v11  ;;  %v4160_v19 = vpack.c.bf16 %v443_v0, %v393_v58  ;;  %v4186_v27 = vpack.c.bf16 %v1046_v29, %v1044_v28  ;;  %v4164_v39 = vpack.c.bf16 %v542_v3, %v493_v17  ;;  %v1065_v58 = vld [vmem:[#allocation7 + $0x150] sm:$0xff]  ;;  %v1068_v0 = vld [vmem:[#allocation7 + $0x168] sm:$0xff]  ;;  %v1074_v18 = vld [vmem:[#allocation7 + $0x198] sm:$0xff]  ;;  %v4212_v14 = vpack.c.bf16 %v1069_v5, %v1067_v15 }
 0x15c   :  { %4155 = vmatprep.subr.bf16.mxu0 %v4154_v23  ;;  %v4208_v11 = vpack.c.bf16 %v1065_v58, %v1063_v63  ;;  %v4210_v12 = vpack.c.bf16 %v1070_v1, %v1068_v0  ;;  %v1073_v21 = vld [vmem:[#allocation7 + $0x190] sm:$0xff]  ;;  %v1076_v23 = vld [vmem:[#allocation7 + $0x1a8] sm:$0xff]  ;;  %v1078_v17 = vld [vmem:[#allocation7 + $0x1b8] sm:$0xff] }
 0x15d   :  { %4157 = vmatpush1.bf16.msra.mxu0 %v4156_v13  ;;  %v633_v30 = vld [vmem:[#allocation2 + $0x228] sm:$0xff]  ;;  %v643_v22 = vld [vmem:[#allocation2 + $0x278] sm:$0xff]  ;;  %v4214_v13 = vpack.c.bf16 %v1074_v18, %v1072_v4  ;;  %v4216_v3 = vpack.c.bf16 %v1073_v21, %v1071_v20  ;;  %v1082_v28 = vld [vmem:[#allocation7 + $0x1d8] sm:$0xff] }
 0x15e   :  { %v4158_v32 = vpack.c.bf16 %v643_v22, %v633_v30  ;;  %4181 = vmatpush1.bf16.msra.mxu1 %v4180_v24  ;;  %v4218_v24 = vpack.c.bf16 %v1078_v17, %v1076_v23  ;;  %v4222_v30 = vpack.c.bf16 %v1082_v28, %v1080_v26  ;;  %v1079_v22 = vld [vmem:[#allocation7 + $0x1c0] sm:$0xff]  ;;  %v1098_v51 = vld [vmem:[#allocation7 + $0x258] sm:$0xff]  ;;  %v1280_v46 = vld [vmem:[#allocation7 + $0x808] sm:$0xff] }
 0x15f   :  { %4183 = vmatprep.subr.bf16.mxu1 %v4182_v25  ;;  %v1075_v25 = vld [vmem:[#allocation7 + $0x1a0] sm:$0xff]  ;;  %v1281_v54 = vld [vmem:[#allocation7 + $0x810] sm:$0xff]  ;;  %v4238_v55 = vpack.c.bf16 %v1098_v51, %v1096_v50  ;;  %v1100_v60 = vld [vmem:[#allocation7 + $0x268] sm:$0xff] }
 0x160   :  { %4159 = vmatprep.subr.bf16.mxu0 %v4158_v32  ;;  %v4220_v29 = vpack.c.bf16 %v1077_v2, %v1075_v25  ;;  %v1084_v32 = vld [vmem:[#allocation7 + $0x1e8] sm:$0xff]  ;;  %v1091_v47 = vld [vmem:[#allocation7 + $0x220] sm:$0xff]  ;;  %v1285_v63 = vld [vmem:[#allocation7 + $0x830] sm:$0xff] }
 0x161   :  { %4161 = vmatpush1.bf16.msra.mxu0 %v4160_v19  ;;  %v653_v31 = vld [vmem:[#allocation2 + $0x2c8] sm:$0xff]  ;;  %v663_v38 = vld [vmem:[#allocation2 + $0x318] sm:$0xff]  ;;  %v1104_v5 = vld [vmem:[#allocation7 + $0x288] sm:$0xff] }
 0x162   :  { %v4162_v40 = vpack.c.bf16 %v663_v38, %v653_v31  ;;  %4185 = vmatpush1.bf16.msra.mxu1 %v4184_v33  ;;  %v1081_v19 = vld [vmem:[#allocation7 + $0x1d0] sm:$0xff]  ;;  %v1086_v33 = vld [vmem:[#allocation7 + $0x1f8] sm:$0xff]  ;;  %v4228_v38 = vpack.c.bf16 %v1085_v36, %v1083_v35  ;;  %v1288_v18 = vld [vmem:[#allocation7 + $0x848] sm:$0xff] }
 0x163   :  { %4187 = vmatprep.subr.bf16.mxu1 %v4186_v27  ;;  %v4224_v27 = vpack.c.bf16 %v1081_v19, %v1079_v22  ;;  %v4226_v9 = vpack.c.bf16 %v1086_v33, %v1084_v32  ;;  %v1090_v31 = vld [vmem:[#allocation7 + $0x218] sm:$0xff]  ;;  %v1289_v20 = vld [vmem:[#allocation7 + $0x850] sm:$0xff]  ;;  %v1108_v2 = vld [vmem:[#allocation7 + $0x2a8] sm:$0xff] }
 0x164   :  { %4163 = vmatprep.subr.bf16.mxu0 %v4162_v40  ;;  %v1087_v40 = vld [vmem:[#allocation7 + $0x200] sm:$0xff]  ;;  %v1106_v4 = vld [vmem:[#allocation7 + $0x298] sm:$0xff]  ;;  %v1292_v28 = vld [vmem:[#allocation7 + $0x868] sm:$0xff] }
 0x165   :  { %4165 = vmatpush1.bf16.msra.mxu0 %v4164_v39  ;;  %v4230_v39 = vpack.c.bf16 %v1090_v31, %v1088_v37  ;;  %v4246_v25 = vpack.c.bf16 %v1106_v4, %v1104_v5  ;;  %v1110_v26 = vld [vmem:[#allocation7 + $0x2b8] sm:$0xff]  ;;  %v1293_v22 = vld [vmem:[#allocation7 + $0x870] sm:$0xff]  ;;  %v1112_v36 = vld [vmem:[#allocation7 + $0x2c8] sm:$0xff] }
 0x166   :  { %4189 = vmatpush1.bf16.msra.mxu1 %v4188_v41  ;;  %v1089_v41 = vld [vmem:[#allocation7 + $0x210] sm:$0xff]  ;;  %v4250_v35 = vpack.c.bf16 %v1110_v26, %v1108_v2  ;;  %v1114_v37 = vld [vmem:[#allocation7 + $0x2d8] sm:$0xff]  ;;  %v1296_v31 = vld [vmem:[#allocation7 + $0x888] sm:$0xff] }
 0x167   :  { %4191 = vmatprep.subr.bf16.mxu1 %v4190_v34  ;;  %v1092_v34 = vld [vmem:[#allocation7 + $0x228] sm:$0xff]  ;;  %v4232_v45 = vpack.c.bf16 %v1089_v41, %v1087_v40  ;;  %v1297_v40 = vld [vmem:[#allocation7 + $0x890] sm:$0xff]  ;;  %v1302_v50 = vld [vmem:[#allocation7 + $0x8b8] sm:$0xff] }
 0x168   :  { %3812 = vmatmul.mubr.msk.f32.vlgmr.msra.gmra.mrb[4].mxu0 %vm664_vm9, %v5117_v16  ;;  %v4206_v16 = vpack.c.bf16 %v1066_v61, %v1064_v59  ;;  %v4234_v49 = vpack.c.bf16 %v1094_v42, %v1092_v34  ;;  %v1102_v59 = vld [vmem:[#allocation7 + $0x278] sm:$0xff]  ;;  %v1284_v61 = vld [vmem:[#allocation7 + $0x828] sm:$0xff]  ;;  %v1299_v51 = vld [vmem:[#allocation7 + $0x8a0] sm:$0xff]  ;;  %vm3110_vm9 = vcmask 261120  }
 0x169   :  { %v4242_v15 = vpack.c.bf16 %v1102_v59, %v1100_v60  ;;  %v1306_v60 = vld [vmem:[#allocation7 + $0x8d8] sm:$0xff]  ;;  %v1303_v59 = vld [vmem:[#allocation7 + $0x8c0] sm:$0xff] }
 0x16a   :  { %4193 = vmatpush1.bf16.msra.mxu1 %v4192_v43  ;;  %v1093_v43 = vld [vmem:[#allocation7 + $0x230] sm:$0xff]  ;;  %v1310_v5 = vld [vmem:[#allocation7 + $0x8f8] sm:$0xff]  ;;  %v1307_v4 = vld [vmem:[#allocation7 + $0x8e0] sm:$0xff] }
 0x16b   :  { %4195 = vmatprep.subr.bf16.mxu1 %v4194_v48  ;;  %v4236_v7 = vpack.c.bf16 %v1093_v43, %v1091_v47  ;;  %v4254_v47 = vpack.c.bf16 %v1114_v37, %v1112_v36  ;;  %v1116_v43 = vld [vmem:[#allocation7 + $0x2e8] sm:$0xff]  ;;  %v1314_v2 = vld [vmem:[#allocation7 + $0x918] sm:$0xff]  ;;  %v1311_v26 = vld [vmem:[#allocation7 + $0x900] sm:$0xff] }
 0x16c   :  { %v1316_v36 = vld [vmem:[#allocation7 + $0x928] sm:$0xff] }
 0x16e   :  { %4197 = vmatpush1.bf16.msra.mxu1 %v4196_v52  ;;  %v1282_v52 = vld [vmem:[#allocation7 + $0x818] sm:$0xff] }
 0x16f   :  { %4199 = vmatprep.subr.bf16.mxu1 %v4198_v53  ;;  %v1279_v53 = vld [vmem:[#allocation7 + $0x800] sm:$0xff]  ;;  %v4422_v56 = vpack.c.bf16 %v1282_v52, %v1280_v46  ;;  %v1301_v46 = vld [vmem:[#allocation7 + $0x8b0] sm:$0xff] }
 0x170   :  { %v4424_v57 = vpack.c.bf16 %v1281_v54, %v1279_v53  ;;  %v4444_v53 = vpack.c.bf16 %v1301_v46, %v1299_v51  ;;  %v1321_v51 = vld [vmem:[#allocation7 + $0x950] sm:$0xff] }
 0x171   :  { %4423 = vmatprep.subr.bf16.mxu0 %v4422_v56  ;;  %v1115_v56 = vld [vmem:[#allocation7 + $0x2e0] sm:$0xff] }
 0x172   :  { %4201 = vmatpush1.bf16.msra.mxu1 %v4200_v6  ;;  %v1095_v6 = vld [vmem:[#allocation7 + $0x240] sm:$0xff]  ;;  %4425 = vmatpush1.bf16.msra.mxu0 %v4424_v57  ;;  %v1117_v57 = vld [vmem:[#allocation7 + $0x2f0] sm:$0xff] }
 0x173   :  { %4203 = vmatprep.subr.bf16.mxu1 %v4202_v8  ;;  %v1097_v8 = vld [vmem:[#allocation7 + $0x250] sm:$0xff] }
 0x174   :  { %v4240_v1 = vpack.c.bf16 %v1097_v8, %v1095_v6  ;;  %v1120_v6 = vld [vmem:[#allocation7 + $0x308] sm:$0xff]  ;;  %v1122_v8 = vld [vmem:[#allocation7 + $0x318] sm:$0xff] }
 0x176   :  { %4205 = vmatpush1.bf16.msra.mxu1 %v4204_v62  ;;  %v1286_v62 = vld [vmem:[#allocation7 + $0x838] sm:$0xff] }
 0x177   :  { %4207 = vmatprep.subr.bf16.mxu1 %v4206_v16  ;;  %v1283_v16 = vld [vmem:[#allocation7 + $0x820] sm:$0xff]  ;;  %v4426_v58 = vpack.c.bf16 %v1286_v62, %v1284_v61  ;;  %v1305_v61 = vld [vmem:[#allocation7 + $0x8d0] sm:$0xff] }
 0x178   :  { %v4428_v0 = vpack.c.bf16 %v1285_v63, %v1283_v16  ;;  %v4448_v16 = vpack.c.bf16 %v1305_v61, %v1303_v59  ;;  %v4260_v63 = vpack.c.bf16 %v1117_v57, %v1115_v56  ;;  %v1137_v56 = vld [vmem:[#allocation7 + $0x390] sm:$0xff] }
 0x179   :  { %4427 = vmatprep.subr.bf16.mxu0 %v4426_v58  ;;  %v1119_v58 = vld [vmem:[#allocation7 + $0x300] sm:$0xff]  ;;  %v1325_v59 = vld [vmem:[#allocation7 + $0x970] sm:$0xff] }
 0x17a   :  { %4209 = vmatpush1.bf16.msra.mxu1 %v4208_v11  ;;  %v1099_v11 = vld [vmem:[#allocation7 + $0x260] sm:$0xff]  ;;  %4429 = vmatpush1.bf16.msra.mxu0 %v4428_v0  ;;  %v1121_v0 = vld [vmem:[#allocation7 + $0x310] sm:$0xff] }
 0x17b   :  { %4211 = vmatprep.subr.bf16.mxu1 %v4210_v12  ;;  %v1101_v12 = vld [vmem:[#allocation7 + $0x270] sm:$0xff] }
 0x17c   :  { %v4244_v17 = vpack.c.bf16 %v1101_v12, %v1099_v11  ;;  %v1124_v11 = vld [vmem:[#allocation7 + $0x328] sm:$0xff]  ;;  %v1126_v12 = vld [vmem:[#allocation7 + $0x338] sm:$0xff] }
 0x17e   :  { %4213 = vmatpush1.bf16.msra.mxu1 %v4212_v14  ;;  %v1290_v14 = vld [vmem:[#allocation7 + $0x858] sm:$0xff] }
 0x17f   :  { %4215 = vmatprep.subr.bf16.mxu1 %v4214_v13  ;;  %v1287_v13 = vld [vmem:[#allocation7 + $0x840] sm:$0xff]  ;;  %v4430_v21 = vpack.c.bf16 %v1290_v14, %v1288_v18  ;;  %v1309_v18 = vld [vmem:[#allocation7 + $0x8f0] sm:$0xff] }
 0x180   :  { %v4432_v23 = vpack.c.bf16 %v1289_v20, %v1287_v13  ;;  %v4452_v13 = vpack.c.bf16 %v1309_v18, %v1307_v4  ;;  %v4264_v20 = vpack.c.bf16 %v1121_v0, %v1119_v58  ;;  %v1141_v58 = vld [vmem:[#allocation7 + $0x3b0] sm:$0xff] }
 0x181   :  { %4431 = vmatprep.subr.bf16.mxu0 %v4430_v21  ;;  %v1123_v21 = vld [vmem:[#allocation7 + $0x320] sm:$0xff]  ;;  %v1329_v4 = vld [vmem:[#allocation7 + $0x990] sm:$0xff] }
 0x182   :  { %4217 = vmatpush1.bf16.msra.mxu1 %v4216_v3  ;;  %v1103_v3 = vld [vmem:[#allocation7 + $0x280] sm:$0xff]  ;;  %4433 = vmatpush1.bf16.msra.mxu0 %v4432_v23  ;;  %v1125_v23 = vld [vmem:[#allocation7 + $0x330] sm:$0xff] }
 0x183   :  { %4219 = vmatprep.subr.bf16.mxu1 %v4218_v24  ;;  %v1105_v24 = vld [vmem:[#allocation7 + $0x290] sm:$0xff] }
 0x184   :  { %v4248_v33 = vpack.c.bf16 %v1105_v24, %v1103_v3  ;;  %v1128_v3 = vld [vmem:[#allocation7 + $0x348] sm:$0xff]  ;;  %v1130_v24 = vld [vmem:[#allocation7 + $0x358] sm:$0xff] }
 0x186   :  { %4221 = vmatpush1.bf16.msra.mxu1 %v4220_v29  ;;  %v1294_v29 = vld [vmem:[#allocation7 + $0x878] sm:$0xff] }
 0x187   :  { %4223 = vmatprep.subr.bf16.mxu1 %v4222_v30  ;;  %v1291_v30 = vld [vmem:[#allocation7 + $0x860] sm:$0xff]  ;;  %v4434_v19 = vpack.c.bf16 %v1294_v29, %v1292_v28  ;;  %v1313_v28 = vld [vmem:[#allocation7 + $0x910] sm:$0xff] }
 0x188   :  { %v4436_v32 = vpack.c.bf16 %v1293_v22, %v1291_v30  ;;  %v4456_v30 = vpack.c.bf16 %v1313_v28, %v1311_v26  ;;  %v4268_v22 = vpack.c.bf16 %v1125_v23, %v1123_v21  ;;  %v1145_v21 = vld [vmem:[#allocation7 + $0x3d0] sm:$0xff] }
 0x189   :  { %4435 = vmatprep.subr.bf16.mxu0 %v4434_v19  ;;  %v1127_v19 = vld [vmem:[#allocation7 + $0x340] sm:$0xff]  ;;  %v1333_v26 = vld [vmem:[#allocation7 + $0x9b0] sm:$0xff] }
 0x18a   :  { %4225 = vmatpush1.bf16.msra.mxu1 %v4224_v27  ;;  %v1107_v27 = vld [vmem:[#allocation7 + $0x2a0] sm:$0xff]  ;;  %4437 = vmatpush1.bf16.msra.mxu0 %v4436_v32  ;;  %v1129_v32 = vld [vmem:[#allocation7 + $0x350] sm:$0xff] }
 0x18b   :  { %4227 = vmatprep.subr.bf16.mxu1 %v4226_v9  ;;  %v1109_v9 = vld [vmem:[#allocation7 + $0x2b0] sm:$0xff] }
 0x18c   :  { %v4252_v42 = vpack.c.bf16 %v1109_v9, %v1107_v27  ;;  %v1132_v27 = vld [vmem:[#allocation7 + $0x368] sm:$0xff]  ;;  %v1134_v9 = vld [vmem:[#allocation7 + $0x378] sm:$0xff] }
 0x18e   :  { %4229 = vmatpush1.bf16.msra.mxu1 %v4228_v38  ;;  %v1298_v38 = vld [vmem:[#allocation7 + $0x898] sm:$0xff] }
 0x18f   :  { %4231 = vmatprep.subr.bf16.mxu1 %v4230_v39  ;;  %v1295_v39 = vld [vmem:[#allocation7 + $0x880] sm:$0xff]  ;;  %v4438_v41 = vpack.c.bf16 %v1298_v38, %v1296_v31  ;;  %v1318_v31 = vld [vmem:[#allocation7 + $0x938] sm:$0xff] }
 0x190   :  { %v4440_v34 = vpack.c.bf16 %v1297_v40, %v1295_v39  ;;  %v1315_v38 = vld [vmem:[#allocation7 + $0x920] sm:$0xff]  ;;  %v1317_v39 = vld [vmem:[#allocation7 + $0x930] sm:$0xff]  ;;  %v4458_v40 = vpack.c.bf16 %v1318_v31, %v1316_v36  ;;  %v1338_v36 = vld [vmem:[#allocation7 + $0x9d8] sm:$0xff] }
 0x191   :  { %4439 = vmatprep.subr.bf16.mxu0 %v4438_v41  ;;  %v4460_v41 = vpack.c.bf16 %v1317_v39, %v1315_v38  ;;  %v1337_v31 = vld [vmem:[#allocation7 + $0x9d0] sm:$0xff] }
 0x192   :  { %4441 = vmatpush1.bf16.msra.mxu0 %v4440_v34  ;;  %v4272_v34 = vpack.c.bf16 %v1129_v32, %v1127_v19  ;;  %v1149_v19 = vld [vmem:[#allocation7 + $0x3f0] sm:$0xff] }
 0x1b7   :  { %v734_v44 = vpop.f32.mrb[0].mxu0 }
 0x1b8   :  { %v736_v48 = vpop.f32.mrb[1].mxu0 }
 0x1b9   :  { %1421 = vmatprep.mubr.f32.mxu1 %v736_v48  ;;  %v1118_v48 = vld [vmem:[#allocation7 + $0x2f8] sm:$0xff] }
 0x1ba   :  { %1422 = vmatmul.mubr.f32.vlgmr.msra.gmra.mrb[4].mxu1 %v734_v44  ;;  %v1111_v44 = vld [vmem:[#allocation7 + $0x2c0] sm:$0xff] }
 0x1bb   :  { %4233 = vmatpush1.bf16.msra.mxu1 %v4232_v45  ;;  %v1113_v45 = vld [vmem:[#allocation7 + $0x2d0] sm:$0xff] }
 0x1bc   :  { %4235 = vmatprep.subr.bf16.mxu1 %v4234_v49  ;;  %v1300_v49 = vld [vmem:[#allocation7 + $0x8a8] sm:$0xff]  ;;  %v4256_v54 = vpack.c.bf16 %v1113_v45, %v1111_v44  ;;  %v1133_v44 = vld [vmem:[#allocation7 + $0x370] sm:$0xff]  ;;  %v4274_v45 = vpack.c.bf16 %v1134_v9, %v1132_v27  ;;  %v1154_v27 = vld [vmem:[#allocation7 + $0x418] sm:$0xff] }
 0x1bd   :  { %v4442_v52 = vpack.c.bf16 %v1302_v50, %v1300_v49  ;;  %v1322_v49 = vld [vmem:[#allocation7 + $0x958] sm:$0xff]  ;;  %v1319_v50 = vld [vmem:[#allocation7 + $0x940] sm:$0xff]  ;;  %v1336_v9 = vld [vmem:[#allocation7 + $0x9c8] sm:$0xff] }
 0x1be   :  { %v4478_v38 = vpack.c.bf16 %v1338_v36, %v1336_v9  ;;  %v1185_v9 = vld [vmem:[#allocation7 + $0x510] sm:$0xff]  ;;  %v1188_v36 = vld [vmem:[#allocation7 + $0x528] sm:$0xff] }
 0x1bf   :  { %4237 = vmatpush1.bf16.msra.mxu1 %v4236_v7  ;;  %v4258_v7 = vpack.c.bf16 %v1118_v48, %v1116_v43  ;;  %4443 = vmatprep.subr.bf16.mxu0 %v4442_v52  ;;  %v1138_v43 = vld [vmem:[#allocation7 + $0x398] sm:$0xff]  ;;  %v1320_v48 = vld [vmem:[#allocation7 + $0x948] sm:$0xff]  ;;  %v4464_v52 = vpack.c.bf16 %v1321_v51, %v1319_v50  ;;  %v1155_v50 = vld [vmem:[#allocation7 + $0x420] sm:$0xff] }
 0x1c0   :  { %4239 = vmatprep.subr.bf16.mxu1 %v4238_v55  ;;  %v1304_v55 = vld [vmem:[#allocation7 + $0x8c8] sm:$0xff]  ;;  %4445 = vmatpush1.bf16.msra.mxu0 %v4444_v53  ;;  %v4462_v46 = vpack.c.bf16 %v1322_v49, %v1320_v48  ;;  %v1339_v48 = vld [vmem:[#allocation7 + $0x9e0] sm:$0x7f]  ;;  %v1157_v51 = vld [vmem:[#allocation7 + $0x430] sm:$0xff] }
 0x1c1   :  { %v4446_v62 = vpack.c.bf16 %v1306_v60, %v1304_v55  ;;  %v1326_v55 = vld [vmem:[#allocation7 + $0x978] sm:$0xff]  ;;  %v1323_v60 = vld [vmem:[#allocation7 + $0x960] sm:$0xff] }
 0x1c3   :  { %4241 = vmatpush1.bf16.msra.mxu1 %v4240_v1  ;;  %v4262_v1 = vpack.c.bf16 %v1122_v8, %v1120_v6  ;;  %4447 = vmatprep.subr.bf16.mxu0 %v4446_v62  ;;  %v1142_v6 = vld [vmem:[#allocation7 + $0x3b8] sm:$0xff]  ;;  %v1324_v8 = vld [vmem:[#allocation7 + $0x968] sm:$0xff]  ;;  %v4468_v62 = vpack.c.bf16 %v1325_v59, %v1323_v60  ;;  %v1163_v59 = vld [vmem:[#allocation7 + $0x460] sm:$0xff] }
 0x1c4   :  { %4243 = vmatprep.subr.bf16.mxu1 %v4242_v15  ;;  %v1308_v15 = vld [vmem:[#allocation7 + $0x8e8] sm:$0xff]  ;;  %4449 = vmatpush1.bf16.msra.mxu0 %v4448_v16  ;;  %v4466_v61 = vpack.c.bf16 %v1326_v55, %v1324_v8  ;;  %v1166_v55 = vld [vmem:[#allocation7 + $0x478] sm:$0xff] }
 0x1c5   :  { %v4450_v14 = vpack.c.bf16 %v1310_v5, %v1308_v15  ;;  %v1330_v15 = vld [vmem:[#allocation7 + $0x998] sm:$0xff]  ;;  %v1327_v5 = vld [vmem:[#allocation7 + $0x980] sm:$0xff]  ;;  %v1164_v8 = vld [vmem:[#allocation7 + $0x468] sm:$0xff] }
 0x1c6   :  { %v4306_v60 = vpack.c.bf16 %v1166_v55, %v1164_v8  ;;  %v1204_v8 = vld [vmem:[#allocation7 + $0x5a8] sm:$0xff]  ;;  %v1206_v55 = vld [vmem:[#allocation7 + $0x5b8] sm:$0xff] }
 0x1c7   :  { %4245 = vmatpush1.bf16.msra.mxu1 %v4244_v17  ;;  %v4266_v17 = vpack.c.bf16 %v1126_v12, %v1124_v11  ;;  %4451 = vmatprep.subr.bf16.mxu0 %v4450_v14  ;;  %v1146_v11 = vld [vmem:[#allocation7 + $0x3d8] sm:$0xff]  ;;  %v1328_v12 = vld [vmem:[#allocation7 + $0x988] sm:$0xff]  ;;  %v4472_v14 = vpack.c.bf16 %v1329_v4, %v1327_v5 }
 0x1c8   :  { %4247 = vmatprep.subr.bf16.mxu1 %v4246_v25  ;;  %v1312_v25 = vld [vmem:[#allocation7 + $0x908] sm:$0xff]  ;;  %4453 = vmatpush1.bf16.msra.mxu0 %v4452_v13  ;;  %v4470_v18 = vpack.c.bf16 %v1330_v15, %v1328_v12  ;;  %v1169_v12 = vld [vmem:[#allocation7 + $0x490] sm:$0xff]  ;;  %v1174_v5 = vld [vmem:[#allocation7 + $0x4b8] sm:$0xff] }
 0x1c9   :  { %v4454_v29 = vpack.c.bf16 %v1314_v2, %v1312_v25  ;;  %v1334_v25 = vld [vmem:[#allocation7 + $0x9b8] sm:$0xff]  ;;  %v1331_v2 = vld [vmem:[#allocation7 + $0x9a0] sm:$0xff]  ;;  %v1172_v15 = vld [vmem:[#allocation7 + $0x4a8] sm:$0xff] }
 0x1cb   :  { %4249 = vmatpush1.bf16.msra.mxu1 %v4248_v33  ;;  %v4270_v33 = vpack.c.bf16 %v1130_v24, %v1128_v3  ;;  %4455 = vmatprep.subr.bf16.mxu0 %v4454_v29  ;;  %v1150_v3 = vld [vmem:[#allocation7 + $0x3f8] sm:$0xff]  ;;  %v1332_v24 = vld [vmem:[#allocation7 + $0x9a8] sm:$0xff]  ;;  %v4476_v29 = vpack.c.bf16 %v1333_v26, %v1331_v2 }
 0x1cc   :  { %4251 = vmatprep.subr.bf16.mxu1 %v4250_v35  ;;  %4457 = vmatpush1.bf16.msra.mxu0 %v4456_v30  ;;  %v4474_v28 = vpack.c.bf16 %v1334_v25, %v1332_v24  ;;  %v1177_v24 = vld [vmem:[#allocation7 + $0x4d0] sm:$0xff]  ;;  %v1180_v25 = vld [vmem:[#allocation7 + $0x4e8] sm:$0xff]  ;;  %v1182_v2 = vld [vmem:[#allocation7 + $0x4f8] sm:$0xff] }
 0x1cd   :  { %4459 = vmatprep.subr.bf16.mxu0 %v4458_v40 }
 0x1cf   :  { %4253 = vmatpush1.bf16.msra.mxu1 %v4252_v42  ;;  %v1131_v42 = vld [vmem:[#allocation7 + $0x360] sm:$0xff] }
 0x1d0   :  { %4255 = vmatprep.subr.bf16.mxu1 %v4254_v47  ;;  %v1136_v47 = vld [vmem:[#allocation7 + $0x388] sm:$0xff]  ;;  %4461 = vmatpush1.bf16.msra.mxu0 %v4460_v41  ;;  %v4276_v53 = vpack.c.bf16 %v1133_v44, %v1131_v42  ;;  %v1153_v42 = vld [vmem:[#allocation7 + $0x410] sm:$0xff] }
 0x1d1   :  { %v4278_v57 = vpack.c.bf16 %v1138_v43, %v1136_v47  ;;  %4463 = vmatprep.subr.bf16.mxu0 %v4462_v46  ;;  %v1156_v44 = vld [vmem:[#allocation7 + $0x428] sm:$0xff] }
 0x1d2   :  { %v1340_v47 = vld [vmem:[#allocation7 + $0x9e8] sm:$0x7f] }
 0x1d3   :  { %4257 = vmatpush1.bf16.msra.mxu1 %v4256_v54  ;;  %v1135_v54 = vld [vmem:[#allocation7 + $0x380] sm:$0xff]  ;;  %v1160_v46 = vld [vmem:[#allocation7 + $0x448] sm:$0xff] }
 0x1d4   :  { %4259 = vmatprep.subr.bf16.mxu1 %v4258_v7  ;;  %v1140_v7 = vld [vmem:[#allocation7 + $0x3a8] sm:$0xff]  ;;  %4465 = vmatpush1.bf16.msra.mxu0 %v4464_v52  ;;  %v4280_v16 = vpack.c.bf16 %v1137_v56, %v1135_v54  ;;  %v1162_v52 = vld [vmem:[#allocation7 + $0x458] sm:$0xff]  ;;  %v4300_v54 = vpack.c.bf16 %v1157_v51, %v1155_v50  ;;  %v4724_v56 = vmov 0   ;;  %v1195_v51 = vld [vmem:[#allocation7 + $0x560] sm:$0xff] }
 0x1d5   :  { %v4282_v0 = vpack.c.bf16 %v1142_v6, %v1140_v7  ;;  %4467 = vmatprep.subr.bf16.mxu0 %v4466_v61  ;;  %4615 = vset.pattern.permute.xlu0 %v4724_v56  ;;  %v1159_v7 = vld [vmem:[#allocation7 + $0x440] sm:$0xff]  ;;  %v1161_v6 = vld [vmem:[#allocation7 + $0x450] sm:$0xff] }
 0x1d6   :  { %4616 = vset.pattern.permute.xlu1 %v4724_v56  ;;  %v1165_v61 = vld [vmem:[#allocation7 + $0x470] sm:$0xff] }
 0x1d7   :  { %4261 = vmatpush1.bf16.msra.mxu1 %v4260_v63  ;;  %v1139_v63 = vld [vmem:[#allocation7 + $0x3a0] sm:$0xff] }
 0x1d8   :  { %4263 = vmatprep.subr.bf16.mxu1 %v4262_v1  ;;  %v1144_v1 = vld [vmem:[#allocation7 + $0x3c8] sm:$0xff]  ;;  %4469 = vmatpush1.bf16.msra.mxu0 %v4468_v62  ;;  %v4284_v13 = vpack.c.bf16 %v1141_v58, %v1139_v63  ;;  %v1170_v63 = vld [vmem:[#allocation7 + $0x498] sm:$0xff] }
 0x1d9   :  { %v4286_v23 = vpack.c.bf16 %v1146_v11, %v1144_v1  ;;  %4471 = vmatprep.subr.bf16.mxu0 %v4470_v18  ;;  %v1167_v11 = vld [vmem:[#allocation7 + $0x480] sm:$0xff]  ;;  %v4314_v18 = vpack.c.bf16 %v1174_v5, %v1172_v15  ;;  %v1212_v15 = vld [vmem:[#allocation7 + $0x5e8] sm:$0xff]  ;;  %v1214_v5 = vld [vmem:[#allocation7 + $0x5f8] sm:$0xff] }
 0x1da   :  { %v4312_v4 = vpack.c.bf16 %v1169_v12, %v1167_v11  ;;  %v1207_v11 = vld [vmem:[#allocation7 + $0x5c0] sm:$0xff]  ;;  %v1209_v12 = vld [vmem:[#allocation7 + $0x5d0] sm:$0xff] }
 0x1db   :  { %4265 = vmatpush1.bf16.msra.mxu1 %v4264_v20  ;;  %v1143_v20 = vld [vmem:[#allocation7 + $0x3c0] sm:$0xff] }
 0x1dc   :  { %4267 = vmatprep.subr.bf16.mxu1 %v4266_v17  ;;  %v5250_v35 = vpop.f32.mrb[0].mxu1  ;;  %v1148_v17 = vld [vmem:[#allocation7 + $0x3e8] sm:$0xff]  ;;  %4473 = vmatpush1.bf16.msra.mxu0 %v4472_v14  ;;  %v4288_v30 = vpack.c.bf16 %v1145_v21, %v1143_v20  ;;  %v1171_v14 = vld [vmem:[#allocation7 + $0x4a0] sm:$0xff]  ;;  %v1178_v21 = vld [vmem:[#allocation7 + $0x4d8] sm:$0xff] }
 0x1dd   :  { %v807_v37 = vpop.f32.mrb[1].mxu1  ;;  %v4290_v32 = vpack.c.bf16 %v1150_v3, %v1148_v17  ;;  %4475 = vmatprep.subr.bf16.mxu0 %v4474_v28  ;;  %v1176_v20 = vld [vmem:[#allocation7 + $0x4c8] sm:$0xff]  ;;  %v1175_v3 = vld [vmem:[#allocation7 + $0x4c0] sm:$0xff]  ;;  %v4322_v28 = vpack.c.bf16 %v1182_v2, %v1180_v25  ;;  %v1222_v2 = vld [vmem:[#allocation7 + $0x638] sm:$0xff] }
 0x1de   :  { %1492 = vmatprep.mubr.f32.mxu1 %v807_v37  ;;  %v1335_v37 = vld [vmem:[#allocation7 + $0x9c0] sm:$0xff]  ;;  %v4318_v17 = vpack.c.bf16 %v1178_v21, %v1176_v20  ;;  %v4320_v26 = vpack.c.bf16 %v1177_v24, %v1175_v3  ;;  %v1216_v20 = vld [vmem:[#allocation7 + $0x608] sm:$0xff]  ;;  %v1218_v21 = vld [vmem:[#allocation7 + $0x618] sm:$0xff] }
 0x1df   :  { %4269 = vmatpush1.bf16.msra.mxu1 %v4268_v22  ;;  %v1147_v22 = vld [vmem:[#allocation7 + $0x3e0] sm:$0xff]  ;;  %v4480_v39 = vpack.c.bf16 %v1337_v31, %v1335_v37  ;;  %v1190_v37 = vld [vmem:[#allocation7 + $0x538] sm:$0xff]  ;;  %v1217_v24 = vld [vmem:[#allocation7 + $0x610] sm:$0xff] }
 0x1e0   :  { %4271 = vmatprep.subr.bf16.mxu1 %v4270_v33  ;;  %v1152_v33 = vld [vmem:[#allocation7 + $0x408] sm:$0xff]  ;;  %4477 = vmatpush1.bf16.msra.mxu0 %v4476_v29  ;;  %v4292_v40 = vpack.c.bf16 %v1149_v19, %v1147_v22  ;;  %v1179_v29 = vld [vmem:[#allocation7 + $0x4e0] sm:$0xff]  ;;  %v1186_v19 = vld [vmem:[#allocation7 + $0x518] sm:$0xff] }
 0x1e1   :  { %v4294_v41 = vpack.c.bf16 %v1154_v27, %v1152_v33  ;;  %4479 = vmatprep.subr.bf16.mxu0 %v4478_v38  ;;  %v1184_v22 = vld [vmem:[#allocation7 + $0x508] sm:$0xff]  ;;  %v1183_v27 = vld [vmem:[#allocation7 + $0x500] sm:$0xff]  ;;  %v4330_v38 = vpack.c.bf16 %v1190_v37, %v1188_v36  ;;  %v1225_v36 = vld [vmem:[#allocation7 + $0x650] sm:$0xff] }
 0x1e2   :  { %v4326_v33 = vpack.c.bf16 %v1186_v19, %v1184_v22  ;;  %v4328_v31 = vpack.c.bf16 %v1185_v9, %v1183_v27  ;;  %v1215_v3 = vld [vmem:[#allocation7 + $0x600] sm:$0xff]  ;;  %v1220_v25 = vld [vmem:[#allocation7 + $0x628] sm:$0xff]  ;;  %v1226_v19 = vld [vmem:[#allocation7 + $0x658] sm:$0xff] }
 0x1e3   :  { %4273 = vmatpush1.bf16.msra.mxu1 %v4272_v34  ;;  %v1151_v34 = vld [vmem:[#allocation7 + $0x400] sm:$0xff]  ;;  %v1224_v22 = vld [vmem:[#allocation7 + $0x648] sm:$0xff] }
 0x1e4   :  { %4275 = vmatprep.subr.bf16.mxu1 %v4274_v45  ;;  %v1158_v45 = vld [vmem:[#allocation7 + $0x438] sm:$0xff]  ;;  %4481 = vmatpush1.bf16.msra.mxu0 %v4480_v39  ;;  %v4296_v43 = vpack.c.bf16 %v1153_v42, %v1151_v34  ;;  %v1187_v39 = vld [vmem:[#allocation7 + $0x520] sm:$0xff]  ;;  %v4366_v27 = vpack.c.bf16 %v1226_v19, %v1224_v22  ;;  %v1264_v22 = vld [vmem:[#allocation7 + $0x788] sm:$0xff] }
 0x1e5   :  { %3813 = vmatprep.subr.msk.mxu0 %vm1350_vm10, %v1340_v47  ;;  %v4298_v49 = vpack.c.bf16 %v1158_v45, %v1156_v44  ;;  %v1194_v34 = vld [vmem:[#allocation7 + $0x558] sm:$0xff]  ;;  %v1191_v45 = vld [vmem:[#allocation7 + $0x540] sm:$0xff]  ;;  %v1193_v47 = vld [vmem:[#allocation7 + $0x550] sm:$0xff] }
 0x1e6   :  { %v1223_v9 = vld [vmem:[#allocation7 + $0x640] sm:$0xff]  ;;  %v1266_v19 = vld [vmem:[#allocation7 + $0x798] sm:$0xff] }
 0x1e7   :  { %4277 = vmatpush1.bf16.msra.mxu1 %v4276_v53  ;;  %v1341_v53 = vld [vmem:[%s5652_s4] sm:$0xff] }
 0x1e8   :  { %4279 = vmatprep.subr.bf16.mxu1 %v4278_v57  ;;  %3814 = vmatpush1.msk.msra.mxu0 %vm1350_vm10, %v1339_v48  ;;  %v4302_v57 = vpack.c.bf16 %v1162_v52, %v1160_v46  ;;  %v1198_v48 = vld [vmem:[#allocation7 + $0x578] sm:$0xff]  ;;  %v1197_v46 = vld [vmem:[#allocation7 + $0x570] sm:$0xff]  ;;  %v1200_v52 = vld [vmem:[#allocation7 + $0x588] sm:$0xff] }
 0x1e9   :  { %3922 = vmatprep.subr.mxu0 %v4723_v10  ;;  %1344 = vperm.xlu0 %4615, %v1341_v53   ;;  %v1202_v53 = vld [vmem:[#allocation7 + $0x598] sm:$0xff] }
 0x1ea   :  { %v4342_v56 = vpack.c.bf16 %v1202_v53, %v1200_v52  ;;  %v1237_v52 = vld [vmem:[#allocation7 + $0x6b0] sm:$0xff]  ;;  %v1240_v53 = vld [vmem:[#allocation7 + $0x6c8] sm:$0xff] }
 0x1eb   :  { %4281 = vmatpush1.bf16.msra.mxu1 %v4280_v16  ;;  %v1168_v16 = vld [vmem:[#allocation7 + $0x488] sm:$0xff] }
 0x1ec   :  { %4283 = vmatprep.subr.bf16.mxu1 %v4282_v0  ;;  %v4308_v0 = vpack.c.bf16 %v1165_v61, %v1163_v59  ;;  %v4310_v1 = vpack.c.bf16 %v1170_v63, %v1168_v16  ;;  %v4346_v59 = vpack.c.bf16 %v1206_v55, %v1204_v8  ;;  %v1203_v61 = vld [vmem:[#allocation7 + $0x5a0] sm:$0xff]  ;;  %v1205_v16 = vld [vmem:[#allocation7 + $0x5b0] sm:$0xff]  ;;  %v1208_v63 = vld [vmem:[#allocation7 + $0x5c8] sm:$0xff] }
 0x1ed   :  { %v1241_v8 = vld [vmem:[#allocation7 + $0x6d0] sm:$0xff]  ;;  %v1244_v55 = vld [vmem:[#allocation7 + $0x6e8] sm:$0xff] }
 0x1ef   :  { %4285 = vmatpush1.bf16.msra.mxu1 %v4284_v13  ;;  %v1173_v13 = vld [vmem:[#allocation7 + $0x4b0] sm:$0xff] }
 0x1f0   :  { %4287 = vmatprep.subr.bf16.mxu1 %v4286_v23  ;;  %v4316_v23 = vpack.c.bf16 %v1173_v13, %v1171_v14  ;;  %v1211_v14 = vld [vmem:[#allocation7 + $0x5e0] sm:$0xff]  ;;  %v1213_v13 = vld [vmem:[#allocation7 + $0x5f0] sm:$0xff] }
 0x1f3   :  { %4289 = vmatpush1.bf16.msra.mxu1 %v4288_v30  ;;  %v1181_v30 = vld [vmem:[#allocation7 + $0x4f0] sm:$0xff] }
 0x1f4   :  { %4291 = vmatprep.subr.bf16.mxu1 %v4290_v32  ;;  %v4324_v32 = vpack.c.bf16 %v1181_v30, %v1179_v29  ;;  %v1219_v29 = vld [vmem:[#allocation7 + $0x620] sm:$0xff]  ;;  %v1221_v30 = vld [vmem:[#allocation7 + $0x630] sm:$0xff] }
 0x1f7   :  { %4293 = vmatpush1.bf16.msra.mxu1 %v4292_v40  ;;  %v1189_v40 = vld [vmem:[#allocation7 + $0x530] sm:$0xff] }
 0x1f8   :  { %4295 = vmatprep.subr.bf16.mxu1 %v4294_v41  ;;  %v1192_v41 = vld [vmem:[#allocation7 + $0x548] sm:$0xff]  ;;  %v4332_v42 = vpack.c.bf16 %v1189_v40, %v1187_v39  ;;  %v4368_v39 = vpack.c.bf16 %v1225_v36, %v1223_v9  ;;  %v1265_v9 = vld [vmem:[#allocation7 + $0x790] sm:$0xff] }
 0x1f9   :  { %v4334_v44 = vpack.c.bf16 %v1194_v34, %v1192_v41  ;;  %v1227_v41 = vld [vmem:[#allocation7 + $0x660] sm:$0xff]  ;;  %v1232_v34 = vld [vmem:[#allocation7 + $0x688] sm:$0xff] }
 0x1fa   :  { %1493 = vmatmul.mubr.f32.vlgmr.msra.gmra.mrb[4].mxu1 %v5250_v35  ;;  %v4304_v35 = vpack.c.bf16 %v1161_v6, %v1159_v7  ;;  %v1201_v7 = vld [vmem:[#allocation7 + $0x590] sm:$0xff]  ;;  %v1268_v36 = vld [vmem:[#allocation7 + $0x7a8] sm:$0xff] }
 0x1fb   :  { %4297 = vmatpush1.bf16.msra.mxu1 %v4296_v43  ;;  %v1196_v43 = vld [vmem:[#allocation7 + $0x568] sm:$0xff] }
 0x1fc   :  { %4299 = vmatprep.subr.bf16.mxu1 %v4298_v49  ;;  %v4336_v49 = vpack.c.bf16 %v1193_v47, %v1191_v45  ;;  %v4338_v50 = vpack.c.bf16 %v1198_v48, %v1196_v43  ;;  %v1231_v47 = vld [vmem:[#allocation7 + $0x680] sm:$0xff]  ;;  %v1233_v43 = vld [vmem:[#allocation7 + $0x690] sm:$0xff]  ;;  %v1236_v48 = vld [vmem:[#allocation7 + $0x6a8] sm:$0xff] }
 0x1ff   :  { %4301 = vmatpush1.bf16.msra.mxu1 %v4300_v54  ;;  %v4340_v54 = vpack.c.bf16 %v1197_v46, %v1195_v51  ;;  %v1235_v46 = vld [vmem:[#allocation7 + $0x6a0] sm:$0xff] }
 0x200   :  { %4303 = vmatprep.subr.bf16.mxu1 %v4302_v57  ;;  %v5259_v62 = vpop.f32.mrb[2].mxu0  ;;  %v1199_v57 = vld [vmem:[#allocation7 + $0x580] sm:$0xff] }
 0x201   :  { %v878_v58 = vpop.f32.mrb[3].mxu0 }
 0x202   :  { %1563 = vmatprep.mubr.f32.mxu1 %v878_v58  ;;  %v1210_v58 = vld [vmem:[#allocation7 + $0x5d8] sm:$0xff] }
 0x203   :  { %4305 = vmatpush1.bf16.msra.mxu1 %v4304_v35 }
 0x204   :  { %4307 = vmatprep.subr.bf16.mxu1 %v4306_v60  ;;  %v4344_v60 = vpack.c.bf16 %v1201_v7, %v1199_v57  ;;  %v1239_v7 = vld [vmem:[#allocation7 + $0x6c0] sm:$0xff] }
 0x207   :  { %4309 = vmatpush1.bf16.msra.mxu1 %v4308_v0  ;;  %v4348_v0 = vpack.c.bf16 %v1205_v16, %v1203_v61  ;;  %v1243_v61 = vld [vmem:[#allocation7 + $0x6e0] sm:$0xff]  ;;  %v1245_v16 = vld [vmem:[#allocation7 + $0x6f0] sm:$0xff] }
 0x208   :  { %4311 = vmatprep.subr.bf16.mxu1 %v4310_v1  ;;  %v4350_v1 = vpack.c.bf16 %v1210_v58, %v1208_v63  ;;  %v1248_v63 = vld [vmem:[#allocation7 + $0x708] sm:$0xff]  ;;  %v1250_v58 = vld [vmem:[#allocation7 + $0x718] sm:$0xff] }
 0x20b   :  { %4313 = vmatpush1.bf16.msra.mxu1 %v4312_v4  ;;  %v4352_v4 = vpack.c.bf16 %v1209_v12, %v1207_v11  ;;  %v1247_v11 = vld [vmem:[#allocation7 + $0x700] sm:$0xff]  ;;  %v1249_v12 = vld [vmem:[#allocation7 + $0x710] sm:$0xff] }
 0x20c   :  { %4315 = vmatprep.subr.bf16.mxu1 %v4314_v18  ;;  %v4354_v18 = vpack.c.bf16 %v1214_v5, %v1212_v15  ;;  %v1252_v15 = vld [vmem:[#allocation7 + $0x728] sm:$0xff]  ;;  %v1254_v5 = vld [vmem:[#allocation7 + $0x738] sm:$0xff] }
 0x20f   :  { %4317 = vmatpush1.bf16.msra.mxu1 %v4316_v23  ;;  %v4356_v23 = vpack.c.bf16 %v1213_v13, %v1211_v14  ;;  %v1251_v14 = vld [vmem:[#allocation7 + $0x720] sm:$0xff]  ;;  %v1253_v13 = vld [vmem:[#allocation7 + $0x730] sm:$0xff] }
 0x210   :  { %4319 = vmatprep.subr.bf16.mxu1 %v4318_v17  ;;  %v4358_v17 = vpack.c.bf16 %v1218_v21, %v1216_v20  ;;  %v1256_v20 = vld [vmem:[#allocation7 + $0x748] sm:$0xff]  ;;  %v1258_v21 = vld [vmem:[#allocation7 + $0x758] sm:$0xff] }
 0x213   :  { %4321 = vmatpush1.bf16.msra.mxu1 %v4320_v26  ;;  %v4360_v26 = vpack.c.bf16 %v1217_v24, %v1215_v3  ;;  %v1255_v3 = vld [vmem:[#allocation7 + $0x740] sm:$0xff]  ;;  %v1257_v24 = vld [vmem:[#allocation7 + $0x750] sm:$0xff] }
 0x214   :  { %4323 = vmatprep.subr.bf16.mxu1 %v4322_v28  ;;  %v4362_v28 = vpack.c.bf16 %v1222_v2, %v1220_v25  ;;  %v1260_v25 = vld [vmem:[#allocation7 + $0x768] sm:$0xff]  ;;  %v1262_v2 = vld [vmem:[#allocation7 + $0x778] sm:$0xff] }
 0x217   :  { %4325 = vmatpush1.bf16.msra.mxu1 %v4324_v32  ;;  %v4364_v32 = vpack.c.bf16 %v1221_v30, %v1219_v29  ;;  %v1259_v29 = vld [vmem:[#allocation7 + $0x760] sm:$0xff]  ;;  %v1261_v30 = vld [vmem:[#allocation7 + $0x770] sm:$0xff] }
 0x218   :  { %4327 = vmatprep.subr.bf16.mxu1 %v4326_v33 }
 0x21b   :  { %4329 = vmatpush1.bf16.msra.mxu1 %v4328_v31  ;;  %v1228_v31 = vld [vmem:[#allocation7 + $0x668] sm:$0xff] }
 0x21c   :  { %4331 = vmatprep.subr.bf16.mxu1 %v4330_v38  ;;  %v1230_v38 = vld [vmem:[#allocation7 + $0x678] sm:$0xff] }
 0x21d   :  { %v4370_v40 = vpack.c.bf16 %v1230_v38, %v1228_v31 }
 0x21f   :  { %4333 = vmatpush1.bf16.msra.mxu1 %v4332_v42  ;;  %v1234_v42 = vld [vmem:[#allocation7 + $0x698] sm:$0xff] }
 0x220   :  { %4335 = vmatprep.subr.bf16.mxu1 %v4334_v44  ;;  %v4374_v45 = vpack.c.bf16 %v1234_v42, %v1232_v34 }
 0x223   :  { %4337 = vmatpush1.bf16.msra.mxu1 %v4336_v49  ;;  %v1238_v49 = vld [vmem:[#allocation7 + $0x6b8] sm:$0xff] }
 0x224   :  { %4339 = vmatprep.subr.bf16.mxu1 %v4338_v50  ;;  %v5261_v6 = vpop.f32.mrb[2].mxu1  ;;  %v4376_v50 = vpack.c.bf16 %v1233_v43, %v1231_v47  ;;  %v4378_v51 = vpack.c.bf16 %v1238_v49, %v1236_v48  ;;  %v1276_v47 = vld [vmem:[#allocation7 + $0x7e8] sm:$0xff]  ;;  %v1278_v43 = vld [vmem:[#allocation7 + $0x7f8] sm:$0xff] }
 0x225   :  { %v949_v35 = vpop.f32.mrb[3].mxu1  ;;  %v4418_v49 = vpack.c.bf16 %v1278_v43, %v1276_v47 }
 0x227   :  { %4341 = vmatpush1.bf16.msra.mxu1 %v4340_v54  ;;  %v1242_v54 = vld [vmem:[#allocation7 + $0x6d8] sm:$0xff] }
 0x228   :  { %4343 = vmatprep.subr.bf16.mxu1 %v4342_v56  ;;  %v4380_v56 = vpack.c.bf16 %v1237_v52, %v1235_v46  ;;  %v4382_v57 = vpack.c.bf16 %v1242_v54, %v1240_v53 }
 0x22b   :  { %4345 = vmatpush1.bf16.msra.mxu1 %v4344_v60  ;;  %v4384_v60 = vpack.c.bf16 %v1241_v8, %v1239_v7 }
 0x22c   :  { %4347 = vmatprep.subr.bf16.mxu1 %v4346_v59 }
 0x22f   :  { %4349 = vmatpush1.bf16.msra.mxu1 %v4348_v0  ;;  %v4388_v0 = vpack.c.bf16 %v1245_v16, %v1243_v61 }
 0x230   :  { %4351 = vmatprep.subr.bf16.mxu1 %v4350_v1  ;;  %v4390_v1 = vpack.c.bf16 %v1250_v58, %v1248_v63 }
 0x233   :  { %4353 = vmatpush1.bf16.msra.mxu1 %v4352_v4  ;;  %v4392_v4 = vpack.c.bf16 %v1249_v12, %v1247_v11 }
 0x234   :  { %4355 = vmatprep.subr.bf16.mxu1 %v4354_v18  ;;  %v4394_v18 = vpack.c.bf16 %v1254_v5, %v1252_v15 }
 0x237   :  { %4357 = vmatpush1.bf16.msra.mxu1 %v4356_v23  ;;  %v4396_v23 = vpack.c.bf16 %v1253_v13, %v1251_v14 }
 0x238   :  { %4359 = vmatprep.subr.bf16.mxu1 %v4358_v17  ;;  %v4398_v17 = vpack.c.bf16 %v1258_v21, %v1256_v20 }
 0x23a   :  { %1564 = vmatmul.mubr.f32.vlgmr.msra.gmra.mrb[4].mxu1 %v5259_v62  ;;  %v1229_v62 = vld [vmem:[#allocation7 + $0x670] sm:$0xff] }
 0x23b   :  { %4361 = vmatpush1.bf16.msra.mxu1 %v4360_v26  ;;  %1634 = vmatprep.mubr.f32.mxu1 %v949_v35  ;;  %v1018_v33 = vpop.f32.mrb[4].mxu0  ;;  %v4372_v44 = vpack.c.bf16 %v1229_v62, %v1227_v41  ;;  %v1246_v35 = vld [vmem:[#allocation7 + $0x6f8] sm:$0xff]  ;;  %v4400_v26 = vpack.c.bf16 %v1257_v24, %v1255_v3  ;;  %v1272_v41 = vld [vmem:[#allocation7 + $0x7c8] sm:$0xff] }
 0x23c   :  { %4363 = vmatprep.subr.bf16.mxu1 %v4362_v28  ;;  %v1020_v37 = vpop.f32.mrb[5].mxu0  ;;  %v4386_v59 = vpack.c.bf16 %v1246_v35, %v1244_v55  ;;  %v4402_v28 = vpack.c.bf16 %v1262_v2, %v1260_v25  ;;  %v1274_v62 = vld [vmem:[#allocation7 + $0x7d8] sm:$0xff] }
 0x23d   :  { %3815 = vmatprep.mubr.msk.f32.mxu0 %vm102_vm0, %v1020_v37  ;;  %v1270_v37 = vld [vmem:[#allocation7 + $0x7b8] sm:$0xff]  ;;  %v4414_v42 = vpack.c.bf16 %v1274_v62, %v1272_v41  ;;  %vm2379_vm0 = vcmask 392192  }
 0x23e   :  { %1706 = vmatmul.mubr.f32.vlgmr.msra.gmra.mrb[6].mxu0 %v1018_v33  ;;  %v4406_v33 = vpack.c.bf16 %v1266_v19, %v1264_v22  ;;  %v4410_v38 = vpack.c.bf16 %v1270_v37, %v1268_v36 }
 0x23f   :  { %4365 = vmatpush1.bf16.msra.mxu1 %v4364_v32  ;;  %v4404_v32 = vpack.c.bf16 %v1261_v30, %v1259_v29  ;;  %3924 = vmatprep.mubr.msk.f32.mxu0 %vm4725_vm11, %v4723_v10 }
 0x240   :  { %4367 = vmatprep.subr.bf16.mxu1 %v4366_v27  ;;  %v1263_v27 = vld [vmem:[#allocation7 + $0x780] sm:$0xff] }
 0x241   :  { %v4408_v31 = vpack.c.bf16 %v1265_v9, %v1263_v27 }
 0x243   :  { %4369 = vmatpush1.bf16.msra.mxu1 %v4368_v39  ;;  %v1267_v39 = vld [vmem:[#allocation7 + $0x7a0] sm:$0xff] }
 0x244   :  { %4371 = vmatprep.subr.bf16.mxu1 %v4370_v40  ;;  %v1269_v40 = vld [vmem:[#allocation7 + $0x7b0] sm:$0xff] }
 0x245   :  { %v4412_v34 = vpack.c.bf16 %v1269_v40, %v1267_v39 }
 0x247   :  { %4373 = vmatpush1.bf16.msra.mxu1 %v4372_v44  ;;  %v1271_v44 = vld [vmem:[#allocation7 + $0x7c0] sm:$0xff] }
 0x248   :  { %4375 = vmatprep.subr.bf16.mxu1 %v4374_v45  ;;  %v1273_v45 = vld [vmem:[#allocation7 + $0x7d0] sm:$0xff] }
 0x249   :  { %v4416_v48 = vpack.c.bf16 %v1273_v45, %v1271_v44 }
 0x24b   :  { %4377 = vmatpush1.bf16.msra.mxu1 %v4376_v50  ;;  %v1275_v50 = vld [vmem:[#allocation7 + $0x7e0] sm:$0xff] }
 0x24c   :  { %4379 = vmatprep.subr.bf16.mxu1 %v4378_v51  ;;  %v1277_v51 = vld [vmem:[#allocation7 + $0x7f0] sm:$0xff] }
 0x24d   :  { %v4420_v46 = vpack.c.bf16 %v1277_v51, %v1275_v50 }
 0x24f   :  { %4381 = vmatpush1.bf16.msra.mxu1 %v4380_v56 }
 0x250   :  { %4383 = vmatprep.subr.bf16.mxu1 %v4382_v57 }
 0x253   :  { %4385 = vmatpush1.bf16.msra.mxu1 %v4384_v60 }
 0x254   :  { %4387 = vmatprep.subr.bf16.mxu1 %v4386_v59 }
 0x257   :  { %4389 = vmatpush1.bf16.msra.mxu1 %v4388_v0 }
 0x258   :  { %4391 = vmatprep.subr.bf16.mxu1 %v4390_v1 }
 0x25b   :  { %4393 = vmatpush1.bf16.msra.mxu1 %v4392_v4 }
 0x25c   :  { %4395 = vmatprep.subr.bf16.mxu1 %v4394_v18  ;;  %v1887_v18 = vld [vmem:[%s5651_s3] sm:$0xff] }
 0x25f   :  { %4397 = vmatpush1.bf16.msra.mxu1 %v4396_v23 }
 0x260   :  { %4399 = vmatprep.subr.bf16.mxu1 %v4398_v17  ;;  %v1876_v17 = vld [vmem:[%s5650_s2] sm:$0xff] }
 0x263   :  { %4401 = vmatpush1.bf16.msra.mxu1 %v4400_v26 }
 0x264   :  { %4403 = vmatprep.subr.bf16.mxu1 %v4402_v28 }
 0x267   :  { %4405 = vmatpush1.bf16.msra.mxu1 %v4404_v32  ;;  %v3819_v32 = vld [vmem:[%s5652_s4 + $0x8] sm:$0xff] }
 0x268   :  { %4407 = vmatprep.subr.bf16.mxu1 %v4406_v33  ;;  %v1345_v54 = vpop.permute.xlu0 %1344  ;;  %v4726_v33 = vmov 0.0|0.0  }
 0x26b   :  { %4409 = vmatpush1.bf16.msra.mxu1 %v4408_v31 }
 0x26c   :  { %4411 = vmatprep.subr.bf16.mxu1 %v4410_v38 }
 0x26f   :  { %4413 = vmatpush1.bf16.msra.mxu1 %v4412_v34 }
 0x270   :  { %4415 = vmatprep.subr.bf16.mxu1 %v4414_v42 }
 0x273   :  { %4417 = vmatpush1.bf16.msra.mxu1 %v4416_v48 }
 0x274   :  { %4419 = vmatprep.subr.bf16.mxu1 %v4418_v49 }
 0x277   :  { %4421 = vmatpush1.bf16.msra.mxu1 %v4420_v46 }
 0x278   :  { %4575 = vmatprep.subr.bf16.mxu1 %v4726_v33 }
 0x27a   :  { %1635 = vmatmul.mubr.f32.vlgmr.msra.gmra.mrb[4].mxu1 %v5261_v6  ;;  %v5271_v6 = vld [vmem:[#allocation5] sm:$0xff] }
 0x27b   :  { %4024 = vmatprep.mubr.msk.f32.mxu1 %vm4725_vm11, %v4723_v10 }
 0x311   :  { %v1707_v52 = vpop.f32.mrb[6].mxu0 }
 0x312   :  { %v1709_v53 = vpop.f32.mrb[7].mxu0 }
 0x34d   :  { %v1636_v56 = vpop.f32.mrb[4].mxu1 }
 0x34e   :  { %v4584_v57 = vadd.f32 %v1636_v56, %v1345_v54  ;;  %v1638_v7 = vpop.f32.mrb[5].mxu1 }
 0x34f   :  { %v4586_v8 = vadd.f32 %v1638_v7, %v1345_v54 }
 0x350   :  { %v4585_v55 = vadd.f32 %v4584_v57, %v1707_v52 }
 0x351   :  { %v4587_v35 = vadd.f32 %v4586_v8, %v1709_v53 }
 0x353   :  { %v1712_v60 = vsel %vm134_vm1, %v4587_v35, 0.0 }
 0x354   :  { %v1713_v59 = vadd.f32 %v4585_v55, %v1712_v60 }
 0x356   :  { %1714 = vadd.xlane.f32.xlu1 %v1713_v59 }
 0x3e3   :  { %v1715_v61 = vpop.xlane.xlu1 %1714 }
 0x3e4   :  { %3923 = vmatpush3.msra.mxu0 %v1715_v61 }
 0x3e5   :  { %3925 = vmatmul.mubr.msk.f32.vlgmr.msra.gmra.mrb[8].mxu0 %vm1717_vm12, %v5271_v6  ;;  %3927 = vmatprep.subr.mxu0 %v4723_v10 }
 0x3e6   :  { %3929 = vmatprep.mubr.msk.f32.mxu0 %vm4725_vm11, %v4723_v10 }
 0x4b8   :  { %v1787_v16 = vpop.f32.mrb[8].mxu0 }
 0x4b9   :  { %v1791_v63 = vmul.f32 0.0019607844, %v1787_v16  ;;  %v3926_v58 = vpop.f32.mrb[9].mxu0 }
 0x4bb   :  { %1794 = vperm.xlu0 %4615, %v1791_v63  }
 0x53a   :  { %v1795_v0 = vpop.permute.xlu0 %1794 }
 0x53b   :  { %v1797_v1 = vsub.f32 %v4585_v55, %v1795_v0  ;;  %v1798_v11 = vsub.f32 %v4587_v35, %v1795_v0  ;;  %v2057_v0 = vld [vmem:[%s5657_s9] sm:$0xff] }
 0x53d   :  { %v1800_v12 = vmul.f32 %v1798_v11, %v1798_v11  ;;  %v1799_v15 = vmul.f32 %v1797_v1, %v1797_v1 }
 0x53f   :  { %v1801_v5 = vsel %vm134_vm1, %v1800_v12, 0.0  ;;  %v1965_v12 = vld [vmem:[#allocation3 + $0x8] sm:$0xff] }
 0x540   :  { %v1802_v4 = vadd.f32 %v1801_v5, %v1799_v15  ;;  %v2059_v5 = vld [vmem:[%s5657_s9 + $0x10] sm:$0xff] }
 0x542   :  { %1803 = vadd.xlane.f32.xlu0 %v1802_v4  ;;  %v2060_v4 = vld [vmem:[%s5657_s9 + $0x18] sm:$0xff] }
 0x558   :  { %1890 = vperm.xlu0 %4615, %v1887_v18   ;;  %v4502_v18 = vpack.c.bf16 %v2060_v4, %v2059_v5 }
 0x5cf   :  { %v1804_v14 = vpop.xlane.xlu0 %1803 }
 0x5d0   :  { %3928 = vmatpush3.msra.mxu0 %v1804_v14  ;;  %v2061_v14 = vld [vmem:[%s5657_s9 + $0x20] sm:$0xff] }
 0x5d1   :  { %3930 = vmatmul.mubr.msk.f32.vlgmr.msra.gmra.mrb[10].mxu0 %vm1717_vm12, %v5271_v6 }
 0x5d2   :  { %2050 = vmatprep.mubr.f32.mxu0 %v4723_v10 }
 0x5d7   :  { %v1891_v28 = vpop.permute.xlu0 %1890 }
 0x6a4   :  { %v1871_v13 = vpop.f32.mrb[10].mxu0 }
 0x6a5   :  { %v1875_v20 = vmul.f32 0.0019607844, %v1871_v13  ;;  %v3931_v21 = vpop.f32.mrb[11].mxu0  ;;  %v2062_v13 = vld [vmem:[%s5657_s9 + $0x28] sm:$0xff] }
 0x6a6   :  { %v2063_v21 = vld [vmem:[%s5657_s9 + $0x30] sm:$0xff] }
 0x6a7   :  { %v1877_v23 = vadd.f32 1e-05, %v1875_v20  ;;  %v4505_v20 = vpack.c.bf16 %v2062_v13, %v2061_v14  ;;  %v3823_v14 = vld [vmem:[%s5650_s2 + $0x8] sm:$0xff] }
 0x6a9   :  { %4617 = vrsqrt.f32 %v1877_v23  ;;  %v2064_v23 = vld [vmem:[%s5657_s9 + $0x38] sm:$0xff] }
 0x6b3   :  { %v4618_v3 = vpop.eup %4617 }
 0x6b4   :  { %v1879_v24 = vmul.f32 %v4618_v3, %v1876_v17  ;;  %v4508_v17 = vpack.c.bf16 %v2064_v23, %v2063_v21  ;;  %v2065_v3 = vld [vmem:[%s5657_s9 + $0x40] sm:$0xff] }
 0x6b6   :  { %1882 = vperm.xlu1 %4616, %v1879_v24   ;;  %v2066_v24 = vld [vmem:[%s5657_s9 + $0x48] sm:$0xff] }
 0x735   :  { %v1883_v25 = vpop.permute.xlu1 %1882 }
 0x736   :  { %v1885_v2 = vmul.f32 %v1883_v25, %v1797_v1  ;;  %v1886_v26 = vmul.f32 %v1883_v25, %v1798_v11  ;;  %v2058_v1 = vld [vmem:[%s5657_s9 + $0x8] sm:$0xff]  ;;  %v4511_v25 = vpack.c.bf16 %v2066_v24, %v2065_v3 }
 0x737   :  { %v4499_v15 = vpack.c.bf16 %v2058_v1, %v2057_v0 }
 0x738   :  { %v1893_v29 = vadd.f32 %v1891_v28, %v1885_v2  ;;  %v1894_v30 = vadd.f32 %v1891_v28, %v1886_v26  ;;  %v2067_v2 = vld [vmem:[%s5657_s9 + $0x50] sm:$0xff]  ;;  %v2068_v26 = vld [vmem:[%s5657_s9 + $0x58] sm:$0xff] }
 0x739   :  { %v4514_v28 = vpack.c.bf16 %v2068_v26, %v2067_v2 }
 0x73a   :  { %v1895_v22 = vmax.f32 %v1893_v29, 0.0  ;;  %v1896_v19 = vmax.f32 %v1894_v30, 0.0  ;;  %v2069_v29 = vld [vmem:[%s5657_s9 + $0x60] sm:$0xff]  ;;  %v2070_v30 = vld [vmem:[%s5657_s9 + $0x68] sm:$0xff] }
 0x73c   :  { %1897 = vst [vmem:[#allocation2] sm:$0xff] %v1895_v22  ;;  %1898 = vst.msk [vmem:[#allocation2 + $0x8] sm:$0xff] %vm484_vm8, %v1896_v19  ;;  %1912 = vrot.lane.b32.xlu0 %v1896_v19, %s4715_s30  ;;  %1901 = vrot.lane.b32.xlu1 %v1895_v22, %s4714_s8 }
 0x740   :  { %1921 = vrot.lane.b32.xlu0 %v1896_v19, %s4716_s14  ;;  %1903 = vrot.lane.b32.xlu1 %v1896_v19, %s4714_s8 }
 0x743   :  { %v1967_v34 = vld [vmem:[#allocation2 + $0x8] sm:$0xff] }
 0x744   :  { %1930 = vrot.lane.b32.xlu0 %v1896_v19, %s4717_s5  ;;  %1910 = vrot.lane.b32.xlu1 %v1895_v22, %s4715_s30 }
 0x748   :  { %1939 = vrot.lane.b32.xlu0 %v1896_v19, %s4718_s26  ;;  %1919 = vrot.lane.b32.xlu1 %v1895_v22, %s4716_s14 }
 0x74c   :  { %1948 = vrot.lane.b32.xlu0 %v1896_v19, %s4719_s15  ;;  %1928 = vrot.lane.b32.xlu1 %v1895_v22, %s4717_s5 }
 0x750   :  { %1957 = vrot.lane.b32.xlu0 %v1896_v19, %s4720_s16  ;;  %1937 = vrot.lane.b32.xlu1 %v1895_v22, %s4718_s26  ;;  %v2071_v19 = vld [vmem:[%s5657_s9 + $0x70] sm:$0xff] }
 0x754   :  { %1946 = vrot.lane.b32.xlu1 %v1895_v22, %s4719_s15 }
 0x758   :  { %1955 = vrot.lane.b32.xlu1 %v1895_v22, %s4720_s16 }
 0x75c   :  { %2092 = vperm.xlu1 %4616, %v3819_v32   ;;  %v2072_v32 = vld [vmem:[%s5657_s9 + $0x78] sm:$0xff] }
 0x7ae   :  { %v1913_v27 = vpop.permute.xlu0 %1912  ;;  %v1902_v9 = vpop.permute.xlu1 %1901 }
 0x7af   :  { %1918 = vst.msk [vmem:[#allocation2 + $0xa8] sm:$0xff] %vm484_vm8, %v1913_v27 }
 0x7b2   :  { %v1922_v36 = vpop.permute.xlu0 %1921  ;;  %v1904_v37 = vpop.permute.xlu1 %1903 }
 0x7b3   :  { %1927 = vst.msk [vmem:[#allocation2 + $0xf8] sm:$0xff] %vm484_vm8, %v1922_v36  ;;  %v1905_v31 = vsel %vm134_vm1, %v1902_v9, %v1904_v37  ;;  %1909 = vst.msk [vmem:[#allocation2 + $0x58] sm:$0xff] %vm484_vm8, %v1904_v37  ;;  %v2073_v9 = vld [vmem:[%s5657_s9 + $0x80] sm:$0xff]  ;;  %vm2471_vm1 = vcmask 1040384  }
 0x7b4   :  { %1908 = vst [vmem:[#allocation2 + $0x50] sm:$0xff] %v1905_v31  ;;  %v4484_v43 = vpack.c.bf16 %v1905_v31, %v1895_v22  ;;  %v4517_v22 = vpack.c.bf16 %v2070_v30, %v2069_v29  ;;  %v2075_v31 = vld [vmem:[%s5657_s9 + $0x90] sm:$0xff] }
 0x7b6   :  { %v1931_v38 = vpop.permute.xlu0 %1930  ;;  %v1911_v39 = vpop.permute.xlu1 %1910  ;;  %v1971_v48 = vld [vmem:[#allocation2 + $0xa8] sm:$0xff] }
 0x7b7   :  { %1936 = vst.msk [vmem:[#allocation2 + $0x148] sm:$0xff] %vm484_vm8, %v1931_v38  ;;  %v1914_v40 = vsel %vm184_vm2, %v1911_v39, %v1913_v27  ;;  %v4520_v27 = vpack.c.bf16 %v2072_v32, %v2071_v19  ;;  %vm4727_vm2 = vmmov 1  }
 0x7b8   :  { %1917 = vst [vmem:[#allocation2 + $0xa0] sm:$0xff] %v1914_v40 }
 0x7ba   :  { %v1940_v41 = vpop.permute.xlu0 %1939  ;;  %v1920_v62 = vpop.permute.xlu1 %1919  ;;  %v1969_v42 = vld [vmem:[#allocation2 + $0x58] sm:$0xff] }
 0x7bb   :  { %v1973_v44 = vld [vmem:[#allocation2 + $0xf8] sm:$0xff]  ;;  %1945 = vst.msk [vmem:[#allocation2 + $0x198] sm:$0xff] %vm484_vm8, %v1940_v41  ;;  %v1923_v45 = vsel %vm234_vm3, %v1920_v62, %v1922_v36  ;;  %v4482_v47 = vpack.c.bf16 %v1969_v42, %v1967_v34  ;;  %v2074_v36 = vld [vmem:[%s5657_s9 + $0x88] sm:$0xff]  ;;  %v2079_v34 = vld [vmem:[%s5657_s9 + $0xb0] sm:$0xff] }
 0x7bc   :  { %1926 = vst [vmem:[#allocation2 + $0xf0] sm:$0xff] %v1923_v45  ;;  %v4486_v49 = vpack.c.bf16 %v1973_v44, %v1971_v48  ;;  %v4488_v52 = vpack.c.bf16 %v1923_v45, %v1914_v40  ;;  %v4523_v37 = vpack.c.bf16 %v2074_v36, %v2073_v9  ;;  %v2077_v40 = vld [vmem:[%s5657_s9 + $0xa0] sm:$0xff]  ;;  %v2080_v42 = vld [vmem:[%s5657_s9 + $0xb8] sm:$0xff]  ;;  %v2083_v48 = vld [vmem:[%s5657_s9 + $0xd0] sm:$0xff] }
 0x7bd   :  { %4483 = vmatprep.subr.bf16.mxu0 %v4482_v47  ;;  %v4532_v44 = vpack.c.bf16 %v2080_v42, %v2079_v34  ;;  %v2081_v45 = vld [vmem:[%s5657_s9 + $0xc0] sm:$0xff]  ;;  %v2082_v47 = vld [vmem:[%s5657_s9 + $0xc8] sm:$0xff]  ;;  %v2455_v34 = vld [vmem:[%s5658_s10 + $0x10] sm:$0xff] }
 0x7be   :  { %v1949_v50 = vpop.permute.xlu0 %1948  ;;  %v1929_v51 = vpop.permute.xlu1 %1928  ;;  %4485 = vmatpush1.bf16.msra.mxu0 %v4484_v43  ;;  %v1975_v56 = vld [vmem:[#allocation2 + $0x148] sm:$0xff]  ;;  %v4535_v43 = vpack.c.bf16 %v2082_v47, %v2081_v45  ;;  %v2456_v42 = vld [vmem:[%s5658_s10 + $0x18] sm:$0xff]  ;;  %v2457_v45 = vld [vmem:[%s5658_s10 + $0x20] sm:$0xff] }
 0x7bf   :  { %1954 = vst.msk [vmem:[#allocation2 + $0x1e8] sm:$0xff] %vm484_vm8, %v1949_v50  ;;  %v1932_v46 = vsel %vm284_vm4, %v1929_v51, %v1931_v38  ;;  %4487 = vmatprep.subr.bf16.mxu0 %v4486_v49  ;;  %v2076_v38 = vld [vmem:[%s5657_s9 + $0x98] sm:$0xff]  ;;  %v2085_v51 = vld [vmem:[%s5657_s9 + $0xe0] sm:$0xff]  ;;  %v2458_v47 = vld [vmem:[%s5658_s10 + $0x28] sm:$0xff]  ;;  %vm2545_vm4 = vcmask 154624  }
 0x7c0   :  { %1935 = vst [vmem:[#allocation2 + $0x140] sm:$0xff] %v1932_v46  ;;  %v4526_v39 = vpack.c.bf16 %v2076_v38, %v2075_v31  ;;  %v2084_v49 = vld [vmem:[%s5657_s9 + $0xd8] sm:$0xff]  ;;  %vm4563_vm3 = vmpackc.low %vm2471_vm1, %vm4727_vm2 }
 0x7c2   :  { %v1958_v53 = vpop.permute.xlu0 %1957  ;;  %v1938_v54 = vpop.permute.xlu1 %1937  ;;  %4489 = vmatpush1.bf16.msra.mxu0 %v4488_v52  ;;  %v1977_v57 = vld [vmem:[#allocation2 + $0x198] sm:$0xff] }
 0x7c3   :  { %1963 = vst.msk [vmem:[#allocation2 + $0x238] sm:$0xff] %vm484_vm8, %v1958_v53  ;;  %v1941_v7 = vsel %vm334_vm5, %v1938_v54, %v1940_v41  ;;  %v4490_v8 = vpack.c.bf16 %v1977_v57, %v1975_v56  ;;  %v2078_v41 = vld [vmem:[%s5657_s9 + $0xa8] sm:$0xff]  ;;  %vm2725_vm5 = vcmask 121856  }
 0x7c4   :  { %1944 = vst [vmem:[#allocation2 + $0x190] sm:$0xff] %v1941_v7  ;;  %v4492_v55 = vpack.c.bf16 %v1941_v7, %v1932_v46  ;;  %v4529_v62 = vpack.c.bf16 %v2078_v41, %v2077_v40  ;;  %v2086_v46 = vld [vmem:[%s5657_s9 + $0xe8] sm:$0xff]  ;;  %v2372_v41 = vld [vmem:[#allocation3 + $0x10] sm:$0xff] }
 0x7c5   :  { %4491 = vmatprep.subr.bf16.mxu0 %v4490_v8  ;;  %v4541_v52 = vpack.c.bf16 %v2086_v46, %v2085_v51 }
 0x7c6   :  { %v1947_v35 = vpop.permute.xlu1 %1946  ;;  %4493 = vmatpush1.bf16.msra.mxu0 %v4492_v55  ;;  %v1979_v61 = vld [vmem:[#allocation2 + $0x1e8] sm:$0xff] }
 0x7c7   :  { %v1950_v60 = vsel %vm384_vm6, %v1947_v35, %v1949_v50  ;;  %v4538_v50 = vpack.c.bf16 %v2084_v49, %v2083_v48  ;;  %v2459_v48 = vld [vmem:[%s5658_s10 + $0x30] sm:$0xff]  ;;  %v2460_v49 = vld [vmem:[%s5658_s10 + $0x38] sm:$0x1]  ;;  %vm2751_vm6 = vcmask 326656  }
 0x7ca   :  { %v1956_v59 = vpop.permute.xlu1 %1955  ;;  %v1981_v16 = vld [vmem:[#allocation2 + $0x238] sm:$0xff] }
 0x7cb   :  { %v1959_v63 = vsel %vm434_vm7, %v1956_v59, %v1958_v53  ;;  %v4494_v58 = vpack.c.bf16 %v1981_v16, %v1979_v61  ;;  %v2087_v53 = vld [vmem:[%s5657_s9 + $0xf0] sm:$0xff]  ;;  %vm4573_vm7 = vmpackc.low %vm1350_vm10, %vm4727_vm2  ;;  %vm3195_vm10 = vcmask 1044480  }
 0x7cc   :  { %v4496_v11 = vpack.c.bf16 %v1959_v63, %v1950_v60 }
 0x7cd   :  { %4495 = vmatprep.subr.bf16.mxu0 %v4494_v58 }
 0x7ce   :  { %4497 = vmatpush1.bf16.msra.mxu0 %v4496_v11  ;;  %v3824_v11 = vld [vmem:[%s5651_s3 + $0x8] sm:$0xff] }
 0x7cf   :  { %4498 = vmatprep.subr.bf16.mxu0 %v4726_v33 }
 0x7d1   :  { %3818 = vmatmul.mubr.msk.f32.vlgmr.msra.gmra.mrb[12].mxu0 %vm1982_vm13, %v1965_v12  ;;  %vm3269_vm13 = vcmask 23552  }
 0x7d2   :  { %4500 = vmatpush1.bf16.msra.mxu0 %v4499_v15 }
 0x7d3   :  { %4501 = vmatprep.subr.bf16.mxu0 %v4726_v33 }
 0x7d6   :  { %4503 = vmatpush1.bf16.msra.mxu0 %v4502_v18 }
 0x7d7   :  { %4504 = vmatprep.subr.bf16.mxu0 %v4726_v33 }
 0x7da   :  { %4506 = vmatpush1.bf16.msra.mxu0 %v4505_v20 }
 0x7db   :  { %4507 = vmatprep.subr.bf16.mxu0 %v4726_v33  ;;  %v2093_v57 = vpop.permute.xlu1 %2092 }
 0x7de   :  { %4509 = vmatpush1.bf16.msra.mxu0 %v4508_v17 }
 0x7df   :  { %4510 = vmatprep.subr.bf16.mxu0 %v4726_v33 }
 0x7e2   :  { %4512 = vmatpush1.bf16.msra.mxu0 %v4511_v25  ;;  %v3826_v25 = vld [vmem:[%s5652_s4 + $0x10] sm:$0xff] }
 0x7e3   :  { %4513 = vmatprep.subr.bf16.mxu0 %v4726_v33 }
 0x7e6   :  { %4515 = vmatpush1.bf16.msra.mxu0 %v4514_v28 }
 0x7e7   :  { %4516 = vmatprep.subr.bf16.mxu0 %v4726_v33 }
 0x7ea   :  { %4518 = vmatpush1.bf16.msra.mxu0 %v4517_v22 }
 0x7eb   :  { %4519 = vmatprep.subr.bf16.mxu0 %v4726_v33 }
 0x7ee   :  { %4521 = vmatpush1.bf16.msra.mxu0 %v4520_v27 }
 0x7ef   :  { %4522 = vmatprep.subr.bf16.mxu0 %v4726_v33 }
 0x7f2   :  { %4524 = vmatpush1.bf16.msra.mxu0 %v4523_v37  ;;  %v2453_v37 = vld [vmem:[%s5658_s10] sm:$0xff] }
 0x7f3   :  { %4525 = vmatprep.subr.bf16.mxu0 %v4726_v33 }
 0x7f6   :  { %4527 = vmatpush1.bf16.msra.mxu0 %v4526_v39  ;;  %v2454_v39 = vld [vmem:[%s5658_s10 + $0x8] sm:$0xff] }
 0x7f7   :  { %4528 = vmatprep.subr.bf16.mxu0 %v4726_v33 }
 0x7fa   :  { %4530 = vmatpush1.bf16.msra.mxu0 %v4529_v62  ;;  %v4553_v62 = vpack.c.bf16 %v2454_v39, %v2453_v37 }
 0x7fb   :  { %4531 = vmatprep.subr.bf16.mxu0 %v4726_v33 }
 0x7fe   :  { %4533 = vmatpush1.bf16.msra.mxu0 %v4532_v44  ;;  %v4556_v44 = vpack.c.bf16 %v2456_v42, %v2455_v34 }
 0x7ff   :  { %4534 = vmatprep.subr.bf16.mxu0 %v4726_v33 }
 0x802   :  { %4536 = vmatpush1.bf16.msra.mxu0 %v4535_v43  ;;  %v4559_v43 = vpack.c.bf16 %v2458_v47, %v2457_v45 }
 0x803   :  { %4537 = vmatprep.subr.bf16.mxu0 %v4726_v33 }
 0x806   :  { %4539 = vmatpush1.bf16.msra.mxu0 %v4538_v50  ;;  %v4562_v50 = vpack.c.bf16 %v2460_v49, %v2459_v48 }
 0x807   :  { %4540 = vmatprep.subr.bf16.mxu0 %v4726_v33 }
 0x80a   :  { %4542 = vmatpush1.bf16.msra.mxu0 %v4541_v52 }
 0x80b   :  { %2158 = vmatprep.subr.mxu0 %v4723_v10 }
 0x80e   :  { %2159 = vmatpush1.msra.mxu0 %v2087_v53 }
 0x80f   :  { %3932 = vmatprep.subr.mxu0 %v4723_v10 }
 0x8a4   :  { %v2052_v54 = vpop.f32.mrb[12].mxu0 }
 0x8a5   :  { %v2054_v56 = vpop.f32.mrb[13].mxu0 }
 0x8a6   :  { %3820 = vmatprep.mubr.msk.f32.mxu0 %vm484_vm8, %v2054_v56  ;;  %vm3089_vm8 = vcmask 39936  }
 0x8a7   :  { %2163 = vmatmul.mubr.f32.vlgmr.msra.gmra.mrb[14].mxu0 %v2052_v54 }
 0x8a8   :  { %3934 = vmatprep.mubr.msk.f32.mxu0 %vm4725_vm11, %v4723_v10 }
 0x97a   :  { %v2164_v7 = vpop.f32.mrb[14].mxu0 }
 0x97b   :  { %v2165_v8 = vadd.f32 %v2164_v7, %v2093_v57  ;;  %v2166_v55 = vpop.f32.mrb[15].mxu0 }
 0x97d   :  { %v2169_v35 = vsel %vm2168_vm14, %v2165_v8, 0.0 }
 0x97e   :  { %2170 = vadd.xlane.f32.xlu0 %v2169_v35 }
 0xa0b   :  { %v2171_v60 = vpop.xlane.xlu0 %2170 }
 0xa0c   :  { %3933 = vmatpush3.msra.mxu0 %v2171_v60 }
 0xa0d   :  { %3935 = vmatmul.mubr.msk.f32.vlgmr.msra.gmra.mrb[16].mxu0 %vm1717_vm12, %v5271_v6  ;;  %3937 = vmatprep.subr.mxu0 %v4723_v10 }
 0xa0e   :  { %3939 = vmatprep.mubr.msk.f32.mxu0 %vm4725_vm11, %v4723_v10 }
 0xae0   :  { %v2242_v59 = vpop.f32.mrb[16].mxu0 }
 0xae1   :  { %v2246_v61 = vmul.f32 0.008064516, %v2242_v59  ;;  %v3936_v16 = vpop.f32.mrb[17].mxu0 }
 0xae3   :  { %2249 = vperm.xlu1 %4616, %v2246_v61  }
 0xb62   :  { %v2250_v63 = vpop.permute.xlu1 %2249 }
 0xb63   :  { %v2252_v58 = vsub.f32 %v2165_v8, %v2250_v63  ;;  %v3832_v63 = vld [vmem:[%s5651_s3 + $0x10] sm:$0xff] }
 0xb65   :  { %v2253_v0 = vmul.f32 %v2252_v58, %v2252_v58 }
 0xb67   :  { %v2254_v1 = vsel %vm2168_vm14, %v2253_v0, 0.0  ;;  %vm3449_vm14 = vcmask 7168  }
 0xb68   :  { %2255 = vadd.xlane.f32.xlu1 %v2254_v1 }
 0xb79   :  { %2343 = vperm.xlu1 %4616, %v3824_v11  }
 0xbf5   :  { %v2256_v12 = vpop.xlane.xlu1 %2255 }
 0xbf6   :  { %3938 = vmatpush3.msra.mxu0 %v2256_v12 }
 0xbf7   :  { %3940 = vmatmul.mubr.msk.f32.vlgmr.msra.gmra.mrb[18].mxu0 %vm1717_vm12, %v5271_v6  ;;  %4543 = vmatprep.subr.bf16.mxu0 %v4726_v33 }
 0xbf8   :  { %3954 = vmatprep.mubr.msk.f32.mxu0 %vm4725_vm11, %v4723_v10 }
 0xbf9   :  { %v2344_v17 = vpop.permute.xlu1 %2343 }
 0xcca   :  { %v2323_v15 = vpop.f32.mrb[18].mxu0 }
 0xccb   :  { %v2327_v5 = vmul.f32 0.008064516, %v2323_v15  ;;  %v3941_v4 = vpop.f32.mrb[19].mxu0  ;;  %v3831_v15 = vld [vmem:[%s5650_s2 + $0x10] sm:$0xff] }
 0xccd   :  { %v2330_v18 = vadd.f32 1e-05, %v2327_v5 }
 0xccf   :  { %4619 = vrsqrt.f32 %v2330_v18 }
 0xcd9   :  { %v4620_v13 = vpop.eup %4619 }
 0xcda   :  { %v2332_v20 = vmul.f32 %v4620_v13, %v3823_v14 }
 0xcdc   :  { %2335 = vperm.xlu0 %4615, %v2332_v20  }
 0xd5b   :  { %v2336_v21 = vpop.permute.xlu0 %2335 }
 0xd5c   :  { %v2338_v23 = vmul.f32 %v2336_v21, %v2252_v58 }
 0xd5e   :  { %v2346_v3 = vadd.f32 %v2344_v17, %v2338_v23  ;;  %v3834_v23 = vld [vmem:[%s5652_s4 + $0x18] sm:$0xff] }
 0xd60   :  { %v2347_v24 = vmax.f32 %v2346_v3, 0.0 }
 0xd62   :  { %2359 = vrot.lane.b32.xlu1 %v2347_v24, %s4716_s14  ;;  %2351 = vrot.lane.b32.xlu0 %v2347_v24, %s4714_s8  ;;  %2349 = vst.msk [vmem:[#allocation2] sm:$0xff] %vm2348_vm15, %v2347_v24 }
 0xd66   :  { %2367 = vrot.lane.b32.xlu1 %v2347_v24, %s4718_s26  ;;  %2355 = vrot.lane.b32.xlu0 %v2347_v24, %s4715_s30 }
 0xd69   :  { %v2373_v22 = vld [vmem:[#allocation2] sm:$0xff] }
 0xd6a   :  { %2363 = vrot.lane.b32.xlu0 %v2347_v24, %s4717_s5 }
 0xd6e   :  { %2465 = vperm.xlu0 %4615, %v3826_v25  }
 0xdd4   :  { %v2360_v2 = vpop.permute.xlu1 %2359  ;;  %v2352_v26 = vpop.permute.xlu0 %2351 }
 0xdd5   :  { %2362 = vst.msk [vmem:[#allocation2 + $0xf0] sm:$0xff] %vm2348_vm15, %v2360_v2  ;;  %2354 = vst.msk [vmem:[#allocation2 + $0x50] sm:$0xff] %vm2348_vm15, %v2352_v26 }
 0xdd8   :  { %v2368_v28 = vpop.permute.xlu1 %2367  ;;  %v2356_v29 = vpop.permute.xlu0 %2355 }
 0xdd9   :  { %2370 = vst.msk [vmem:[#allocation2 + $0x190] sm:$0xff] %vm2348_vm15, %v2368_v28  ;;  %2358 = vst.msk [vmem:[#allocation2 + $0xa0] sm:$0xff] %vm2348_vm15, %v2356_v29 }
 0xddc   :  { %v2364_v30 = vpop.permute.xlu0 %2363  ;;  %v2374_v19 = vld [vmem:[#allocation2 + $0x50] sm:$0xff] }
 0xddd   :  { %2366 = vst.msk [vmem:[#allocation2 + $0x140] sm:$0xff] %vm2348_vm15, %v2364_v30  ;;  %v4544_v32 = vpack.c.bf16 %v2374_v19, %v2373_v22  ;;  %v2376_v9 = vld [vmem:[#allocation2 + $0xf0] sm:$0xff]  ;;  %v2825_v19 = vld [vmem:[%s5659_s11] sm:$0xff] }
 0xddf   :  { %4545 = vmatpush3.bf16.msra.mxu0 %v4544_v32  ;;  %v2826_v32 = vld [vmem:[%s5659_s11 + $0x8] sm:$0x7f] }
 0xde0   :  { %4546 = vmatprep.subr.bf16.mxu0 %v4726_v33  ;;  %v2375_v27 = vld [vmem:[#allocation2 + $0xa0] sm:$0xff]  ;;  %v2378_v38 = vld [vmem:[#allocation2 + $0x190] sm:$0xff] }
 0xde1   :  { %v4547_v36 = vpack.c.bf16 %v2376_v9, %v2375_v27  ;;  %v2745_v27 = vld [vmem:[#allocation3 + $0x18] sm:$0xff]  ;;  %v4572_v9 = vpack.c.bf16 %v2826_v32, %v2825_v19  ;;  %v3848_v19 = vld [vmem:[%s5651_s3 + $0x20] sm:$0xff] }
 0xde3   :  { %4548 = vmatpush3.bf16.msra.mxu0 %v4547_v36 }
 0xde4   :  { %4549 = vmatprep.subr.bf16.mxu0 %v4726_v33  ;;  %v2377_v31 = vld [vmem:[#allocation2 + $0x140] sm:$0xff] }
 0xde5   :  { %v4550_v40 = vpack.c.bf16 %v2378_v38, %v2377_v31 }
 0xde7   :  { %4551 = vmatpush3.bf16.msra.mxu0 %v4550_v40 }
 0xde8   :  { %4552 = vmatprep.subr.bf16.mxu0 %v4726_v33 }
 0xdea   :  { %3955 = vmatmul.mubr.msk.f32.vlgmr.msra.gmra.mrb[20].mxu0 %vm2379_vm0, %v2372_v41 }
 0xdeb   :  { %4554 = vmatpush3.bf16.msra.mxu0 %v4553_v62  ;;  %3973 = vmatprep.mubr.msk.f32.mxu0 %vm4725_vm11, %v4723_v10 }
 0xdec   :  { %4555 = vmatprep.subr.bf16.mxu0 %v4726_v33 }
 0xded   :  { %v2466_v52 = vpop.permute.xlu0 %2465 }
 0xdef   :  { %4557 = vmatpush3.bf16.msra.mxu0 %v4556_v44 }
 0xdf0   :  { %4558 = vmatprep.subr.bf16.mxu0 %v4726_v33 }
 0xdf3   :  { %4560 = vmatpush3.bf16.msra.mxu0 %v4559_v43 }
 0xdf4   :  { %4561 = vmatprep.subr.bf16.mxu0 %v4726_v33 }
 0xdf7   :  { %4564 = vmatpush3.bf16.msk.msra.mxu0 %vm4563_vm3, %v4562_v50  ;;  %v3840_v50 = vld [vmem:[%s5651_s3 + $0x18] sm:$0xff] }
 0xdf8   :  { %3976 = vmatprep.subr.mxu0 %v4723_v10 }
 0xebd   :  { %v2449_v51 = vpop.f32.mrb[20].mxu0 }
 0xebe   :  { %v3956_v46 = vpop.f32.mrb[21].mxu0  ;;  %3974 = vmatmul.mubr.msk.f32.vlgmr.msra.gmra.mrb[22].mxu0 %vm2348_vm15, %v2449_v51  ;;  %vm3467_vm15 = vcmask 195584  }
 0xebf   :  { %3978 = vmatprep.mubr.msk.f32.mxu0 %vm4725_vm11, %v4723_v10 }
 0xf91   :  { %v2541_v53 = vpop.f32.mrb[22].mxu0 }
 0xf92   :  { %v2542_v54 = vadd.f32 %v2541_v53, %v2466_v52  ;;  %v3975_v56 = vpop.f32.mrb[23].mxu0 }
 0xf93   :  { %v3839_v56 = vld [vmem:[%s5650_s2 + $0x18] sm:$0xff] }
 0xf94   :  { %v2546_v57 = vsel %vm2545_vm4, %v2542_v54, 0.0 }
 0xf95   :  { %2547 = vadd.xlane.f32.xlu1 %v2546_v57 }
0x1022   :  { %v2548_v7 = vpop.xlane.xlu1 %2547 }
0x1023   :  { %3977 = vmatpush3.msra.mxu0 %v2548_v7 }
0x1024   :  { %3979 = vmatmul.mubr.msk.f32.vlgmr.msra.gmra.mrb[24].mxu0 %vm1717_vm12, %v5271_v6  ;;  %3981 = vmatprep.subr.mxu0 %v4723_v10 }
0x1025   :  { %3983 = vmatprep.mubr.msk.f32.mxu0 %vm4725_vm11, %v4723_v10 }
0x10f7   :  { %v2619_v8 = vpop.f32.mrb[24].mxu0 }
0x10f8   :  { %v2623_v55 = vmul.f32 0.02631579, %v2619_v8  ;;  %v3980_v35 = vpop.f32.mrb[25].mxu0 }
0x10fa   :  { %2626 = vperm.xlu0 %4615, %v2623_v55  }
0x1179   :  { %v2627_v60 = vpop.permute.xlu0 %2626 }
0x117a   :  { %v2629_v59 = vsub.f32 %v2542_v54, %v2627_v60 }
0x117c   :  { %v2630_v61 = vmul.f32 %v2629_v59, %v2629_v59 }
0x117e   :  { %v2631_v16 = vsel %vm2545_vm4, %v2630_v61, 0.0  ;;  %v3842_v61 = vld [vmem:[%s5652_s4 + $0x20] sm:$0xff] }
0x117f   :  { %2632 = vadd.xlane.f32.xlu0 %v2631_v16 }
0x1195   :  { %2720 = vperm.xlu0 %4615, %v3832_v63  }
0x120c   :  { %v2633_v58 = vpop.xlane.xlu0 %2632 }
0x120d   :  { %3982 = vmatpush3.msra.mxu0 %v2633_v58 }
0x120e   :  { %3984 = vmatmul.mubr.msk.f32.vlgmr.msra.gmra.mrb[26].mxu0 %vm1717_vm12, %v5271_v6  ;;  %4565 = vmatprep.subr.bf16.mxu0 %v4726_v33 }
0x120f   :  { %3996 = vmatprep.mubr.msk.f32.mxu0 %vm4725_vm11, %v4723_v10 }
0x1214   :  { %v2721_v13 = vpop.permute.xlu0 %2720 }
0x12e1   :  { %v2700_v0 = vpop.f32.mrb[26].mxu0 }
0x12e2   :  { %v2704_v1 = vmul.f32 0.02631579, %v2700_v0  ;;  %v3985_v11 = vpop.f32.mrb[27].mxu0 }
0x12e4   :  { %v2707_v12 = vadd.f32 1e-05, %v2704_v1 }
0x12e6   :  { %4621 = vrsqrt.f32 %v2707_v12 }
0x12f0   :  { %v4622_v5 = vpop.eup %4621 }
0x12f1   :  { %v2709_v4 = vmul.f32 %v4622_v5, %v3831_v15 }
0x12f3   :  { %2712 = vperm.xlu1 %4616, %v2709_v4   ;;  %v3105_v4 = vld [vmem:[#allocation3 + $0x20] sm:$0xff] }
0x1372   :  { %v2713_v18 = vpop.permute.xlu1 %2712 }
0x1373   :  { %v2715_v14 = vmul.f32 %v2713_v18, %v2629_v59  ;;  %v3184_v18 = vld [vmem:[%s5660_s12] sm:$0x1f] }
0x1375   :  { %v2723_v20 = vadd.f32 %v2721_v13, %v2715_v14 }
0x1377   :  { %v2724_v21 = vmax.f32 %v2723_v20, 0.0 }
0x1379   :  { %2736 = vrot.lane.b32.xlu0 %v2724_v21, %s4716_s14  ;;  %2728 = vrot.lane.b32.xlu1 %v2724_v21, %s4714_s8  ;;  %2726 = vst.msk [vmem:[#allocation2] sm:$0xff] %vm2725_vm5, %v2724_v21 }
0x137d   :  { %2831 = vperm.xlu0 %4615, %v3834_v23   ;;  %2732 = vrot.lane.b32.xlu1 %v2724_v21, %s4715_s30 }
0x1380   :  { %v2746_v2 = vld [vmem:[#allocation2] sm:$0xff] }
0x1381   :  { %2740 = vrot.lane.b32.xlu1 %v2724_v21, %s4717_s5 }
0x13eb   :  { %v2737_v17 = vpop.permute.xlu0 %2736  ;;  %v2729_v3 = vpop.permute.xlu1 %2728 }
0x13ec   :  { %2739 = vst.msk [vmem:[#allocation2 + $0xf0] sm:$0xff] %vm2725_vm5, %v2737_v17  ;;  %2731 = vst.msk [vmem:[#allocation2 + $0x50] sm:$0xff] %vm2725_vm5, %v2729_v3 }
0x13ef   :  { %v2733_v24 = vpop.permute.xlu1 %2732 }
0x13f0   :  { %2735 = vst.msk [vmem:[#allocation2 + $0xa0] sm:$0xff] %vm2725_vm5, %v2733_v24 }
0x13f3   :  { %v2741_v25 = vpop.permute.xlu1 %2740  ;;  %v2747_v26 = vld [vmem:[#allocation2 + $0x50] sm:$0xff] }
0x13f4   :  { %2743 = vst.msk [vmem:[#allocation2 + $0x140] sm:$0xff] %vm2725_vm5, %v2741_v25  ;;  %v4566_v28 = vpack.c.bf16 %v2747_v26, %v2746_v2  ;;  %v2749_v30 = vld [vmem:[#allocation2 + $0xf0] sm:$0xff] }
0x13f6   :  { %4567 = vmatpush3.bf16.msra.mxu0 %v4566_v28 }
0x13f7   :  { %4568 = vmatprep.subr.bf16.mxu0 %v4726_v33  ;;  %v2748_v29 = vld [vmem:[#allocation2 + $0xa0] sm:$0xff] }
0x13f8   :  { %v4569_v22 = vpack.c.bf16 %v2749_v30, %v2748_v29 }
0x13fa   :  { %4570 = vmatpush3.bf16.msra.mxu0 %v4569_v22 }
0x13fb   :  { %3994 = vmatprep.subr.mxu0 %v4723_v10  ;;  %v2750_v36 = vld [vmem:[#allocation2 + $0x140] sm:$0xff] }
0x13fc   :  { %v2832_v38 = vpop.permute.xlu0 %2831 }
0x13fe   :  { %3995 = vmatpush3.msra.mxu0 %v2750_v36 }
0x13ff   :  { %3997 = vmatmul.mubr.msk.f32.vlgmr.msra.gmra.mrb[28].mxu0 %vm2751_vm6, %v2745_v27  ;;  %4571 = vmatprep.subr.bf16.mxu0 %v4726_v33 }
0x1400   :  { %4574 = vmatpush3.bf16.msk.msra.mxu0 %vm4573_vm7, %v4572_v9  ;;  %4003 = vmatprep.mubr.msk.f32.mxu0 %vm4725_vm11, %v4723_v10 }
0x1401   :  { %4006 = vmatprep.subr.mxu0 %v4723_v10 }
0x14d2   :  { %v2821_v37 = vpop.f32.mrb[28].mxu0 }
0x14d3   :  { %v3998_v31 = vpop.f32.mrb[29].mxu0  ;;  %4004 = vmatmul.mubr.msk.f32.vlgmr.msra.gmra.mrb[30].mxu0 %vm2725_vm5, %v2821_v37 }
0x14d4   :  { %4008 = vmatprep.mubr.msk.f32.mxu0 %vm4725_vm11, %v4723_v10  ;;  %v3847_v31 = vld [vmem:[%s5650_s2 + $0x20] sm:$0xff] }
0x15a6   :  { %v2906_v39 = vpop.f32.mrb[30].mxu0 }
0x15a7   :  { %v2907_v40 = vadd.f32 %v2906_v39, %v2832_v38  ;;  %v4005_v41 = vpop.f32.mrb[31].mxu0 }
0x15a9   :  { %v2910_v62 = vsel %vm1717_vm12, %v2907_v40, 0.0 }
0x15aa   :  { %2911 = vadd.xlane.f32.xlu1 %v2910_v62 }
0x1637   :  { %v2912_v34 = vpop.xlane.xlu1 %2911 }
0x1638   :  { %4007 = vmatpush3.msra.mxu0 %v2912_v34 }
0x1639   :  { %4009 = vmatmul.mubr.msk.f32.vlgmr.msra.gmra.mrb[32].mxu0 %vm1717_vm12, %v5271_v6  ;;  %4011 = vmatprep.subr.mxu0 %v4723_v10 }
0x163a   :  { %4013 = vmatprep.mubr.msk.f32.mxu0 %vm4725_vm11, %v4723_v10 }
0x170c   :  { %v2983_v42 = vpop.f32.mrb[32].mxu0 }
0x170d   :  { %v2987_v44 = vmul.f32 0.0625, %v2983_v42  ;;  %v4010_v45 = vpop.f32.mrb[33].mxu0 }
0x170f   :  { %2990 = vperm.xlu0 %4615, %v2987_v44  }
0x178e   :  { %v2991_v47 = vpop.permute.xlu0 %2990 }
0x178f   :  { %v2993_v43 = vsub.f32 %v2907_v40, %v2991_v47 }
0x1791   :  { %v2994_v48 = vmul.f32 %v2993_v43, %v2993_v43 }
0x1793   :  { %v2995_v49 = vsel %vm1717_vm12, %v2994_v48, 0.0 }
0x1794   :  { %2996 = vadd.xlane.f32.xlu0 %v2995_v49  ;;  %v3849_v49 = vld [vmem:[%s5652_s4 + $0x28] sm:$0xff] }
0x17aa   :  { %3084 = vperm.xlu0 %4615, %v3840_v50  }
0x1821   :  { %v2997_v51 = vpop.xlane.xlu0 %2996 }
0x1822   :  { %4012 = vmatpush3.msra.mxu0 %v2997_v51 }
0x1823   :  { %4014 = vmatmul.mubr.msk.f32.vlgmr.msra.gmra.mrb[34].mxu0 %vm1717_vm12, %v5271_v6  ;;  %4027 = vmatprep.subr.mxu0 %v4723_v10 }
0x1824   :  { %4029 = vmatprep.mubr.msk.f32.mxu0 %vm4725_vm11, %v4723_v10  ;;  %4028 = vmatpush3.msk.msra.mxu0 %vm3195_vm10, %v3184_v18 }
0x1825   :  { %4032 = vmatprep.subr.mxu0 %v4723_v10 }
0x1829   :  { %v3085_v35 = vpop.permute.xlu0 %3084 }
0x18f6   :  { %v3064_v46 = vpop.f32.mrb[34].mxu0 }
0x18f7   :  { %v3068_v52 = vmul.f32 0.0625, %v3064_v46  ;;  %v4015_v53 = vpop.f32.mrb[35].mxu0 }
0x18f9   :  { %v3071_v54 = vadd.f32 1e-05, %v3068_v52  ;;  %v3542_v52 = vld [vmem:[#allocation5] sm:$0xff] }
0x18fb   :  { %4623 = vrsqrt.f32 %v3071_v54 }
0x1905   :  { %v4624_v57 = vpop.eup %4623 }
0x1906   :  { %v3073_v7 = vmul.f32 %v4624_v57, %v3839_v56 }
0x1908   :  { %3076 = vperm.xlu1 %4616, %v3073_v7  }
0x1987   :  { %v3077_v8 = vpop.permute.xlu1 %3076 }
0x1988   :  { %v3079_v55 = vmul.f32 %v3077_v8, %v2993_v43  ;;  %v3461_v43 = vld [vmem:[#allocation3 + $0x28] sm:$0xff]  ;;  %v3702_v8 = vld [vmem:[%s5654_s6] sm:$0xff] }
0x198a   :  { %v3087_v60 = vadd.f32 %v3085_v35, %v3079_v55 }
0x198c   :  { %v3088_v59 = vmax.f32 %v3087_v60, 0.0 }
0x198e   :  { %3100 = vrot.lane.b32.xlu0 %v3088_v59, %s4716_s14  ;;  %3092 = vrot.lane.b32.xlu1 %v3088_v59, %s4714_s8  ;;  %3090 = vst.msk [vmem:[#allocation2] sm:$0xff] %vm3089_vm8, %v3088_v59 }
0x1992   :  { %3096 = vrot.lane.b32.xlu1 %v3088_v59, %s4715_s30 }
0x1995   :  { %v3106_v0 = vld [vmem:[#allocation2] sm:$0xff] }
0x1996   :  { %3189 = vperm.xlu1 %4616, %v3842_v61  }
0x1a00   :  { %v3101_v16 = vpop.permute.xlu0 %3100  ;;  %v3093_v63 = vpop.permute.xlu1 %3092 }
0x1a01   :  { %3103 = vst.msk [vmem:[#allocation2 + $0xf0] sm:$0xff] %vm3089_vm8, %v3101_v16  ;;  %3095 = vst.msk [vmem:[#allocation2 + $0x50] sm:$0xff] %vm3089_vm8, %v3093_v63  ;;  %v3854_v63 = vld [vmem:[%s5651_s3 + $0x28] sm:$0xff] }
0x1a04   :  { %v3097_v58 = vpop.permute.xlu1 %3096 }
0x1a05   :  { %3099 = vst.msk [vmem:[#allocation2 + $0xa0] sm:$0xff] %vm3089_vm8, %v3097_v58 }
0x1a08   :  { %v3107_v1 = vld [vmem:[#allocation2 + $0x50] sm:$0xff] }
0x1a09   :  { %v4576_v11 = vpack.c.bf16 %v3107_v1, %v3106_v0  ;;  %v3109_v15 = vld [vmem:[#allocation2 + $0xf0] sm:$0xff] }
0x1a0b   :  { %4577 = vmatpush3.bf16.msra.mxu1 %v4576_v11  ;;  %v3703_v11 = vld [vmem:[%s5654_s6 + $0x8] sm:$0x3] }
0x1a0c   :  { %4578 = vmatprep.subr.bf16.mxu1 %v4726_v33  ;;  %v3108_v12 = vld [vmem:[#allocation2 + $0xa0] sm:$0xff] }
0x1a0d   :  { %v4579_v5 = vpack.c.bf16 %v3109_v15, %v3108_v12  ;;  %v3705_v12 = vld [vmem:[%s5655_s7 + $0x8] sm:$0x3]  ;;  %v3704_v15 = vld [vmem:[%s5655_s7] sm:$0xff] }
0x1a0f   :  { %4580 = vmatpush3.bf16.msra.mxu1 %v4579_v5 }
0x1a12   :  { %4025 = vmatmul.mubr.msk.f32.vlgmr.msra.gmra.mrb[6].mxu1 %vm3110_vm9, %v3105_v4 }
0x1a15   :  { %v3190_v20 = vpop.permute.xlu1 %3189 }
0x1ae5   :  { %v3180_v14 = vpop.f32.mrb[6].mxu1 }
0x1ae6   :  { %v4026_v13 = vpop.f32.mrb[7].mxu1  ;;  %4030 = vmatmul.mubr.msk.f32.vlgmr.msra.gmra.mrb[36].mxu0 %vm3089_vm8, %v3180_v14 }
0x1ae7   :  { %4034 = vmatprep.mubr.msk.f32.mxu0 %vm4725_vm11, %v4723_v10 }
0x1bb9   :  { %v3265_v21 = vpop.f32.mrb[36].mxu0 }
0x1bba   :  { %v3266_v23 = vadd.f32 %v3265_v21, %v3190_v20  ;;  %v4031_v17 = vpop.f32.mrb[37].mxu0 }
0x1bbc   :  { %v3270_v3 = vsel %vm3269_vm13, %v3266_v23, 0.0 }
0x1bbd   :  { %3271 = vadd.xlane.f32.xlu0 %v3270_v3 }
0x1c4a   :  { %v3272_v24 = vpop.xlane.xlu0 %3271 }
0x1c4b   :  { %4033 = vmatpush3.msra.mxu0 %v3272_v24 }
0x1c4c   :  { %4035 = vmatmul.mubr.msk.f32.vlgmr.msra.gmra.mrb[38].mxu0 %vm1717_vm12, %v5271_v6  ;;  %4037 = vmatprep.subr.mxu0 %v4723_v10 }
0x1c4d   :  { %4039 = vmatprep.mubr.msk.f32.mxu0 %vm4725_vm11, %v4723_v10 }
0x1d1f   :  { %v3343_v25 = vpop.f32.mrb[38].mxu0 }
0x1d20   :  { %v3347_v2 = vmul.f32 0.16666667, %v3343_v25  ;;  %v4036_v26 = vpop.f32.mrb[39].mxu0 }
0x1d22   :  { %3350 = vperm.xlu1 %4616, %v3347_v2  }
0x1da1   :  { %v3351_v28 = vpop.permute.xlu1 %3350 }
0x1da2   :  { %v3353_v29 = vsub.f32 %v3266_v23, %v3351_v28 }
0x1da4   :  { %v3354_v30 = vmul.f32 %v3353_v29, %v3353_v29 }
0x1da6   :  { %v3355_v22 = vsel %vm3269_vm13, %v3354_v30, 0.0 }
0x1da7   :  { %3356 = vadd.xlane.f32.xlu1 %v3355_v22 }
0x1db8   :  { %3444 = vperm.xlu1 %4616, %v3848_v19  }
0x1e34   :  { %v3357_v32 = vpop.xlane.xlu1 %3356 }
0x1e35   :  { %4038 = vmatpush3.msra.mxu0 %v3357_v32 }
0x1e36   :  { %4040 = vmatmul.mubr.msk.f32.vlgmr.msra.gmra.mrb[40].mxu0 %vm1717_vm12, %v5271_v6  ;;  %4581 = vmatprep.subr.bf16.mxu0 %v4726_v33 }
0x1e37   :  { %4048 = vmatprep.mubr.msk.f32.mxu0 %vm4725_vm11, %v4723_v10 }
0x1e38   :  { %v3445_v6 = vpop.permute.xlu1 %3444 }
0x1f09   :  { %v3424_v27 = vpop.f32.mrb[40].mxu0 }
0x1f0a   :  { %v3428_v9 = vmul.f32 0.16666667, %v3424_v27  ;;  %v4041_v36 = vpop.f32.mrb[41].mxu0 }
0x1f0c   :  { %v3431_v37 = vadd.f32 1e-05, %v3428_v9 }
0x1f0e   :  { %4625 = vrsqrt.f32 %v3431_v37 }
0x1f18   :  { %v4626_v38 = vpop.eup %4625 }
0x1f19   :  { %v3433_v39 = vmul.f32 %v4626_v38, %v3847_v31 }
0x1f1b   :  { %3436 = vperm.xlu0 %4615, %v3433_v39  }
0x1f9a   :  { %v3437_v40 = vpop.permute.xlu0 %3436 }
0x1f9b   :  { %v3439_v41 = vmul.f32 %v3437_v40, %v3353_v29 }
0x1f9d   :  { %v3447_v62 = vadd.f32 %v3445_v6, %v3439_v41 }
0x1f9f   :  { %v3448_v33 = vmax.f32 %v3447_v62, 0.0 }
0x1fa1   :  { %3452 = vrot.lane.b32.xlu0 %v3448_v33, %s4714_s8  ;;  %3450 = vst.msk [vmem:[#allocation2] sm:$0xff] %vm3449_vm14, %v3448_v33 }
0x1fa5   :  { %3456 = vrot.lane.b32.xlu0 %v3448_v33, %s4715_s30 }
0x1fa8   :  { %v3462_v44 = vld [vmem:[#allocation2] sm:$0xff] }
0x2013   :  { %v3453_v34 = vpop.permute.xlu0 %3452 }
0x2014   :  { %3455 = vst.msk [vmem:[#allocation2 + $0x50] sm:$0xff] %vm3449_vm14, %v3453_v34 }
0x2017   :  { %v3457_v42 = vpop.permute.xlu0 %3456 }
0x2018   :  { %3459 = vst.msk [vmem:[#allocation2 + $0xa0] sm:$0xff] %vm3449_vm14, %v3457_v42 }
0x201b   :  { %v3463_v45 = vld [vmem:[#allocation2 + $0x50] sm:$0xff] }
0x201c   :  { %v4582_v47 = vpack.c.bf16 %v3463_v45, %v3462_v44 }
0x201e   :  { %4583 = vmatpush3.bf16.msra.mxu0 %v4582_v47 }
0x201f   :  { %4046 = vmatprep.subr.mxu0 %v4723_v10  ;;  %v3464_v48 = vld [vmem:[#allocation2 + $0xa0] sm:$0xff] }
0x2022   :  { %4047 = vmatpush3.msra.mxu0 %v3464_v48 }
0x2023   :  { %4049 = vmatmul.mubr.msk.f32.vlgmr.msra.gmra.mrb[42].mxu0 %vm3467_vm15, %v3461_v43  ;;  %4051 = vmatprep.subr.mxu0 %v4723_v10 }
0x2024   :  { %4053 = vmatprep.mubr.msk.f32.mxu0 %vm4725_vm11, %v4723_v10 }
0x20f6   :  { %v3537_v50 = vpop.f32.mrb[42].mxu0 }
0x20f7   :  { %v3538_v51 = vadd.f32 %v3849_v49, %v3537_v50  ;;  %v4050_v46 = vpop.f32.mrb[43].mxu0 }
0x20f9   :  { %4052 = vmatpush3.msra.mxu0 %v3538_v51 }
0x20fa   :  { %4054 = vmatmul.mubr.msk.f32.vlgmr.msra.gmra.mrb[44].mxu0 %vm1717_vm12, %v3542_v52  ;;  %4056 = vmatprep.subr.mxu0 %v4723_v10 }
0x20fb   :  { %4058 = vmatprep.mubr.msk.f32.mxu0 %vm4725_vm11, %v4723_v10  ;;  %v3853_v10 = vld [vmem:[%s5650_s2 + $0x28] sm:$0xff]  ;;  %vm3800_vm11 = vcmask 1024  }
0x21cd   :  { %v3612_v53 = vpop.f32.mrb[44].mxu0 }
0x21ce   :  { %v3616_v54 = vmul.f32 0.5, %v3612_v53  ;;  %v4055_v56 = vpop.f32.mrb[45].mxu0 }
0x21d0   :  { %v3617_v57 = vsub.f32 %v3538_v51, %v3616_v54 }
0x21d2   :  { %v3618_v7 = vmul.f32 %v3617_v57, %v3617_v57 }
0x21d4   :  { %4057 = vmatpush3.msra.mxu0 %v3618_v7 }
0x21d5   :  { %4059 = vmatmul.mubr.msk.f32.vlgmr.msra.gmra.mrb[46].mxu0 %vm1717_vm12, %v3542_v52 }
0x21d6   :  { %4063 = vmatprep.mubr.msk.f32.mxu0 %vm1717_vm12, %v3702_v8 }
0x22a8   :  { %v3686_v55 = vpop.f32.mrb[46].mxu0 }
0x22a9   :  { %v3690_v35 = vmul.f32 0.5, %v3686_v55  ;;  %v4060_v60 = vpop.f32.mrb[47].mxu0 }
0x22ab   :  { %v3693_v59 = vadd.f32 1e-05, %v3690_v35 }
0x22ad   :  { %4627 = vrsqrt.f32 %v3693_v59 }
0x22b7   :  { %v4628_v61 = vpop.eup %4627 }
0x22b8   :  { %v3695_v16 = vmul.f32 %v4628_v61, %v3853_v10 }
0x22ba   :  { %v3696_v58 = vmul.f32 %v3695_v16, %v3617_v57 }
0x22bc   :  { %v3699_v0 = vadd.f32 %v3854_v63, %v3696_v58 }
0x22be   :  { %v3700_v1 = vmax.f32 %v3699_v0, 0.0 }
0x22c0   :  { %4061 = vmatprep.subr.mxu0 %v3700_v1 }
0x22c1   :  { %4062 = vmatpush3.msra.mxu0 %v3700_v1 }
0x22c2   :  { %4064 = vmatmul.mubr.msk.f32.vlgmr.msra.gmra.mrb[48].mxu0 %vm1717_vm12, %v3703_v11 }
0x2395   :  { %v4065_v5 = vpop.f32.mrb[48].mxu0 }
0x2396   :  { %v3784_v4 = vadd.f32 %v4065_v5, %v3705_v12  ;;  %v3778_v18 = vpop.f32.mrb[49].mxu0 }
0x2397   :  { %v3779_v14 = vadd.f32 %v3778_v18, %v3704_v15 }
0x2398   :  { %v3858_v13 = vmul.f32 -1.442695, %v3784_v4 }
0x2399   :  { %v3857_v20 = vmul.f32 -1.442695, %v3779_v14 }
0x239a   :  { %4629 = vpow2.f32 %v3858_v13 }
0x239b   :  { %4631 = vpow2.f32 %v3857_v20 }
0x23a4   :  { %v4630_v21 = vpop.eup %4629 }
0x23a5   :  { %v4632_v23 = vpop.eup %4631  ;;  %v3794_v17 = vadd.f32 1.0, %v4630_v21 }
0x23a6   :  { %v3793_v3 = vadd.f32 1.0, %v4632_v23 }
0x23a7   :  { %4633 = vrcp.f32 %v3794_v17 }
0x23a8   :  { %4635 = vrcp.f32 %v3793_v3 }
0x23b1   :  { %v4634_v24 = vpop.eup %4633 }
0x23b2   :  { %v4636_v25 = vpop.eup %4635  ;;  %3801 = vst.msk [vmem:[%s5661_s13 + $0x8] sm:$0x3] %vm3800_vm11, %v4634_v24 }
0x23b3   :  { %3799 = vst.msk [vmem:[%s5661_s13] sm:$0xff] %vm3449_vm14, %v4636_v25 }
0x23b4   :  { %3806 = vsyncpa [#allocation4], 1 }
0x23b5   :  { %3807 = vsyncpa [#allocation6], 1 }

</bundles_post_ra>
